<compile_context>
chip_gen: v7x
topology: tpu7x:2x2x1
jax: 0.10.0
libtpu: 0.0.40
codegen_flags: <defaults>
</compile_context>

<pallas_src>
import math

import jax
import jax.numpy as jnp
from jax import lax
from jax.experimental import pallas as pl
from jax.experimental.pallas import tpu as pltpu


def _round_up(x, m):
    return ((x + m - 1) // m) * m


# ----------------------------------------------------------------------------
# Kernel 1: fused Linear -> ReLU -> Linear (row-tiled, used by encode/decode)
# ----------------------------------------------------------------------------
def mlp2_kernel(x_ref, w1_ref, b1_ref, w2_ref, b2_ref, o_ref):
    # x: (TN, Din_p); w1: (Din_p, H_p); b1: (1, H_p); w2: (H_p, Dout_p); b2: (1, Dout_p)
    h = jnp.dot(x_ref[...], w1_ref[...], preferred_element_type=jnp.float32) + b1_ref[...]
    h = jnp.maximum(h, 0.0)  # torch.relu
    y = jnp.dot(h, w2_ref[...], preferred_element_type=jnp.float32) + b2_ref[...]
    o_ref[...] = y.astype(o_ref.dtype)


def mlp2(x, w1t, b1, w2t, b2, tile_n):
    # x: (Np, Din_p) row/feature padded; w1t/w2t pre-transposed + padded.
    n_rows, d_in = x.shape
    h_p = w1t.shape[1]
    d_out = w2t.shape[1]
    grid = (n_rows // tile_n,)
    flops = 2 * n_rows * d_in * h_p + 2 * n_rows * h_p * d_out
    bytes_accessed = 4 * (n_rows * d_in + n_rows * d_out + d_in * h_p + h_p * d_out + h_p + d_out)
    return pl.pallas_call(
        mlp2_kernel,
        out_shape=jax.ShapeDtypeStruct((n_rows, d_out), jnp.float32),
        grid_spec=pltpu.PrefetchScalarGridSpec(
            num_scalar_prefetch=0,
            grid=grid,
            in_specs=[
                pl.BlockSpec((tile_n, d_in), lambda i: (i, 0)),
                pl.BlockSpec((d_in, h_p), lambda i: (0, 0)),   # resident weights
                pl.BlockSpec((1, h_p), lambda i: (0, 0)),
                pl.BlockSpec((h_p, d_out), lambda i: (0, 0)),
                pl.BlockSpec((1, d_out), lambda i: (0, 0)),
            ],
            out_specs=pl.BlockSpec((tile_n, d_out), lambda i: (i, 0)),
        ),
        compiler_params=pltpu.CompilerParams(
            dimension_semantics=("parallel",),        # row tiles shard across TCs
            vmem_limit_bytes=32 * 1024 * 1024,        # fits v7x's 64 MiB with headroom
        ),
        cost_estimate=pl.CostEstimate(
            flops=flops, transcendentals=0, bytes_accessed=bytes_accessed),
    )(x, w1t, b1.reshape(1, -1), w2t, b2.reshape(1, -1))


# ----------------------------------------------------------------------------
# Kernel 2: full LSTM stack (all layers fused), time-major, zero initial state
# ----------------------------------------------------------------------------
def lstm_stack_kernel(x_ref, wih_ref, whh_ref, b_ref, y_ref, xbuf, gates):
    # x/y: (T, Bp, Hp); wih/whh: (L, Hp, 4Hp) pre-transposed; b: (L, 1, 4Hp) = b_ih+b_hh
    T, Bp, Hp = x_ref.shape
    L = wih_ref.shape[0]

    def run_layer(l, src_ref, dst_ref):
        wih = wih_ref[l]          # (Hp, 4Hp) -- loaded once, outside the loop
        whh = whh_ref[l]          # (Hp, 4Hp)
        b = b_ref[l]              # (1, 4Hp)
        # Hoisted input projection (+bias) for ALL timesteps: one big MXU matmul.
        gx = jnp.dot(src_ref[...].reshape(T * Bp, Hp), wih,
                     preferred_element_type=jnp.float32) + b
        gates[...] = gx.reshape(T, Bp, 4 * Hp)

        def step(t, carry):
            h, c = carry
            g = gates[t] + jnp.dot(h, whh, preferred_element_type=jnp.float32)
            i_g = jax.nn.sigmoid(g[:, 0 * Hp:1 * Hp])   # lane-aligned gate slabs
            f_g = jax.nn.sigmoid(g[:, 1 * Hp:2 * Hp])
            g_g = jnp.tanh(g[:, 2 * Hp:3 * Hp])
            o_g = jax.nn.sigmoid(g[:, 3 * Hp:4 * Hp])
            c_new = f_g * c + i_g * g_g
            h_new = o_g * jnp.tanh(c_new)
            dst_ref[t] = h_new.astype(dst_ref.dtype)
            return (h_new, c_new)

        zero = jnp.zeros((Bp, Hp), jnp.float32)
        # T is static and small -> unroll so the LLO scheduler can overlap the
        # MXU push of step t+1 with the EUP/VPU tail of step t.
        lax.fori_loop(0, T, step, (zero, zero), unroll=True)

    # Ping-pong between xbuf and y_ref so the final layer lands in y_ref and no
    # intermediate layer output round-trips through HBM.
    for l in range(L):
        src = x_ref if l == 0 else (y_ref if (L - l) % 2 == 0 else xbuf)
        dst = y_ref if (L - 1 - l) % 2 == 0 else xbuf
        run_layer(l, src, dst)


def lstm_stack(x_tm, wih_s, whh_s, b_s):
    # TODO(synk): for large B, grid over batch blocks with dimension_semantics=
    # ("parallel",) so both v7x TensorCores work during the serial recurrence.
    T, Bp, Hp = x_tm.shape
    L = wih_s.shape[0]
    vmem = pl.BlockSpec(memory_space=pltpu.MemorySpace.VMEM)
    flops = L * 2 * (2 * T * Bp * Hp * 4 * Hp)            # x-proj + h-proj
    trans = L * T * Bp * 5 * Hp                           # 3 sigmoid + 2 tanh
    bytes_accessed = 4 * (2 * T * Bp * Hp + L * (2 * Hp * 4 * Hp + 4 * Hp))
    return pl.pallas_call(
        lstm_stack_kernel,
        out_shape=jax.ShapeDtypeStruct((T, Bp, Hp), jnp.float32),
        in_specs=[vmem] * 4,
        out_specs=vmem,
        scratch_shapes=[
            pltpu.VMEM((T, Bp, Hp), jnp.float32),         # layer ping-pong buffer
            pltpu.VMEM((T, Bp, 4 * Hp), jnp.float32),     # precomputed x@Wih + b
        ],
        compiler_params=pltpu.CompilerParams(vmem_limit_bytes=32 * 1024 * 1024),
        cost_estimate=pl.CostEstimate(
            flops=flops, transcendentals=trans, bytes_accessed=bytes_accessed),
    )(x_tm, wih_s, whh_s, b_s)


# ----------------------------------------------------------------------------
# Parameter init (deterministic, PyTorch-style uniform bounds)
# ----------------------------------------------------------------------------
def init_params(key, input_size, action_size, hidden_size, num_layers):
    def uni(k, shape, fan_in):
        bound = 1.0 / math.sqrt(fan_in)
        return jax.random.uniform(k, shape, jnp.float32, -bound, bound)

    keys = jax.random.split(key, 32)
    ki = iter(keys)
    p = {}
    p["enc1_w"] = uni(next(ki), (hidden_size, input_size), input_size)
    p["enc1_b"] = uni(next(ki), (hidden_size,), input_size)
    p["enc2_w"] = uni(next(ki), (hidden_size, hidden_size), hidden_size)
    p["enc2_b"] = uni(next(ki), (hidden_size,), hidden_size)
    p["dec1_w"] = uni(next(ki), (hidden_size, hidden_size), hidden_size)
    p["dec1_b"] = uni(next(ki), (hidden_size,), hidden_size)
    p["dec2_w"] = uni(next(ki), (input_size, hidden_size), hidden_size)
    p["dec2_b"] = uni(next(ki), (input_size,), hidden_size)
    p["lstm"] = []
    for _ in range(num_layers):
        p["lstm"].append({
            "wih": uni(next(ki), (4 * hidden_size, hidden_size), hidden_size),
            "whh": uni(next(ki), (4 * hidden_size, hidden_size), hidden_size),
            "bih": uni(next(ki), (4 * hidden_size,), hidden_size),
            "bhh": uni(next(ki), (4 * hidden_size,), hidden_size),
        })
    # f_action / f_hidden exist in __init__ but are unused by forward();
    # created for shape fidelity only.
    p["act_w"] = uni(next(ki), (hidden_size, action_size), action_size)
    p["act_b"] = uni(next(ki), (hidden_size,), action_size)
    p["hid_w"] = uni(next(ki), (hidden_size, hidden_size), hidden_size)
    p["hid_b"] = uni(next(ki), (hidden_size,), hidden_size)
    return p


# ----------------------------------------------------------------------------
# Wrapper-side layout helpers (pre-transpose + zero-pad, per-gate for LSTM)
# ----------------------------------------------------------------------------
def _pad2(a, rows, cols):
    return jnp.pad(a, ((0, rows - a.shape[0]), (0, cols - a.shape[1])))


def _pad_gates_wT(w, h, h_p):
    # w: (4H, Din) torch layout -> transposed & per-gate padded: (Din_p, 4*H_p)
    d_in = w.shape[1]
    d_in_p = _round_up(d_in, 128)
    wt = w.T
    blocks = []
    for g in range(4):
        blk = wt[:, g * h:(g + 1) * h]
        blocks.append(jnp.pad(blk, ((0, d_in_p - d_in), (0, h_p - h))))
    return jnp.concatenate(blocks, axis=1)


def _pad_gates_b(b, h, h_p):
    return jnp.concatenate(
        [jnp.pad(b[g * h:(g + 1) * h], (0, h_p - h)) for g in range(4)])


# ----------------------------------------------------------------------------
# Forward pass
# ----------------------------------------------------------------------------
def forward(params, s):
    B, T, D = s.shape
    H = params["enc1_w"].shape[0]
    D_p = _round_up(D, 128)
    H_p = _round_up(H, 128)
    B_p = _round_up(B, 8)

    # Pre-transposed, zero-padded weights (zeros never change real outputs).
    enc1_wt = _pad2(params["enc1_w"].T, D_p, H_p)
    enc1_b = jnp.pad(params["enc1_b"], (0, H_p - H))
    enc2_wt = _pad2(params["enc2_w"].T, H_p, H_p)
    enc2_b = jnp.pad(params["enc2_b"], (0, H_p - H))
    dec1_wt = _pad2(params["dec1_w"].T, H_p, H_p)
    dec1_b = jnp.pad(params["dec1_b"], (0, H_p - H))
    dec2_wt = _pad2(params["dec2_w"].T, H_p, D_p)
    dec2_b = jnp.pad(params["dec2_b"], (0, D_p - D))

    wih_s = jnp.stack([_pad_gates_wT(l["wih"], H, H_p) for l in params["lstm"]])
    whh_s = jnp.stack([_pad_gates_wT(l["whh"], H, H_p) for l in params["lstm"]])
    b_s = jnp.stack([_pad_gates_b(l["bih"] + l["bhh"], H, H_p)[None, :]
                     for l in params["lstm"]])

    # Go time-major once; pad batch to sublane multiple, features to lane multiple.
    s_p = jnp.pad(s, ((0, B_p - B), (0, 0), (0, D_p - D)))      # (Bp, T, Dp)
    x_tm = jnp.transpose(s_p, (1, 0, 2))                         # (T, Bp, Dp)

    n_rows = T * B_p
    tile_n = min(512, _round_up(n_rows, 8))
    n_rows_p = _round_up(n_rows, tile_n)
    x_rows = jnp.pad(x_tm.reshape(n_rows, D_p), ((0, n_rows_p - n_rows), (0, 0)))

    # encode(): relu(f_encoder1(s)) -> f_encoder2  (output already H_p-padded)
    enc_rows = mlp2(x_rows, enc1_wt, enc1_b, enc2_wt, enc2_b, tile_n)   # (Np, Hp)

    # LSTM: all layers in one kernel, time-major, zero initial state.
    lstm_in = enc_rows[:n_rows].reshape(T, B_p, H_p)
    lstm_out = lstm_stack(lstm_in, wih_s, whh_s, b_s)                   # (T, Bp, Hp)

    # decode(): relu(f_decoder1(encoded)) -> f_decoder2
    dec_in = jnp.pad(lstm_out.reshape(n_rows, H_p), ((0, n_rows_p - n_rows), (0, 0)))
    dec_rows = mlp2(dec_in, dec1_wt, dec1_b, dec2_wt, dec2_b, tile_n)   # (Np, Dp)

    encoded = jnp.transpose(lstm_out[:, :B, :H], (1, 0, 2))             # (B, T, H)
    decoded = jnp.transpose(
        dec_rows[:n_rows].reshape(T, B_p, D_p)[:, :B, :D], (1, 0, 2))   # (B, T, D)
    return encoded, decoded


# ----------------------------------------------------------------------------
# Pure-JAX reference (for correctness check only)
# ----------------------------------------------------------------------------
def forward_ref(params, s):
    B, T, D = s.shape
    H = params["enc1_w"].shape[0]
    x = jnp.maximum(s @ params["enc1_w"].T + params["enc1_b"], 0.0)
    x = x @ params["enc2_w"].T + params["enc2_b"]                # (B, T, H)

    layer_in = x
    for layer in params["lstm"]:
        wih, whh = layer["wih"], layer["whh"]
        b = layer["bih"] + layer["bhh"]

        def cell(carry, x_t):
            h, c = carry
            g = x_t @ wih.T + h @ whh.T + b
            i = jax.nn.sigmoid(g[:, 0 * H:1 * H])
            f = jax.nn.sigmoid(g[:, 1 * H:2 * H])
            gg = jnp.tanh(g[:, 2 * H:3 * H])
            o = jax.nn.sigmoid(g[:, 3 * H:4 * H])
            c = f * c + i * gg
            h = o * jnp.tanh(c)
            return (h, c), h

        h0 = jnp.zeros((B, H), jnp.float32)
        c0 = jnp.zeros((B, H), jnp.float32)
        _, ys = lax.scan(cell, (h0, c0), layer_in.transpose(1, 0, 2))
        layer_in = ys.transpose(1, 0, 2)
    encoded = layer_in

    d = jnp.maximum(encoded @ params["dec1_w"].T + params["dec1_b"], 0.0)
    decoded = d @ params["dec2_w"].T + params["dec2_b"]
    return encoded, decoded


if __name__ == "__main__":
    # Small shapes consistent with the module's forward: s is [B, T, input_size]
    B, T = 2, 8
    input_size, action_size, hidden_size, num_layers = 16, 4, 32, 2

    key = jax.random.PRNGKey(0)
    k_param, k_data = jax.random.split(key)
    params = init_params(k_param, input_size, action_size, hidden_size, num_layers)
    s = jax.random.normal(k_data, (B, T, input_size), jnp.float32)

    encoded, decoded = jax.jit(forward)(params, s)
    jax.block_until_ready((encoded, decoded))

    enc_ref, dec_ref = forward_ref(params, s)
    assert encoded.shape == (B, T, hidden_size)
    assert decoded.shape == (B, T, input_size)
    assert jnp.allclose(encoded, enc_ref, atol=1e-4, rtol=1e-4)
    assert jnp.allclose(decoded, dec_ref, atol=1e-4, rtol=1e-4)

    print("KERNEL_OK")
</pallas_src>

<mosaic_0001>
module attributes {stable_mosaic.version = 11 : i64} {
  func.func @mlp2_kernel(%arg0: i32, %arg1: memref<64x128xf32, #tpu.memory_space<vmem>>, %arg2: memref<128x128xf32, #tpu.memory_space<vmem>>, %arg3: memref<1x128xf32, #tpu.memory_space<vmem>>, %arg4: memref<128x128xf32, #tpu.memory_space<vmem>>, %arg5: memref<1x128xf32, #tpu.memory_space<vmem>>, %arg6: memref<64x128xf32, #tpu.memory_space<vmem>>) attributes {dimension_semantics = [#tpu.dimension_semantics<parallel>], iteration_bounds = array<i64: 1>, scalar_prefetch = 0 : i64, scratch_operands = 0 : i64, tpu.core_type = #tpu.core_type<tc>, window_params = [{transform_indices = @transform_0, window_bounds = array<i64: 64, 128>}, {pipeline_mode = #tpu.pipeline_mode<synchronous>, transform_indices = @transform_1, window_bounds = array<i64: 128, 128>}, {pipeline_mode = #tpu.pipeline_mode<synchronous>, transform_indices = @transform_2, window_bounds = array<i64: 1, 128>}, {pipeline_mode = #tpu.pipeline_mode<synchronous>, transform_indices = @transform_3, window_bounds = array<i64: 128, 128>}, {pipeline_mode = #tpu.pipeline_mode<synchronous>, transform_indices = @transform_4, window_bounds = array<i64: 1, 128>}, {transform_indices = @transform_5, window_bounds = array<i64: 64, 128>}]} {
    %c0 = arith.constant 0 : index
    %c0_0 = arith.constant 0 : index
    %0 = vector.load %arg1[%c0, %c0_0] : memref<64x128xf32, #tpu.memory_space<vmem>>, vector<64x128xf32>
    %c0_1 = arith.constant 0 : index
    %c0_2 = arith.constant 0 : index
    %1 = vector.load %arg2[%c0_1, %c0_2] : memref<128x128xf32, #tpu.memory_space<vmem>>, vector<128x128xf32>
    %cst = arith.constant dense<0.000000e+00> : vector<64x128xf32>
    %2 = tpu.matmul %0, %1, %cst {dimension_numbers = #tpu.dot_dimension_numbers<[1], [0], [0], [1], [0, 0, 1, 1], [], []>} : vector<64x128xf32>, vector<128x128xf32>, vector<64x128xf32> -> vector<64x128xf32>
    %c0_3 = arith.constant 0 : index
    %c0_4 = arith.constant 0 : index
    %3 = vector.load %arg3[%c0_3, %c0_4] : memref<1x128xf32, #tpu.memory_space<vmem>>, vector<1x128xf32>
    %4 = vector.broadcast %3 : vector<1x128xf32> to vector<64x128xf32>
    %5 = arith.addf %2, %4 : vector<64x128xf32>
    %cst_5 = arith.constant 0.000000e+00 : f32
    %6 = vector.broadcast %cst_5 : f32 to vector<64x128xf32>
    %7 = arith.maximumf %5, %6 : vector<64x128xf32>
    %c0_6 = arith.constant 0 : index
    %c0_7 = arith.constant 0 : index
    %8 = vector.load %arg4[%c0_6, %c0_7] : memref<128x128xf32, #tpu.memory_space<vmem>>, vector<128x128xf32>
    %cst_8 = arith.constant dense<0.000000e+00> : vector<64x128xf32>
    %9 = tpu.matmul %7, %8, %cst_8 {dimension_numbers = #tpu.dot_dimension_numbers<[1], [0], [0], [1], [0, 0, 1, 1], [], []>} : vector<64x128xf32>, vector<128x128xf32>, vector<64x128xf32> -> vector<64x128xf32>
    %c0_9 = arith.constant 0 : index
    %c0_10 = arith.constant 0 : index
    %10 = vector.load %arg5[%c0_9, %c0_10] : memref<1x128xf32, #tpu.memory_space<vmem>>, vector<1x128xf32>
    %11 = vector.broadcast %10 : vector<1x128xf32> to vector<64x128xf32>
    %12 = arith.addf %9, %11 : vector<64x128xf32>
    %c0_11 = arith.constant 0 : index
    %c0_12 = arith.constant 0 : index
    %13 = vector.load %arg6[%c0_11, %c0_12] : memref<64x128xf32, #tpu.memory_space<vmem>>, vector<64x128xf32>
    tpu.vector_store %arg6[%c0_11, %c0_12], %12 {strides = array<i32>} : memref<64x128xf32, #tpu.memory_space<vmem>>, vector<64x128xf32>,
    return
  }
  func.func @transform_0(%arg0: i32) -> (i32, i32) {
    %c0_i32 = arith.constant 0 : i32
    %c0_i32_0 = arith.constant 0 : i32
    return %arg0, %c0_i32 : i32, i32
  }
  func.func @transform_1(%arg0: i32) -> (i32, i32) {
    %c0_i32 = arith.constant 0 : i32
    %c0_i32_0 = arith.constant 0 : i32
    %c0_i32_1 = arith.constant 0 : i32
    return %c0_i32, %c0_i32_0 : i32, i32
  }
  func.func @transform_2(%arg0: i32) -> (i32, i32) {
    %c0_i32 = arith.constant 0 : i32
    %c0_i32_0 = arith.constant 0 : i32
    %c0_i32_1 = arith.constant 0 : i32
    return %c0_i32, %c0_i32_0 : i32, i32
  }
  func.func @transform_3(%arg0: i32) -> (i32, i32) {
    %c0_i32 = arith.constant 0 : i32
    %c0_i32_0 = arith.constant 0 : i32
    %c0_i32_1 = arith.constant 0 : i32
    return %c0_i32, %c0_i32_0 : i32, i32
  }
  func.func @transform_4(%arg0: i32) -> (i32, i32) {
    %c0_i32 = arith.constant 0 : i32
    %c0_i32_0 = arith.constant 0 : i32
    %c0_i32_1 = arith.constant 0 : i32
    return %c0_i32, %c0_i32_0 : i32, i32
  }
  func.func @transform_5(%arg0: i32) -> (i32, i32) {
    %c0_i32 = arith.constant 0 : i32
    %c0_i32_0 = arith.constant 0 : i32
    return %arg0, %c0_i32 : i32, i32
  }
}

module attributes {stable_mosaic.version = 11 : i64} {
  func.func @lstm_stack_kernel(%arg0: memref<8x8x128xf32, #tpu.memory_space<vmem>>, %arg1: memref<2x128x512xf32, #tpu.memory_space<vmem>>, %arg2: memref<2x128x512xf32, #tpu.memory_space<vmem>>, %arg3: memref<2x1x512xf32, #tpu.memory_space<vmem>>, %arg4: memref<8x8x128xf32, #tpu.memory_space<vmem>>, %arg5: memref<8x8x128xf32, #tpu.memory_space<vmem>>, %arg6: memref<8x8x512xf32, #tpu.memory_space<vmem>>) attributes {dimension_semantics = [], scalar_prefetch = 0 : i64, scratch_operands = 2 : i64, tpu.core_type = #tpu.core_type<tc>} {
    %c0 = arith.constant 0 : index
    %c0_0 = arith.constant 0 : index
    %c0_1 = arith.constant 0 : index
    %0 = vector.load %arg1[%c0, %c0_0, %c0_1] : memref<2x128x512xf32, #tpu.memory_space<vmem>>, vector<1x128x512xf32>
    %1 = vector.shape_cast %0 : vector<1x128x512xf32> to vector<128x512xf32>
    %c0_2 = arith.constant 0 : index
    %c0_3 = arith.constant 0 : index
    %c0_4 = arith.constant 0 : index
    %2 = vector.load %arg2[%c0_2, %c0_3, %c0_4] : memref<2x128x512xf32, #tpu.memory_space<vmem>>, vector<1x128x512xf32>
    %3 = vector.shape_cast %2 : vector<1x128x512xf32> to vector<128x512xf32>
    %c0_5 = arith.constant 0 : index
    %c0_6 = arith.constant 0 : index
    %c0_7 = arith.constant 0 : index
    %4 = vector.load %arg3[%c0_5, %c0_6, %c0_7] : memref<2x1x512xf32, #tpu.memory_space<vmem>>, vector<1x1x512xf32>
    %5 = vector.shape_cast %4 : vector<1x1x512xf32> to vector<1x512xf32>
    %c0_8 = arith.constant 0 : index
    %c0_9 = arith.constant 0 : index
    %c0_10 = arith.constant 0 : index
    %6 = vector.load %arg0[%c0_8, %c0_9, %c0_10] : memref<8x8x128xf32, #tpu.memory_space<vmem>>, vector<8x8x128xf32>
    %7 = vector.shape_cast %6 : vector<8x8x128xf32> to vector<64x128xf32>
    %cst = arith.constant dense<0.000000e+00> : vector<64x512xf32>
    %8 = tpu.matmul %7, %1, %cst {dimension_numbers = #tpu.dot_dimension_numbers<[1], [0], [0], [1], [0, 0, 1, 1], [], []>} : vector<64x128xf32>, vector<128x512xf32>, vector<64x512xf32> -> vector<64x512xf32>
    %9 = vector.broadcast %5 : vector<1x512xf32> to vector<64x512xf32>
    %10 = arith.addf %8, %9 : vector<64x512xf32>
    %11 = vector.shape_cast %10 : vector<64x512xf32> to vector<8x8x512xf32>
    %c0_11 = arith.constant 0 : index
    %c0_12 = arith.constant 0 : index
    %c0_13 = arith.constant 0 : index
    %12 = vector.load %arg6[%c0_11, %c0_12, %c0_13] : memref<8x8x512xf32, #tpu.memory_space<vmem>>, vector<8x8x512xf32>
    tpu.vector_store %arg6[%c0_11, %c0_12, %c0_13], %11 {strides = array<i32>} : memref<8x8x512xf32, #tpu.memory_space<vmem>>, vector<8x8x512xf32>,
    %cst_14 = arith.constant 0.000000e+00 : f32
    %13 = vector.broadcast %cst_14 : f32 to vector<8x128xf32>
    %c0_i32 = arith.constant 0 : i32
    %14 = arith.index_cast %c0_i32 : i32 to index
    %c0_15 = arith.constant 0 : index
    %c0_16 = arith.constant 0 : index
    %15 = vector.load %arg6[%14, %c0_15, %c0_16] : memref<8x8x512xf32, #tpu.memory_space<vmem>>, vector<1x8x512xf32>
    %16 = vector.shape_cast %15 : vector<1x8x512xf32> to vector<8x512xf32>
    %cst_17 = arith.constant dense<0.000000e+00> : vector<8x512xf32>
    %17 = tpu.matmul %13, %3, %cst_17 {dimension_numbers = #tpu.dot_dimension_numbers<[1], [0], [0], [1], [0, 0, 1, 1], [], []>} : vector<8x128xf32>, vector<128x512xf32>, vector<8x512xf32> -> vector<8x512xf32>
    %18 = arith.addf %16, %17 : vector<8x512xf32>
    %19 = vector.extract_strided_slice %18 {offsets = [0, 0], sizes = [8, 128], strides = [1, 1]} : vector<8x512xf32> to vector<8x128xf32>
    %20 = arith.negf %19 : vector<8x128xf32>
    %21 = math.exp %20 : vector<8x128xf32>
    %cst_18 = arith.constant 1.000000e+00 : f32
    %22 = vector.broadcast %cst_18 : f32 to vector<8x128xf32>
    %23 = arith.addf %22, %21 : vector<8x128xf32>
    %24 = arith.divf %22, %23 : vector<8x128xf32>
    %25 = vector.extract_strided_slice %18 {offsets = [0, 128], sizes = [8, 128], strides = [1, 1]} : vector<8x512xf32> to vector<8x128xf32>
    %26 = arith.negf %25 : vector<8x128xf32>
    %27 = math.exp %26 : vector<8x128xf32>
    %cst_19 = arith.constant 1.000000e+00 : f32
    %28 = vector.broadcast %cst_19 : f32 to vector<8x128xf32>
    %29 = arith.addf %28, %27 : vector<8x128xf32>
    %30 = arith.divf %28, %29 : vector<8x128xf32>
    %31 = vector.extract_strided_slice %18 {offsets = [0, 256], sizes = [8, 128], strides = [1, 1]} : vector<8x512xf32> to vector<8x128xf32>
    %32 = math.tanh %31 : vector<8x128xf32>
    %33 = vector.extract_strided_slice %18 {offsets = [0, 384], sizes = [8, 128], strides = [1, 1]} : vector<8x512xf32> to vector<8x128xf32>
    %34 = arith.negf %33 : vector<8x128xf32>
    %35 = math.exp %34 : vector<8x128xf32>
    %cst_20 = arith.constant 1.000000e+00 : f32
    %36 = vector.broadcast %cst_20 : f32 to vector<8x128xf32>
    %37 = arith.addf %36, %35 : vector<8x128xf32>
    %38 = arith.divf %36, %37 : vector<8x128xf32>
    %39 = arith.mulf %30, %13 : vector<8x128xf32>
    %40 = arith.mulf %24, %32 : vector<8x128xf32>
    %41 = arith.addf %39, %40 : vector<8x128xf32>
    %42 = math.tanh %41 : vector<8x128xf32>
    %43 = arith.mulf %38, %42 : vector<8x128xf32>
    %44 = arith.index_cast %c0_i32 : i32 to index
    %c0_21 = arith.constant 0 : index
    %c0_22 = arith.constant 0 : index
    %45 = vector.load %arg5[%44, %c0_21, %c0_22] : memref<8x8x128xf32, #tpu.memory_space<vmem>>, vector<1x8x128xf32>
    %46 = vector.shape_cast %45 : vector<1x8x128xf32> to vector<8x128xf32>
    %47 = vector.shape_cast %43 : vector<8x128xf32> to vector<1x8x128xf32>
    tpu.vector_store %arg5[%44, %c0_21, %c0_22], %47 {strides = array<i32>} : memref<8x8x128xf32, #tpu.memory_space<vmem>>, vector<1x8x128xf32>,
    %c1_i32 = arith.constant 1 : i32
    %48 = arith.index_cast %c1_i32 : i32 to index
    %c0_23 = arith.constant 0 : index
    %c0_24 = arith.constant 0 : index
    %49 = vector.load %arg6[%48, %c0_23, %c0_24] : memref<8x8x512xf32, #tpu.memory_space<vmem>>, vector<1x8x512xf32>
    %50 = vector.shape_cast %49 : vector<1x8x512xf32> to vector<8x512xf32>
    %cst_25 = arith.constant dense<0.000000e+00> : vector<8x512xf32>
    %51 = tpu.matmul %43, %3, %cst_25 {dimension_numbers = #tpu.dot_dimension_numbers<[1], [0], [0], [1], [0, 0, 1, 1], [], []>} : vector<8x128xf32>, vector<128x512xf32>, vector<8x512xf32> -> vector<8x512xf32>
    %52 = arith.addf %50, %51 : vector<8x512xf32>
    %53 = vector.extract_strided_slice %52 {offsets = [0, 0], sizes = [8, 128], strides = [1, 1]} : vector<8x512xf32> to vector<8x128xf32>
    %54 = arith.negf %53 : vector<8x128xf32>
    %55 = math.exp %54 : vector<8x128xf32>
    %cst_26 = arith.constant 1.000000e+00 : f32
    %56 = vector.broadcast %cst_26 : f32 to vector<8x128xf32>
    %57 = arith.addf %56, %55 : vector<8x128xf32>
    %58 = arith.divf %56, %57 : vector<8x128xf32>
    %59 = vector.extract_strided_slice %52 {offsets = [0, 128], sizes = [8, 128], strides = [1, 1]} : vector<8x512xf32> to vector<8x128xf32>
    %60 = arith.negf %59 : vector<8x128xf32>
    %61 = math.exp %60 : vector<8x128xf32>
    %cst_27 = arith.constant 1.000000e+00 : f32
    %62 = vector.broadcast %cst_27 : f32 to vector<8x128xf32>
    %63 = arith.addf %62, %61 : vector<8x128xf32>
    %64 = arith.divf %62, %63 : vector<8x128xf32>
    %65 = vector.extract_strided_slice %52 {offsets = [0, 256], sizes = [8, 128], strides = [1, 1]} : vector<8x512xf32> to vector<8x128xf32>
    %66 = math.tanh %65 : vector<8x128xf32>
    %67 = vector.extract_strided_slice %52 {offsets = [0, 384], sizes = [8, 128], strides = [1, 1]} : vector<8x512xf32> to vector<8x128xf32>
    %68 = arith.negf %67 : vector<8x128xf32>
    %69 = math.exp %68 : vector<8x128xf32>
    %cst_28 = arith.constant 1.000000e+00 : f32
    %70 = vector.broadcast %cst_28 : f32 to vector<8x128xf32>
    %71 = arith.addf %70, %69 : vector<8x128xf32>
    %72 = arith.divf %70, %71 : vector<8x128xf32>
    %73 = arith.mulf %64, %41 : vector<8x128xf32>
    %74 = arith.mulf %58, %66 : vector<8x128xf32>
    %75 = arith.addf %73, %74 : vector<8x128xf32>
    %76 = math.tanh %75 : vector<8x128xf32>
    %77 = arith.mulf %72, %76 : vector<8x128xf32>
    %78 = arith.index_cast %c1_i32 : i32 to index
    %c0_29 = arith.constant 0 : index
    %c0_30 = arith.constant 0 : index
    %79 = vector.load %arg5[%78, %c0_29, %c0_30] : memref<8x8x128xf32, #tpu.memory_space<vmem>>, vector<1x8x128xf32>
    %80 = vector.shape_cast %79 : vector<1x8x128xf32> to vector<8x128xf32>
    %81 = vector.shape_cast %77 : vector<8x128xf32> to vector<1x8x128xf32>
    tpu.vector_store %arg5[%78, %c0_29, %c0_30], %81 {strides = array<i32>} : memref<8x8x128xf32, #tpu.memory_space<vmem>>, vector<1x8x128xf32>,
    %c2_i32 = arith.constant 2 : i32
    %82 = arith.index_cast %c2_i32 : i32 to index
    %c0_31 = arith.constant 0 : index
    %c0_32 = arith.constant 0 : index
    %83 = vector.load %arg6[%82, %c0_31, %c0_32] : memref<8x8x512xf32, #tpu.memory_space<vmem>>, vector<1x8x512xf32>
    %84 = vector.shape_cast %83 : vector<1x8x512xf32> to vector<8x512xf32>
    %cst_33 = arith.constant dense<0.000000e+00> : vector<8x512xf32>
    %85 = tpu.matmul %77, %3, %cst_33 {dimension_numbers = #tpu.dot_dimension_numbers<[1], [0], [0], [1], [0, 0, 1, 1], [], []>} : vector<8x128xf32>, vector<128x512xf32>, vector<8x512xf32> -> vector<8x512xf32>
    %86 = arith.addf %84, %85 : vector<8x512xf32>
    %87 = vector.extract_strided_slice %86 {offsets = [0, 0], sizes = [8, 128], strides = [1, 1]} : vector<8x512xf32> to vector<8x128xf32>
    %88 = arith.negf %87 : vector<8x128xf32>
    %89 = math.exp %88 : vector<8x128xf32>
    %cst_34 = arith.constant 1.000000e+00 : f32
    %90 = vector.broadcast %cst_34 : f32 to vector<8x128xf32>
    %91 = arith.addf %90, %89 : vector<8x128xf32>
    %92 = arith.divf %90, %91 : vector<8x128xf32>
    %93 = vector.extract_strided_slice %86 {offsets = [0, 128], sizes = [8, 128], strides = [1, 1]} : vector<8x512xf32> to vector<8x128xf32>
    %94 = arith.negf %93 : vector<8x128xf32>
    %95 = math.exp %94 : vector<8x128xf32>
    %cst_35 = arith.constant 1.000000e+00 : f32
    %96 = vector.broadcast %cst_35 : f32 to vector<8x128xf32>
    %97 = arith.addf %96, %95 : vector<8x128xf32>
    %98 = arith.divf %96, %97 : vector<8x128xf32>
    %99 = vector.extract_strided_slice %86 {offsets = [0, 256], sizes = [8, 128], strides = [1, 1]} : vector<8x512xf32> to vector<8x128xf32>
    %100 = math.tanh %99 : vector<8x128xf32>
    %101 = vector.extract_strided_slice %86 {offsets = [0, 384], sizes = [8, 128], strides = [1, 1]} : vector<8x512xf32> to vector<8x128xf32>
    %102 = arith.negf %101 : vector<8x128xf32>
    %103 = math.exp %102 : vector<8x128xf32>
    %cst_36 = arith.constant 1.000000e+00 : f32
    %104 = vector.broadcast %cst_36 : f32 to vector<8x128xf32>
    %105 = arith.addf %104, %103 : vector<8x128xf32>
    %106 = arith.divf %104, %105 : vector<8x128xf32>
    %107 = arith.mulf %98, %75 : vector<8x128xf32>
    %108 = arith.mulf %92, %100 : vector<8x128xf32>
    %109 = arith.addf %107, %108 : vector<8x128xf32>
    %110 = math.tanh %109 : vector<8x128xf32>
    %111 = arith.mulf %106, %110 : vector<8x128xf32>
    %112 = arith.index_cast %c2_i32 : i32 to index
    %c0_37 = arith.constant 0 : index
    %c0_38 = arith.constant 0 : index
    %113 = vector.load %arg5[%112, %c0_37, %c0_38] : memref<8x8x128xf32, #tpu.memory_space<vmem>>, vector<1x8x128xf32>
    %114 = vector.shape_cast %113 : vector<1x8x128xf32> to vector<8x128xf32>
    %115 = vector.shape_cast %111 : vector<8x128xf32> to vector<1x8x128xf32>
    tpu.vector_store %arg5[%112, %c0_37, %c0_38], %115 {strides = array<i32>} : memref<8x8x128xf32, #tpu.memory_space<vmem>>, vector<1x8x128xf32>,
    %c3_i32 = arith.constant 3 : i32
    %116 = arith.index_cast %c3_i32 : i32 to index
    %c0_39 = arith.constant 0 : index
    %c0_40 = arith.constant 0 : index
    %117 = vector.load %arg6[%116, %c0_39, %c0_40] : memref<8x8x512xf32, #tpu.memory_space<vmem>>, vector<1x8x512xf32>
    %118 = vector.shape_cast %117 : vector<1x8x512xf32> to vector<8x512xf32>
    %cst_41 = arith.constant dense<0.000000e+00> : vector<8x512xf32>
    %119 = tpu.matmul %111, %3, %cst_41 {dimension_numbers = #tpu.dot_dimension_numbers<[1], [0], [0], [1], [0, 0, 1, 1], [], []>} : vector<8x128xf32>, vector<128x512xf32>, vector<8x512xf32> -> vector<8x512xf32>
    %120 = arith.addf %118, %119 : vector<8x512xf32>
    %121 = vector.extract_strided_slice %120 {offsets = [0, 0], sizes = [8, 128], strides = [1, 1]} : vector<8x512xf32> to vector<8x128xf32>
    %122 = arith.negf %121 : vector<8x128xf32>
    %123 = math.exp %122 : vector<8x128xf32>
    %cst_42 = arith.constant 1.000000e+00 : f32
    %124 = vector.broadcast %cst_42 : f32 to vector<8x128xf32>
    %125 = arith.addf %124, %123 : vector<8x128xf32>
    %126 = arith.divf %124, %125 : vector<8x128xf32>
    %127 = vector.extract_strided_slice %120 {offsets = [0, 128], sizes = [8, 128], strides = [1, 1]} : vector<8x512xf32> to vector<8x128xf32>
    %128 = arith.negf %127 : vector<8x128xf32>
    %129 = math.exp %128 : vector<8x128xf32>
    %cst_43 = arith.constant 1.000000e+00 : f32
    %130 = vector.broadcast %cst_43 : f32 to vector<8x128xf32>
    %131 = arith.addf %130, %129 : vector<8x128xf32>
    %132 = arith.divf %130, %131 : vector<8x128xf32>
    %133 = vector.extract_strided_slice %120 {offsets = [0, 256], sizes = [8, 128], strides = [1, 1]} : vector<8x512xf32> to vector<8x128xf32>
    %134 = math.tanh %133 : vector<8x128xf32>
    %135 = vector.extract_strided_slice %120 {offsets = [0, 384], sizes = [8, 128], strides = [1, 1]} : vector<8x512xf32> to vector<8x128xf32>
    %136 = arith.negf %135 : vector<8x128xf32>
    %137 = math.exp %136 : vector<8x128xf32>
    %cst_44 = arith.constant 1.000000e+00 : f32
    %138 = vector.broadcast %cst_44 : f32 to vector<8x128xf32>
    %139 = arith.addf %138, %137 : vector<8x128xf32>
    %140 = arith.divf %138, %139 : vector<8x128xf32>
    %141 = arith.mulf %132, %109 : vector<8x128xf32>
    %142 = arith.mulf %126, %134 : vector<8x128xf32>
    %143 = arith.addf %141, %142 : vector<8x128xf32>
    %144 = math.tanh %143 : vector<8x128xf32>
    %145 = arith.mulf %140, %144 : vector<8x128xf32>
    %146 = arith.index_cast %c3_i32 : i32 to index
    %c0_45 = arith.constant 0 : index
    %c0_46 = arith.constant 0 : index
    %147 = vector.load %arg5[%146, %c0_45, %c0_46] : memref<8x8x128xf32, #tpu.memory_space<vmem>>, vector<1x8x128xf32>
    %148 = vector.shape_cast %147 : vector<1x8x128xf32> to vector<8x128xf32>
    %149 = vector.shape_cast %145 : vector<8x128xf32> to vector<1x8x128xf32>
    tpu.vector_store %arg5[%146, %c0_45, %c0_46], %149 {strides = array<i32>} : memref<8x8x128xf32, #tpu.memory_space<vmem>>, vector<1x8x128xf32>,
    %c4_i32 = arith.constant 4 : i32
    %150 = arith.index_cast %c4_i32 : i32 to index
    %c0_47 = arith.constant 0 : index
    %c0_48 = arith.constant 0 : index
    %151 = vector.load %arg6[%150, %c0_47, %c0_48] : memref<8x8x512xf32, #tpu.memory_space<vmem>>, vector<1x8x512xf32>
    %152 = vector.shape_cast %151 : vector<1x8x512xf32> to vector<8x512xf32>
    %cst_49 = arith.constant dense<0.000000e+00> : vector<8x512xf32>
    %153 = tpu.matmul %145, %3, %cst_49 {dimension_numbers = #tpu.dot_dimension_numbers<[1], [0], [0], [1], [0, 0, 1, 1], [], []>} : vector<8x128xf32>, vector<128x512xf32>, vector<8x512xf32> -> vector<8x512xf32>
    %154 = arith.addf %152, %153 : vector<8x512xf32>
    %155 = vector.extract_strided_slice %154 {offsets = [0, 0], sizes = [8, 128], strides = [1, 1]} : vector<8x512xf32> to vector<8x128xf32>
    %156 = arith.negf %155 : vector<8x128xf32>
    %157 = math.exp %156 : vector<8x128xf32>
    %cst_50 = arith.constant 1.000000e+00 : f32
    %158 = vector.broadcast %cst_50 : f32 to vector<8x128xf32>
    %159 = arith.addf %158, %157 : vector<8x128xf32>
    %160 = arith.divf %158, %159 : vector<8x128xf32>
    %161 = vector.extract_strided_slice %154 {offsets = [0, 128], sizes = [8, 128], strides = [1, 1]} : vector<8x512xf32> to vector<8x128xf32>
    %162 = arith.negf %161 : vector<8x128xf32>
    %163 = math.exp %162 : vector<8x128xf32>
    %cst_51 = arith.constant 1.000000e+00 : f32
    %164 = vector.broadcast %cst_51 : f32 to vector<8x128xf32>
    %165 = arith.addf %164, %163 : vector<8x128xf32>
    %166 = arith.divf %164, %165 : vector<8x128xf32>
    %167 = vector.extract_strided_slice %154 {offsets = [0, 256], sizes = [8, 128], strides = [1, 1]} : vector<8x512xf32> to vector<8x128xf32>
    %168 = math.tanh %167 : vector<8x128xf32>
    %169 = vector.extract_strided_slice %154 {offsets = [0, 384], sizes = [8, 128], strides = [1, 1]} : vector<8x512xf32> to vector<8x128xf32>
    %170 = arith.negf %169 : vector<8x128xf32>
    %171 = math.exp %170 : vector<8x128xf32>
    %cst_52 = arith.constant 1.000000e+00 : f32
    %172 = vector.broadcast %cst_52 : f32 to vector<8x128xf32>
    %173 = arith.addf %172, %171 : vector<8x128xf32>
    %174 = arith.divf %172, %173 : vector<8x128xf32>
    %175 = arith.mulf %166, %143 : vector<8x128xf32>
    %176 = arith.mulf %160, %168 : vector<8x128xf32>
    %177 = arith.addf %175, %176 : vector<8x128xf32>
    %178 = math.tanh %177 : vector<8x128xf32>
    %179 = arith.mulf %174, %178 : vector<8x128xf32>
    %180 = arith.index_cast %c4_i32 : i32 to index
    %c0_53 = arith.constant 0 : index
    %c0_54 = arith.constant 0 : index
    %181 = vector.load %arg5[%180, %c0_53, %c0_54] : memref<8x8x128xf32, #tpu.memory_space<vmem>>, vector<1x8x128xf32>
    %182 = vector.shape_cast %181 : vector<1x8x128xf32> to vector<8x128xf32>
    %183 = vector.shape_cast %179 : vector<8x128xf32> to vector<1x8x128xf32>
    tpu.vector_store %arg5[%180, %c0_53, %c0_54], %183 {strides = array<i32>} : memref<8x8x128xf32, #tpu.memory_space<vmem>>, vector<1x8x128xf32>,
    %c5_i32 = arith.constant 5 : i32
    %184 = arith.index_cast %c5_i32 : i32 to index
    %c0_55 = arith.constant 0 : index
    %c0_56 = arith.constant 0 : index
    %185 = vector.load %arg6[%184, %c0_55, %c0_56] : memref<8x8x512xf32, #tpu.memory_space<vmem>>, vector<1x8x512xf32>
    %186 = vector.shape_cast %185 : vector<1x8x512xf32> to vector<8x512xf32>
    %cst_57 = arith.constant dense<0.000000e+00> : vector<8x512xf32>
    %187 = tpu.matmul %179, %3, %cst_57 {dimension_numbers = #tpu.dot_dimension_numbers<[1], [0], [0], [1], [0, 0, 1, 1], [], []>} : vector<8x128xf32>, vector<128x512xf32>, vector<8x512xf32> -> vector<8x512xf32>
    %188 = arith.addf %186, %187 : vector<8x512xf32>
    %189 = vector.extract_strided_slice %188 {offsets = [0, 0], sizes = [8, 128], strides = [1, 1]} : vector<8x512xf32> to vector<8x128xf32>
    %190 = arith.negf %189 : vector<8x128xf32>
    %191 = math.exp %190 : vector<8x128xf32>
    %cst_58 = arith.constant 1.000000e+00 : f32
    %192 = vector.broadcast %cst_58 : f32 to vector<8x128xf32>
    %193 = arith.addf %192, %191 : vector<8x128xf32>
    %194 = arith.divf %192, %193 : vector<8x128xf32>
    %195 = vector.extract_strided_slice %188 {offsets = [0, 128], sizes = [8, 128], strides = [1, 1]} : vector<8x512xf32> to vector<8x128xf32>
    %196 = arith.negf %195 : vector<8x128xf32>
    %197 = math.exp %196 : vector<8x128xf32>
    %cst_59 = arith.constant 1.000000e+00 : f32
    %198 = vector.broadcast %cst_59 : f32 to vector<8x128xf32>
    %199 = arith.addf %198, %197 : vector<8x128xf32>
    %200 = arith.divf %198, %199 : vector<8x128xf32>
    %201 = vector.extract_strided_slice %188 {offsets = [0, 256], sizes = [8, 128], strides = [1, 1]} : vector<8x512xf32> to vector<8x128xf32>
    %202 = math.tanh %201 : vector<8x128xf32>
    %203 = vector.extract_strided_slice %188 {offsets = [0, 384], sizes = [8, 128], strides = [1, 1]} : vector<8x512xf32> to vector<8x128xf32>
    %204 = arith.negf %203 : vector<8x128xf32>
    %205 = math.exp %204 : vector<8x128xf32>
    %cst_60 = arith.constant 1.000000e+00 : f32
    %206 = vector.broadcast %cst_60 : f32 to vector<8x128xf32>
    %207 = arith.addf %206, %205 : vector<8x128xf32>
    %208 = arith.divf %206, %207 : vector<8x128xf32>
    %209 = arith.mulf %200, %177 : vector<8x128xf32>
    %210 = arith.mulf %194, %202 : vector<8x128xf32>
    %211 = arith.addf %209, %210 : vector<8x128xf32>
    %212 = math.tanh %211 : vector<8x128xf32>
    %213 = arith.mulf %208, %212 : vector<8x128xf32>
    %214 = arith.index_cast %c5_i32 : i32 to index
    %c0_61 = arith.constant 0 : index
    %c0_62 = arith.constant 0 : index
    %215 = vector.load %arg5[%214, %c0_61, %c0_62] : memref<8x8x128xf32, #tpu.memory_space<vmem>>, vector<1x8x128xf32>
    %216 = vector.shape_cast %215 : vector<1x8x128xf32> to vector<8x128xf32>
    %217 = vector.shape_cast %213 : vector<8x128xf32> to vector<1x8x128xf32>
    tpu.vector_store %arg5[%214, %c0_61, %c0_62], %217 {strides = array<i32>} : memref<8x8x128xf32, #tpu.memory_space<vmem>>, vector<1x8x128xf32>,
    %c6_i32 = arith.constant 6 : i32
    %218 = arith.index_cast %c6_i32 : i32 to index
    %c0_63 = arith.constant 0 : index
    %c0_64 = arith.constant 0 : index
    %219 = vector.load %arg6[%218, %c0_63, %c0_64] : memref<8x8x512xf32, #tpu.memory_space<vmem>>, vector<1x8x512xf32>
    %220 = vector.shape_cast %219 : vector<1x8x512xf32> to vector<8x512xf32>
    %cst_65 = arith.constant dense<0.000000e+00> : vector<8x512xf32>
    %221 = tpu.matmul %213, %3, %cst_65 {dimension_numbers = #tpu.dot_dimension_numbers<[1], [0], [0], [1], [0, 0, 1, 1], [], []>} : vector<8x128xf32>, vector<128x512xf32>, vector<8x512xf32> -> vector<8x512xf32>
    %222 = arith.addf %220, %221 : vector<8x512xf32>
    %223 = vector.extract_strided_slice %222 {offsets = [0, 0], sizes = [8, 128], strides = [1, 1]} : vector<8x512xf32> to vector<8x128xf32>
    %224 = arith.negf %223 : vector<8x128xf32>
    %225 = math.exp %224 : vector<8x128xf32>
    %cst_66 = arith.constant 1.000000e+00 : f32
    %226 = vector.broadcast %cst_66 : f32 to vector<8x128xf32>
    %227 = arith.addf %226, %225 : vector<8x128xf32>
    %228 = arith.divf %226, %227 : vector<8x128xf32>
    %229 = vector.extract_strided_slice %222 {offsets = [0, 128], sizes = [8, 128], strides = [1, 1]} : vector<8x512xf32> to vector<8x128xf32>
    %230 = arith.negf %229 : vector<8x128xf32>
    %231 = math.exp %230 : vector<8x128xf32>
    %cst_67 = arith.constant 1.000000e+00 : f32
    %232 = vector.broadcast %cst_67 : f32 to vector<8x128xf32>
    %233 = arith.addf %232, %231 : vector<8x128xf32>
    %234 = arith.divf %232, %233 : vector<8x128xf32>
    %235 = vector.extract_strided_slice %222 {offsets = [0, 256], sizes = [8, 128], strides = [1, 1]} : vector<8x512xf32> to vector<8x128xf32>
    %236 = math.tanh %235 : vector<8x128xf32>
    %237 = vector.extract_strided_slice %222 {offsets = [0, 384], sizes = [8, 128], strides = [1, 1]} : vector<8x512xf32> to vector<8x128xf32>
    %238 = arith.negf %237 : vector<8x128xf32>
    %239 = math.exp %238 : vector<8x128xf32>
    %cst_68 = arith.constant 1.000000e+00 : f32
    %240 = vector.broadcast %cst_68 : f32 to vector<8x128xf32>
    %241 = arith.addf %240, %239 : vector<8x128xf32>
    %242 = arith.divf %240, %241 : vector<8x128xf32>
    %243 = arith.mulf %234, %211 : vector<8x128xf32>
    %244 = arith.mulf %228, %236 : vector<8x128xf32>
    %245 = arith.addf %243, %244 : vector<8x128xf32>
    %246 = math.tanh %245 : vector<8x128xf32>
    %247 = arith.mulf %242, %246 : vector<8x128xf32>
    %248 = arith.index_cast %c6_i32 : i32 to index
    %c0_69 = arith.constant 0 : index
    %c0_70 = arith.constant 0 : index
    %249 = vector.load %arg5[%248, %c0_69, %c0_70] : memref<8x8x128xf32, #tpu.memory_space<vmem>>, vector<1x8x128xf32>
    %250 = vector.shape_cast %249 : vector<1x8x128xf32> to vector<8x128xf32>
    %251 = vector.shape_cast %247 : vector<8x128xf32> to vector<1x8x128xf32>
    tpu.vector_store %arg5[%248, %c0_69, %c0_70], %251 {strides = array<i32>} : memref<8x8x128xf32, #tpu.memory_space<vmem>>, vector<1x8x128xf32>,
    %c7_i32 = arith.constant 7 : i32
    %252 = arith.index_cast %c7_i32 : i32 to index
    %c0_71 = arith.constant 0 : index
    %c0_72 = arith.constant 0 : index
    %253 = vector.load %arg6[%252, %c0_71, %c0_72] : memref<8x8x512xf32, #tpu.memory_space<vmem>>, vector<1x8x512xf32>
    %254 = vector.shape_cast %253 : vector<1x8x512xf32> to vector<8x512xf32>
    %cst_73 = arith.constant dense<0.000000e+00> : vector<8x512xf32>
    %255 = tpu.matmul %247, %3, %cst_73 {dimension_numbers = #tpu.dot_dimension_numbers<[1], [0], [0], [1], [0, 0, 1, 1], [], []>} : vector<8x128xf32>, vector<128x512xf32>, vector<8x512xf32> -> vector<8x512xf32>
    %256 = arith.addf %254, %255 : vector<8x512xf32>
    %257 = vector.extract_strided_slice %256 {offsets = [0, 0], sizes = [8, 128], strides = [1, 1]} : vector<8x512xf32> to vector<8x128xf32>
    %258 = arith.negf %257 : vector<8x128xf32>
    %259 = math.exp %258 : vector<8x128xf32>
    %cst_74 = arith.constant 1.000000e+00 : f32
    %260 = vector.broadcast %cst_74 : f32 to vector<8x128xf32>
    %261 = arith.addf %260, %259 : vector<8x128xf32>
    %262 = arith.divf %260, %261 : vector<8x128xf32>
    %263 = vector.extract_strided_slice %256 {offsets = [0, 128], sizes = [8, 128], strides = [1, 1]} : vector<8x512xf32> to vector<8x128xf32>
    %264 = arith.negf %263 : vector<8x128xf32>
    %265 = math.exp %264 : vector<8x128xf32>
    %cst_75 = arith.constant 1.000000e+00 : f32
    %266 = vector.broadcast %cst_75 : f32 to vector<8x128xf32>
    %267 = arith.addf %266, %265 : vector<8x128xf32>
    %268 = arith.divf %266, %267 : vector<8x128xf32>
    %269 = vector.extract_strided_slice %256 {offsets = [0, 256], sizes = [8, 128], strides = [1, 1]} : vector<8x512xf32> to vector<8x128xf32>
    %270 = math.tanh %269 : vector<8x128xf32>
    %271 = vector.extract_strided_slice %256 {offsets = [0, 384], sizes = [8, 128], strides = [1, 1]} : vector<8x512xf32> to vector<8x128xf32>
    %272 = arith.negf %271 : vector<8x128xf32>
    %273 = math.exp %272 : vector<8x128xf32>
    %cst_76 = arith.constant 1.000000e+00 : f32
    %274 = vector.broadcast %cst_76 : f32 to vector<8x128xf32>
    %275 = arith.addf %274, %273 : vector<8x128xf32>
    %276 = arith.divf %274, %275 : vector<8x128xf32>
    %277 = arith.mulf %268, %245 : vector<8x128xf32>
    %278 = arith.mulf %262, %270 : vector<8x128xf32>
    %279 = arith.addf %277, %278 : vector<8x128xf32>
    %280 = math.tanh %279 : vector<8x128xf32>
    %281 = arith.mulf %276, %280 : vector<8x128xf32>
    %282 = arith.index_cast %c7_i32 : i32 to index
    %c0_77 = arith.constant 0 : index
    %c0_78 = arith.constant 0 : index
    %283 = vector.load %arg5[%282, %c0_77, %c0_78] : memref<8x8x128xf32, #tpu.memory_space<vmem>>, vector<1x8x128xf32>
    %284 = vector.shape_cast %283 : vector<1x8x128xf32> to vector<8x128xf32>
    %285 = vector.shape_cast %281 : vector<8x128xf32> to vector<1x8x128xf32>
    tpu.vector_store %arg5[%282, %c0_77, %c0_78], %285 {strides = array<i32>} : memref<8x8x128xf32, #tpu.memory_space<vmem>>, vector<1x8x128xf32>,
    %c8_i32 = arith.constant 8 : i32
    %c1 = arith.constant 1 : index
    %c0_79 = arith.constant 0 : index
    %c0_80 = arith.constant 0 : index
    %286 = vector.load %arg1[%c1, %c0_79, %c0_80] : memref<2x128x512xf32, #tpu.memory_space<vmem>>, vector<1x128x512xf32>
    %287 = vector.shape_cast %286 : vector<1x128x512xf32> to vector<128x512xf32>
    %c1_81 = arith.constant 1 : index
    %c0_82 = arith.constant 0 : index
    %c0_83 = arith.constant 0 : index
    %288 = vector.load %arg2[%c1_81, %c0_82, %c0_83] : memref<2x128x512xf32, #tpu.memory_space<vmem>>, vector<1x128x512xf32>
    %289 = vector.shape_cast %288 : vector<1x128x512xf32> to vector<128x512xf32>
    %c1_84 = arith.constant 1 : index
    %c0_85 = arith.constant 0 : index
    %c0_86 = arith.constant 0 : index
    %290 = vector.load %arg3[%c1_84, %c0_85, %c0_86] : memref<2x1x512xf32, #tpu.memory_space<vmem>>, vector<1x1x512xf32>
    %291 = vector.shape_cast %290 : vector<1x1x512xf32> to vector<1x512xf32>
    %c0_87 = arith.constant 0 : index
    %c0_88 = arith.constant 0 : index
    %c0_89 = arith.constant 0 : index
    %292 = vector.load %arg5[%c0_87, %c0_88, %c0_89] : memref<8x8x128xf32, #tpu.memory_space<vmem>>, vector<8x8x128xf32>
    %293 = vector.shape_cast %292 : vector<8x8x128xf32> to vector<64x128xf32>
    %cst_90 = arith.constant dense<0.000000e+00> : vector<64x512xf32>
    %294 = tpu.matmul %293, %287, %cst_90 {dimension_numbers = #tpu.dot_dimension_numbers<[1], [0], [0], [1], [0, 0, 1, 1], [], []>} : vector<64x128xf32>, vector<128x512xf32>, vector<64x512xf32> -> vector<64x512xf32>
    %295 = vector.broadcast %291 : vector<1x512xf32> to vector<64x512xf32>
    %296 = arith.addf %294, %295 : vector<64x512xf32>
    %297 = vector.shape_cast %296 : vector<64x512xf32> to vector<8x8x512xf32>
    %c0_91 = arith.constant 0 : index
    %c0_92 = arith.constant 0 : index
    %c0_93 = arith.constant 0 : index
    %298 = vector.load %arg6[%c0_91, %c0_92, %c0_93] : memref<8x8x512xf32, #tpu.memory_space<vmem>>, vector<8x8x512xf32>
    tpu.vector_store %arg6[%c0_91, %c0_92, %c0_93], %297 {strides = array<i32>} : memref<8x8x512xf32, #tpu.memory_space<vmem>>, vector<8x8x512xf32>,
    %cst_94 = arith.constant 0.000000e+00 : f32
    %299 = vector.broadcast %cst_94 : f32 to vector<8x128xf32>
    %c0_i32_95 = arith.constant 0 : i32
    %300 = arith.index_cast %c0_i32_95 : i32 to index
    %c0_96 = arith.constant 0 : index
    %c0_97 = arith.constant 0 : index
    %301 = vector.load %arg6[%300, %c0_96, %c0_97] : memref<8x8x512xf32, #tpu.memory_space<vmem>>, vector<1x8x512xf32>
    %302 = vector.shape_cast %301 : vector<1x8x512xf32> to vector<8x512xf32>
    %cst_98 = arith.constant dense<0.000000e+00> : vector<8x512xf32>
    %303 = tpu.matmul %299, %289, %cst_98 {dimension_numbers = #tpu.dot_dimension_numbers<[1], [0], [0], [1], [0, 0, 1, 1], [], []>} : vector<8x128xf32>, vector<128x512xf32>, vector<8x512xf32> -> vector<8x512xf32>
    %304 = arith.addf %302, %303 : vector<8x512xf32>
    %305 = vector.extract_strided_slice %304 {offsets = [0, 0], sizes = [8, 128], strides = [1, 1]} : vector<8x512xf32> to vector<8x128xf32>
    %306 = arith.negf %305 : vector<8x128xf32>
    %307 = math.exp %306 : vector<8x128xf32>
    %cst_99 = arith.constant 1.000000e+00 : f32
    %308 = vector.broadcast %cst_99 : f32 to vector<8x128xf32>
    %309 = arith.addf %308, %307 : vector<8x128xf32>
    %310 = arith.divf %308, %309 : vector<8x128xf32>
    %311 = vector.extract_strided_slice %304 {offsets = [0, 128], sizes = [8, 128], strides = [1, 1]} : vector<8x512xf32> to vector<8x128xf32>
    %312 = arith.negf %311 : vector<8x128xf32>
    %313 = math.exp %312 : vector<8x128xf32>
    %cst_100 = arith.constant 1.000000e+00 : f32
    %314 = vector.broadcast %cst_100 : f32 to vector<8x128xf32>
    %315 = arith.addf %314, %313 : vector<8x128xf32>
    %316 = arith.divf %314, %315 : vector<8x128xf32>
    %317 = vector.extract_strided_slice %304 {offsets = [0, 256], sizes = [8, 128], strides = [1, 1]} : vector<8x512xf32> to vector<8x128xf32>
    %318 = math.tanh %317 : vector<8x128xf32>
    %319 = vector.extract_strided_slice %304 {offsets = [0, 384], sizes = [8, 128], strides = [1, 1]} : vector<8x512xf32> to vector<8x128xf32>
    %320 = arith.negf %319 : vector<8x128xf32>
    %321 = math.exp %320 : vector<8x128xf32>
    %cst_101 = arith.constant 1.000000e+00 : f32
    %322 = vector.broadcast %cst_101 : f32 to vector<8x128xf32>
    %323 = arith.addf %322, %321 : vector<8x128xf32>
    %324 = arith.divf %322, %323 : vector<8x128xf32>
    %325 = arith.mulf %316, %299 : vector<8x128xf32>
    %326 = arith.mulf %310, %318 : vector<8x128xf32>
    %327 = arith.addf %325, %326 : vector<8x128xf32>
    %328 = math.tanh %327 : vector<8x128xf32>
    %329 = arith.mulf %324, %328 : vector<8x128xf32>
    %330 = arith.index_cast %c0_i32_95 : i32 to index
    %c0_102 = arith.constant 0 : index
    %c0_103 = arith.constant 0 : index
    %331 = vector.load %arg4[%330, %c0_102, %c0_103] : memref<8x8x128xf32, #tpu.memory_space<vmem>>, vector<1x8x128xf32>
    %332 = vector.shape_cast %331 : vector<1x8x128xf32> to vector<8x128xf32>
    %333 = vector.shape_cast %329 : vector<8x128xf32> to vector<1x8x128xf32>
    tpu.vector_store %arg4[%330, %c0_102, %c0_103], %333 {strides = array<i32>} : memref<8x8x128xf32, #tpu.memory_space<vmem>>, vector<1x8x128xf32>,
    %c1_i32_104 = arith.constant 1 : i32
    %334 = arith.index_cast %c1_i32_104 : i32 to index
    %c0_105 = arith.constant 0 : index
    %c0_106 = arith.constant 0 : index
    %335 = vector.load %arg6[%334, %c0_105, %c0_106] : memref<8x8x512xf32, #tpu.memory_space<vmem>>, vector<1x8x512xf32>
    %336 = vector.shape_cast %335 : vector<1x8x512xf32> to vector<8x512xf32>
    %cst_107 = arith.constant dense<0.000000e+00> : vector<8x512xf32>
    %337 = tpu.matmul %329, %289, %cst_107 {dimension_numbers = #tpu.dot_dimension_numbers<[1], [0], [0], [1], [0, 0, 1, 1], [], []>} : vector<8x128xf32>, vector<128x512xf32>, vector<8x512xf32> -> vector<8x512xf32>
    %338 = arith.addf %336, %337 : vector<8x512xf32>
    %339 = vector.extract_strided_slice %338 {offsets = [0, 0], sizes = [8, 128], strides = [1, 1]} : vector<8x512xf32> to vector<8x128xf32>
    %340 = arith.negf %339 : vector<8x128xf32>
    %341 = math.exp %340 : vector<8x128xf32>
    %cst_108 = arith.constant 1.000000e+00 : f32
    %342 = vector.broadcast %cst_108 : f32 to vector<8x128xf32>
    %343 = arith.addf %342, %341 : vector<8x128xf32>
    %344 = arith.divf %342, %343 : vector<8x128xf32>
    %345 = vector.extract_strided_slice %338 {offsets = [0, 128], sizes = [8, 128], strides = [1, 1]} : vector<8x512xf32> to vector<8x128xf32>
    %346 = arith.negf %345 : vector<8x128xf32>
    %347 = math.exp %346 : vector<8x128xf32>
    %cst_109 = arith.constant 1.000000e+00 : f32
    %348 = vector.broadcast %cst_109 : f32 to vector<8x128xf32>
    %349 = arith.addf %348, %347 : vector<8x128xf32>
    %350 = arith.divf %348, %349 : vector<8x128xf32>
    %351 = vector.extract_strided_slice %338 {offsets = [0, 256], sizes = [8, 128], strides = [1, 1]} : vector<8x512xf32> to vector<8x128xf32>
    %352 = math.tanh %351 : vector<8x128xf32>
    %353 = vector.extract_strided_slice %338 {offsets = [0, 384], sizes = [8, 128], strides = [1, 1]} : vector<8x512xf32> to vector<8x128xf32>
    %354 = arith.negf %353 : vector<8x128xf32>
    %355 = math.exp %354 : vector<8x128xf32>
    %cst_110 = arith.constant 1.000000e+00 : f32
    %356 = vector.broadcast %cst_110 : f32 to vector<8x128xf32>
    %357 = arith.addf %356, %355 : vector<8x128xf32>
    %358 = arith.divf %356, %357 : vector<8x128xf32>
    %359 = arith.mulf %350, %327 : vector<8x128xf32>
    %360 = arith.mulf %344, %352 : vector<8x128xf32>
    %361 = arith.addf %359, %360 : vector<8x128xf32>
    %362 = math.tanh %361 : vector<8x128xf32>
    %363 = arith.mulf %358, %362 : vector<8x128xf32>
    %364 = arith.index_cast %c1_i32_104 : i32 to index
    %c0_111 = arith.constant 0 : index
    %c0_112 = arith.constant 0 : index
    %365 = vector.load %arg4[%364, %c0_111, %c0_112] : memref<8x8x128xf32, #tpu.memory_space<vmem>>, vector<1x8x128xf32>
    %366 = vector.shape_cast %365 : vector<1x8x128xf32> to vector<8x128xf32>
    %367 = vector.shape_cast %363 : vector<8x128xf32> to vector<1x8x128xf32>
    tpu.vector_store %arg4[%364, %c0_111, %c0_112], %367 {strides = array<i32>} : memref<8x8x128xf32, #tpu.memory_space<vmem>>, vector<1x8x128xf32>,
    %c2_i32_113 = arith.constant 2 : i32
    %368 = arith.index_cast %c2_i32_113 : i32 to index
    %c0_114 = arith.constant 0 : index
    %c0_115 = arith.constant 0 : index
    %369 = vector.load %arg6[%368, %c0_114, %c0_115] : memref<8x8x512xf32, #tpu.memory_space<vmem>>, vector<1x8x512xf32>
    %370 = vector.shape_cast %369 : vector<1x8x512xf32> to vector<8x512xf32>
    %cst_116 = arith.constant dense<0.000000e+00> : vector<8x512xf32>
    %371 = tpu.matmul %363, %289, %cst_116 {dimension_numbers = #tpu.dot_dimension_numbers<[1], [0], [0], [1], [0, 0, 1, 1], [], []>} : vector<8x128xf32>, vector<128x512xf32>, vector<8x512xf32> -> vector<8x512xf32>
    %372 = arith.addf %370, %371 : vector<8x512xf32>
    %373 = vector.extract_strided_slice %372 {offsets = [0, 0], sizes = [8, 128], strides = [1, 1]} : vector<8x512xf32> to vector<8x128xf32>
    %374 = arith.negf %373 : vector<8x128xf32>
    %375 = math.exp %374 : vector<8x128xf32>
    %cst_117 = arith.constant 1.000000e+00 : f32
    %376 = vector.broadcast %cst_117 : f32 to vector<8x128xf32>
    %377 = arith.addf %376, %375 : vector<8x128xf32>
    %378 = arith.divf %376, %377 : vector<8x128xf32>
    %379 = vector.extract_strided_slice %372 {offsets = [0, 128], sizes = [8, 128], strides = [1, 1]} : vector<8x512xf32> to vector<8x128xf32>
    %380 = arith.negf %379 : vector<8x128xf32>
    %381 = math.exp %380 : vector<8x128xf32>
    %cst_118 = arith.constant 1.000000e+00 : f32
    %382 = vector.broadcast %cst_118 : f32 to vector<8x128xf32>
    %383 = arith.addf %382, %381 : vector<8x128xf32>
    %384 = arith.divf %382, %383 : vector<8x128xf32>
    %385 = vector.extract_strided_slice %372 {offsets = [0, 256], sizes = [8, 128], strides = [1, 1]} : vector<8x512xf32> to vector<8x128xf32>
    %386 = math.tanh %385 : vector<8x128xf32>
    %387 = vector.extract_strided_slice %372 {offsets = [0, 384], sizes = [8, 128], strides = [1, 1]} : vector<8x512xf32> to vector<8x128xf32>
    %388 = arith.negf %387 : vector<8x128xf32>
    %389 = math.exp %388 : vector<8x128xf32>
    %cst_119 = arith.constant 1.000000e+00 : f32
    %390 = vector.broadcast %cst_119 : f32 to vector<8x128xf32>
    %391 = arith.addf %390, %389 : vector<8x128xf32>
    %392 = arith.divf %390, %391 : vector<8x128xf32>
    %393 = arith.mulf %384, %361 : vector<8x128xf32>
    %394 = arith.mulf %378, %386 : vector<8x128xf32>
    %395 = arith.addf %393, %394 : vector<8x128xf32>
    %396 = math.tanh %395 : vector<8x128xf32>
    %397 = arith.mulf %392, %396 : vector<8x128xf32>
    %398 = arith.index_cast %c2_i32_113 : i32 to index
    %c0_120 = arith.constant 0 : index
    %c0_121 = arith.constant 0 : index
    %399 = vector.load %arg4[%398, %c0_120, %c0_121] : memref<8x8x128xf32, #tpu.memory_space<vmem>>, vector<1x8x128xf32>
    %400 = vector.shape_cast %399 : vector<1x8x128xf32> to vector<8x128xf32>
    %401 = vector.shape_cast %397 : vector<8x128xf32> to vector<1x8x128xf32>
    tpu.vector_store %arg4[%398, %c0_120, %c0_121], %401 {strides = array<i32>} : memref<8x8x128xf32, #tpu.memory_space<vmem>>, vector<1x8x128xf32>,
    %c3_i32_122 = arith.constant 3 : i32
    %402 = arith.index_cast %c3_i32_122 : i32 to index
    %c0_123 = arith.constant 0 : index
    %c0_124 = arith.constant 0 : index
    %403 = vector.load %arg6[%402, %c0_123, %c0_124] : memref<8x8x512xf32, #tpu.memory_space<vmem>>, vector<1x8x512xf32>
    %404 = vector.shape_cast %403 : vector<1x8x512xf32> to vector<8x512xf32>
    %cst_125 = arith.constant dense<0.000000e+00> : vector<8x512xf32>
    %405 = tpu.matmul %397, %289, %cst_125 {dimension_numbers = #tpu.dot_dimension_numbers<[1], [0], [0], [1], [0, 0, 1, 1], [], []>} : vector<8x128xf32>, vector<128x512xf32>, vector<8x512xf32> -> vector<8x512xf32>
    %406 = arith.addf %404, %405 : vector<8x512xf32>
    %407 = vector.extract_strided_slice %406 {offsets = [0, 0], sizes = [8, 128], strides = [1, 1]} : vector<8x512xf32> to vector<8x128xf32>
    %408 = arith.negf %407 : vector<8x128xf32>
    %409 = math.exp %408 : vector<8x128xf32>
    %cst_126 = arith.constant 1.000000e+00 : f32
    %410 = vector.broadcast %cst_126 : f32 to vector<8x128xf32>
    %411 = arith.addf %410, %409 : vector<8x128xf32>
    %412 = arith.divf %410, %411 : vector<8x128xf32>
    %413 = vector.extract_strided_slice %406 {offsets = [0, 128], sizes = [8, 128], strides = [1, 1]} : vector<8x512xf32> to vector<8x128xf32>
    %414 = arith.negf %413 : vector<8x128xf32>
    %415 = math.exp %414 : vector<8x128xf32>
    %cst_127 = arith.constant 1.000000e+00 : f32
    %416 = vector.broadcast %cst_127 : f32 to vector<8x128xf32>
    %417 = arith.addf %416, %415 : vector<8x128xf32>
    %418 = arith.divf %416, %417 : vector<8x128xf32>
    %419 = vector.extract_strided_slice %406 {offsets = [0, 256], sizes = [8, 128], strides = [1, 1]} : vector<8x512xf32> to vector<8x128xf32>
    %420 = math.tanh %419 : vector<8x128xf32>
    %421 = vector.extract_strided_slice %406 {offsets = [0, 384], sizes = [8, 128], strides = [1, 1]} : vector<8x512xf32> to vector<8x128xf32>
    %422 = arith.negf %421 : vector<8x128xf32>
    %423 = math.exp %422 : vector<8x128xf32>
    %cst_128 = arith.constant 1.000000e+00 : f32
    %424 = vector.broadcast %cst_128 : f32 to vector<8x128xf32>
    %425 = arith.addf %424, %423 : vector<8x128xf32>
    %426 = arith.divf %424, %425 : vector<8x128xf32>
    %427 = arith.mulf %418, %395 : vector<8x128xf32>
    %428 = arith.mulf %412, %420 : vector<8x128xf32>
    %429 = arith.addf %427, %428 : vector<8x128xf32>
    %430 = math.tanh %429 : vector<8x128xf32>
    %431 = arith.mulf %426, %430 : vector<8x128xf32>
    %432 = arith.index_cast %c3_i32_122 : i32 to index
    %c0_129 = arith.constant 0 : index
    %c0_130 = arith.constant 0 : index
    %433 = vector.load %arg4[%432, %c0_129, %c0_130] : memref<8x8x128xf32, #tpu.memory_space<vmem>>, vector<1x8x128xf32>
    %434 = vector.shape_cast %433 : vector<1x8x128xf32> to vector<8x128xf32>
    %435 = vector.shape_cast %431 : vector<8x128xf32> to vector<1x8x128xf32>
    tpu.vector_store %arg4[%432, %c0_129, %c0_130], %435 {strides = array<i32>} : memref<8x8x128xf32, #tpu.memory_space<vmem>>, vector<1x8x128xf32>,
    %c4_i32_131 = arith.constant 4 : i32
    %436 = arith.index_cast %c4_i32_131 : i32 to index
    %c0_132 = arith.constant 0 : index
    %c0_133 = arith.constant 0 : index
    %437 = vector.load %arg6[%436, %c0_132, %c0_133] : memref<8x8x512xf32, #tpu.memory_space<vmem>>, vector<1x8x512xf32>
    %438 = vector.shape_cast %437 : vector<1x8x512xf32> to vector<8x512xf32>
    %cst_134 = arith.constant dense<0.000000e+00> : vector<8x512xf32>
    %439 = tpu.matmul %431, %289, %cst_134 {dimension_numbers = #tpu.dot_dimension_numbers<[1], [0], [0], [1], [0, 0, 1, 1], [], []>} : vector<8x128xf32>, vector<128x512xf32>, vector<8x512xf32> -> vector<8x512xf32>
    %440 = arith.addf %438, %439 : vector<8x512xf32>
    %441 = vector.extract_strided_slice %440 {offsets = [0, 0], sizes = [8, 128], strides = [1, 1]} : vector<8x512xf32> to vector<8x128xf32>
    %442 = arith.negf %441 : vector<8x128xf32>
    %443 = math.exp %442 : vector<8x128xf32>
    %cst_135 = arith.constant 1.000000e+00 : f32
    %444 = vector.broadcast %cst_135 : f32 to vector<8x128xf32>
    %445 = arith.addf %444, %443 : vector<8x128xf32>
    %446 = arith.divf %444, %445 : vector<8x128xf32>
    %447 = vector.extract_strided_slice %440 {offsets = [0, 128], sizes = [8, 128], strides = [1, 1]} : vector<8x512xf32> to vector<8x128xf32>
    %448 = arith.negf %447 : vector<8x128xf32>
    %449 = math.exp %448 : vector<8x128xf32>
    %cst_136 = arith.constant 1.000000e+00 : f32
    %450 = vector.broadcast %cst_136 : f32 to vector<8x128xf32>
    %451 = arith.addf %450, %449 : vector<8x128xf32>
    %452 = arith.divf %450, %451 : vector<8x128xf32>
    %453 = vector.extract_strided_slice %440 {offsets = [0, 256], sizes = [8, 128], strides = [1, 1]} : vector<8x512xf32> to vector<8x128xf32>
    %454 = math.tanh %453 : vector<8x128xf32>
    %455 = vector.extract_strided_slice %440 {offsets = [0, 384], sizes = [8, 128], strides = [1, 1]} : vector<8x512xf32> to vector<8x128xf32>
    %456 = arith.negf %455 : vector<8x128xf32>
    %457 = math.exp %456 : vector<8x128xf32>
    %cst_137 = arith.constant 1.000000e+00 : f32
    %458 = vector.broadcast %cst_137 : f32 to vector<8x128xf32>
    %459 = arith.addf %458, %457 : vector<8x128xf32>
    %460 = arith.divf %458, %459 : vector<8x128xf32>
    %461 = arith.mulf %452, %429 : vector<8x128xf32>
    %462 = arith.mulf %446, %454 : vector<8x128xf32>
    %463 = arith.addf %461, %462 : vector<8x128xf32>
    %464 = math.tanh %463 : vector<8x128xf32>
    %465 = arith.mulf %460, %464 : vector<8x128xf32>
    %466 = arith.index_cast %c4_i32_131 : i32 to index
    %c0_138 = arith.constant 0 : index
    %c0_139 = arith.constant 0 : index
    %467 = vector.load %arg4[%466, %c0_138, %c0_139] : memref<8x8x128xf32, #tpu.memory_space<vmem>>, vector<1x8x128xf32>
    %468 = vector.shape_cast %467 : vector<1x8x128xf32> to vector<8x128xf32>
    %469 = vector.shape_cast %465 : vector<8x128xf32> to vector<1x8x128xf32>
    tpu.vector_store %arg4[%466, %c0_138, %c0_139], %469 {strides = array<i32>} : memref<8x8x128xf32, #tpu.memory_space<vmem>>, vector<1x8x128xf32>,
    %c5_i32_140 = arith.constant 5 : i32
    %470 = arith.index_cast %c5_i32_140 : i32 to index
    %c0_141 = arith.constant 0 : index
    %c0_142 = arith.constant 0 : index
    %471 = vector.load %arg6[%470, %c0_141, %c0_142] : memref<8x8x512xf32, #tpu.memory_space<vmem>>, vector<1x8x512xf32>
    %472 = vector.shape_cast %471 : vector<1x8x512xf32> to vector<8x512xf32>
    %cst_143 = arith.constant dense<0.000000e+00> : vector<8x512xf32>
    %473 = tpu.matmul %465, %289, %cst_143 {dimension_numbers = #tpu.dot_dimension_numbers<[1], [0], [0], [1], [0, 0, 1, 1], [], []>} : vector<8x128xf32>, vector<128x512xf32>, vector<8x512xf32> -> vector<8x512xf32>
    %474 = arith.addf %472, %473 : vector<8x512xf32>
    %475 = vector.extract_strided_slice %474 {offsets = [0, 0], sizes = [8, 128], strides = [1, 1]} : vector<8x512xf32> to vector<8x128xf32>
    %476 = arith.negf %475 : vector<8x128xf32>
    %477 = math.exp %476 : vector<8x128xf32>
    %cst_144 = arith.constant 1.000000e+00 : f32
    %478 = vector.broadcast %cst_144 : f32 to vector<8x128xf32>
    %479 = arith.addf %478, %477 : vector<8x128xf32>
    %480 = arith.divf %478, %479 : vector<8x128xf32>
    %481 = vector.extract_strided_slice %474 {offsets = [0, 128], sizes = [8, 128], strides = [1, 1]} : vector<8x512xf32> to vector<8x128xf32>
    %482 = arith.negf %481 : vector<8x128xf32>
    %483 = math.exp %482 : vector<8x128xf32>
    %cst_145 = arith.constant 1.000000e+00 : f32
    %484 = vector.broadcast %cst_145 : f32 to vector<8x128xf32>
    %485 = arith.addf %484, %483 : vector<8x128xf32>
    %486 = arith.divf %484, %485 : vector<8x128xf32>
    %487 = vector.extract_strided_slice %474 {offsets = [0, 256], sizes = [8, 128], strides = [1, 1]} : vector<8x512xf32> to vector<8x128xf32>
    %488 = math.tanh %487 : vector<8x128xf32>
    %489 = vector.extract_strided_slice %474 {offsets = [0, 384], sizes = [8, 128], strides = [1, 1]} : vector<8x512xf32> to vector<8x128xf32>
    %490 = arith.negf %489 : vector<8x128xf32>
    %491 = math.exp %490 : vector<8x128xf32>
    %cst_146 = arith.constant 1.000000e+00 : f32
    %492 = vector.broadcast %cst_146 : f32 to vector<8x128xf32>
    %493 = arith.addf %492, %491 : vector<8x128xf32>
    %494 = arith.divf %492, %493 : vector<8x128xf32>
    %495 = arith.mulf %486, %463 : vector<8x128xf32>
    %496 = arith.mulf %480, %488 : vector<8x128xf32>
    %497 = arith.addf %495, %496 : vector<8x128xf32>
    %498 = math.tanh %497 : vector<8x128xf32>
    %499 = arith.mulf %494, %498 : vector<8x128xf32>
    %500 = arith.index_cast %c5_i32_140 : i32 to index
    %c0_147 = arith.constant 0 : index
    %c0_148 = arith.constant 0 : index
    %501 = vector.load %arg4[%500, %c0_147, %c0_148] : memref<8x8x128xf32, #tpu.memory_space<vmem>>, vector<1x8x128xf32>
    %502 = vector.shape_cast %501 : vector<1x8x128xf32> to vector<8x128xf32>
    %503 = vector.shape_cast %499 : vector<8x128xf32> to vector<1x8x128xf32>
    tpu.vector_store %arg4[%500, %c0_147, %c0_148], %503 {strides = array<i32>} : memref<8x8x128xf32, #tpu.memory_space<vmem>>, vector<1x8x128xf32>,
    %c6_i32_149 = arith.constant 6 : i32
    %504 = arith.index_cast %c6_i32_149 : i32 to index
    %c0_150 = arith.constant 0 : index
    %c0_151 = arith.constant 0 : index
    %505 = vector.load %arg6[%504, %c0_150, %c0_151] : memref<8x8x512xf32, #tpu.memory_space<vmem>>, vector<1x8x512xf32>
    %506 = vector.shape_cast %505 : vector<1x8x512xf32> to vector<8x512xf32>
    %cst_152 = arith.constant dense<0.000000e+00> : vector<8x512xf32>
    %507 = tpu.matmul %499, %289, %cst_152 {dimension_numbers = #tpu.dot_dimension_numbers<[1], [0], [0], [1], [0, 0, 1, 1], [], []>} : vector<8x128xf32>, vector<128x512xf32>, vector<8x512xf32> -> vector<8x512xf32>
    %508 = arith.addf %506, %507 : vector<8x512xf32>
    %509 = vector.extract_strided_slice %508 {offsets = [0, 0], sizes = [8, 128], strides = [1, 1]} : vector<8x512xf32> to vector<8x128xf32>
    %510 = arith.negf %509 : vector<8x128xf32>
    %511 = math.exp %510 : vector<8x128xf32>
    %cst_153 = arith.constant 1.000000e+00 : f32
    %512 = vector.broadcast %cst_153 : f32 to vector<8x128xf32>
    %513 = arith.addf %512, %511 : vector<8x128xf32>
    %514 = arith.divf %512, %513 : vector<8x128xf32>
    %515 = vector.extract_strided_slice %508 {offsets = [0, 128], sizes = [8, 128], strides = [1, 1]} : vector<8x512xf32> to vector<8x128xf32>
    %516 = arith.negf %515 : vector<8x128xf32>
    %517 = math.exp %516 : vector<8x128xf32>
    %cst_154 = arith.constant 1.000000e+00 : f32
    %518 = vector.broadcast %cst_154 : f32 to vector<8x128xf32>
    %519 = arith.addf %518, %517 : vector<8x128xf32>
    %520 = arith.divf %518, %519 : vector<8x128xf32>
    %521 = vector.extract_strided_slice %508 {offsets = [0, 256], sizes = [8, 128], strides = [1, 1]} : vector<8x512xf32> to vector<8x128xf32>
    %522 = math.tanh %521 : vector<8x128xf32>
    %523 = vector.extract_strided_slice %508 {offsets = [0, 384], sizes = [8, 128], strides = [1, 1]} : vector<8x512xf32> to vector<8x128xf32>
    %524 = arith.negf %523 : vector<8x128xf32>
    %525 = math.exp %524 : vector<8x128xf32>
    %cst_155 = arith.constant 1.000000e+00 : f32
    %526 = vector.broadcast %cst_155 : f32 to vector<8x128xf32>
    %527 = arith.addf %526, %525 : vector<8x128xf32>
    %528 = arith.divf %526, %527 : vector<8x128xf32>
    %529 = arith.mulf %520, %497 : vector<8x128xf32>
    %530 = arith.mulf %514, %522 : vector<8x128xf32>
    %531 = arith.addf %529, %530 : vector<8x128xf32>
    %532 = math.tanh %531 : vector<8x128xf32>
    %533 = arith.mulf %528, %532 : vector<8x128xf32>
    %534 = arith.index_cast %c6_i32_149 : i32 to index
    %c0_156 = arith.constant 0 : index
    %c0_157 = arith.constant 0 : index
    %535 = vector.load %arg4[%534, %c0_156, %c0_157] : memref<8x8x128xf32, #tpu.memory_space<vmem>>, vector<1x8x128xf32>
    %536 = vector.shape_cast %535 : vector<1x8x128xf32> to vector<8x128xf32>
    %537 = vector.shape_cast %533 : vector<8x128xf32> to vector<1x8x128xf32>
    tpu.vector_store %arg4[%534, %c0_156, %c0_157], %537 {strides = array<i32>} : memref<8x8x128xf32, #tpu.memory_space<vmem>>, vector<1x8x128xf32>,
    %c7_i32_158 = arith.constant 7 : i32
    %538 = arith.index_cast %c7_i32_158 : i32 to index
    %c0_159 = arith.constant 0 : index
    %c0_160 = arith.constant 0 : index
    %539 = vector.load %arg6[%538, %c0_159, %c0_160] : memref<8x8x512xf32, #tpu.memory_space<vmem>>, vector<1x8x512xf32>
    %540 = vector.shape_cast %539 : vector<1x8x512xf32> to vector<8x512xf32>
    %cst_161 = arith.constant dense<0.000000e+00> : vector<8x512xf32>
    %541 = tpu.matmul %533, %289, %cst_161 {dimension_numbers = #tpu.dot_dimension_numbers<[1], [0], [0], [1], [0, 0, 1, 1], [], []>} : vector<8x128xf32>, vector<128x512xf32>, vector<8x512xf32> -> vector<8x512xf32>
    %542 = arith.addf %540, %541 : vector<8x512xf32>
    %543 = vector.extract_strided_slice %542 {offsets = [0, 0], sizes = [8, 128], strides = [1, 1]} : vector<8x512xf32> to vector<8x128xf32>
    %544 = arith.negf %543 : vector<8x128xf32>
    %545 = math.exp %544 : vector<8x128xf32>
    %cst_162 = arith.constant 1.000000e+00 : f32
    %546 = vector.broadcast %cst_162 : f32 to vector<8x128xf32>
    %547 = arith.addf %546, %545 : vector<8x128xf32>
    %548 = arith.divf %546, %547 : vector<8x128xf32>
    %549 = vector.extract_strided_slice %542 {offsets = [0, 128], sizes = [8, 128], strides = [1, 1]} : vector<8x512xf32> to vector<8x128xf32>
    %550 = arith.negf %549 : vector<8x128xf32>
    %551 = math.exp %550 : vector<8x128xf32>
    %cst_163 = arith.constant 1.000000e+00 : f32
    %552 = vector.broadcast %cst_163 : f32 to vector<8x128xf32>
    %553 = arith.addf %552, %551 : vector<8x128xf32>
    %554 = arith.divf %552, %553 : vector<8x128xf32>
    %555 = vector.extract_strided_slice %542 {offsets = [0, 256], sizes = [8, 128], strides = [1, 1]} : vector<8x512xf32> to vector<8x128xf32>
    %556 = math.tanh %555 : vector<8x128xf32>
    %557 = vector.extract_strided_slice %542 {offsets = [0, 384], sizes = [8, 128], strides = [1, 1]} : vector<8x512xf32> to vector<8x128xf32>
    %558 = arith.negf %557 : vector<8x128xf32>
    %559 = math.exp %558 : vector<8x128xf32>
    %cst_164 = arith.constant 1.000000e+00 : f32
    %560 = vector.broadcast %cst_164 : f32 to vector<8x128xf32>
    %561 = arith.addf %560, %559 : vector<8x128xf32>
    %562 = arith.divf %560, %561 : vector<8x128xf32>
    %563 = arith.mulf %554, %531 : vector<8x128xf32>
    %564 = arith.mulf %548, %556 : vector<8x128xf32>
    %565 = arith.addf %563, %564 : vector<8x128xf32>
    %566 = math.tanh %565 : vector<8x128xf32>
    %567 = arith.mulf %562, %566 : vector<8x128xf32>
    %568 = arith.index_cast %c7_i32_158 : i32 to index
    %c0_165 = arith.constant 0 : index
    %c0_166 = arith.constant 0 : index
    %569 = vector.load %arg4[%568, %c0_165, %c0_166] : memref<8x8x128xf32, #tpu.memory_space<vmem>>, vector<1x8x128xf32>
    %570 = vector.shape_cast %569 : vector<1x8x128xf32> to vector<8x128xf32>
    %571 = vector.shape_cast %567 : vector<8x128xf32> to vector<1x8x128xf32>
    tpu.vector_store %arg4[%568, %c0_165, %c0_166], %571 {strides = array<i32>} : memref<8x8x128xf32, #tpu.memory_space<vmem>>, vector<1x8x128xf32>,
    %c8_i32_167 = arith.constant 8 : i32
    return
  }
}

</mosaic_0001>

<bundles_post_ra>
// kernel: forward.3
= control target key start
LH: loop header
LB: loop body
LE: loop exit
PB: predicated region body
PF: predicated region fallthrough
CT: control target
= control target key end

     0   :  { %s686_s1 = inlined_call_operand.vmem [shape: f32[128,128], index: 1, kind: input, shape index: {}]   ;;  %s687_s0 = inlined_call_operand.vmem [shape: f32[64,128], index: 0, kind: input, shape index: {}]   ;;  %s688_s3 = inlined_call_operand.vmem [shape: f32[128,128], index: 3, kind: input, shape index: {}]   ;;  %s689_s2 = inlined_call_operand.vmem [shape: f32[1,128], index: 2, kind: input, shape index: {}]   ;;  %s690_s4 = inlined_call_operand.vmem [shape: f32[1,128], index: 4, kind: input, shape index: {}]   ;;  %s691_s5 = inlined_call_operand.vmem [shape: f32[64,128], index: 5, kind: output, shape index: {}]  }
   0x1   :  { %v28_v0 = vld [vmem:[%s686_s1] sm:$0xff]  ;;  %v29_v1 = vld [vmem:[%s686_s1 + $0x8] sm:$0xff]  ;;  %v30_v2 = vld [vmem:[%s686_s1 + $0x10] sm:$0xff] }
   0x2   :  { %v442_v3 = vpack.c.bf16 %v29_v1, %v28_v0  ;;  %v31_v4 = vld [vmem:[%s686_s1 + $0x18] sm:$0xff]  ;;  %v32_v6 = vld [vmem:[%s686_s1 + $0x20] sm:$0xff]  ;;  %v33_v7 = vld [vmem:[%s686_s1 + $0x28] sm:$0xff] }
   0x3   :  { %v446_v5 = vpack.c.bf16 %v31_v4, %v30_v2  ;;  %v450_v8 = vpack.c.bf16 %v33_v7, %v32_v6  ;;  %v20_v9 = vld [vmem:[%s687_s0] sm:$0xff]  ;;  %v34_v10 = vld [vmem:[%s686_s1 + $0x30] sm:$0xff]  ;;  %v35_v11 = vld [vmem:[%s686_s1 + $0x38] sm:$0xff] }
   0x4   :  { %443 = vmatprep.subr.bf16.mxu0 %v442_v3  ;;  %386 = vmatprep.mubr.f32.mxu0 %v20_v9  ;;  %v164_v12 = vld [vmem:[%s688_s3] sm:$0xff]  ;;  %v165_v13 = vld [vmem:[%s688_s3 + $0x8] sm:$0xff]  ;;  %v166_v14 = vld [vmem:[%s688_s3 + $0x10] sm:$0xff]  ;;  %v454_v15 = vpack.c.bf16 %v35_v11, %v34_v10 }
   0x5   :  { %445 = vmatpush3.bf16.msra.mxu0 %v442_v3  ;;  %v36_v16 = vld [vmem:[%s686_s1 + $0x40] sm:$0xff]  ;;  %v474_v17 = vpack.c.bf16 %v165_v13, %v164_v12  ;;  %v167_v18 = vld [vmem:[%s688_s3 + $0x18] sm:$0xff]  ;;  %v37_v19 = vld [vmem:[%s686_s1 + $0x48] sm:$0xff] }
   0x6   :  { %447 = vmatprep.subr.bf16.mxu0 %v446_v5  ;;  %v478_v20 = vpack.c.bf16 %v167_v18, %v166_v14  ;;  %v168_v21 = vld [vmem:[%s688_s3 + $0x20] sm:$0xff]  ;;  %v169_v22 = vld [vmem:[%s688_s3 + $0x28] sm:$0xff]  ;;  %v458_v23 = vpack.c.bf16 %v37_v19, %v36_v16  ;;  %v38_v24 = vld [vmem:[%s686_s1 + $0x50] sm:$0xff] }
   0x7   :  { %475 = vmatprep.subr.bf16.mxu1 %v474_v17  ;;  %v482_v25 = vpack.c.bf16 %v169_v22, %v168_v21  ;;  %v39_v26 = vld [vmem:[%s686_s1 + $0x58] sm:$0xff]  ;;  %v170_v27 = vld [vmem:[%s688_s3 + $0x30] sm:$0xff]  ;;  %v40_v30 = vld [vmem:[%s686_s1 + $0x60] sm:$0xff] }
   0x8   :  { %477 = vmatpush3.bf16.msra.mxu1 %v474_v17  ;;  %v171_v28 = vld [vmem:[%s688_s3 + $0x38] sm:$0xff]  ;;  %v462_v29 = vpack.c.bf16 %v39_v26, %v38_v24  ;;  %v41_v32 = vld [vmem:[%s686_s1 + $0x68] sm:$0xff]  ;;  %v172_v33 = vld [vmem:[%s688_s3 + $0x40] sm:$0xff] }
   0x9   :  { %449 = vmatpush3.bf16.msra.mxu0 %v446_v5  ;;  %479 = vmatprep.subr.bf16.mxu1 %v478_v20  ;;  %v486_v31 = vpack.c.bf16 %v171_v28, %v170_v27  ;;  %v173_v34 = vld [vmem:[%s688_s3 + $0x48] sm:$0xff]  ;;  %v466_v35 = vpack.c.bf16 %v41_v32, %v40_v30  ;;  %v42_v36 = vld [vmem:[%s686_s1 + $0x70] sm:$0xff]  ;;  %v43_v38 = vld [vmem:[%s686_s1 + $0x78] sm:$0xff] }
   0xa   :  { %451 = vmatprep.subr.bf16.mxu0 %v450_v8  ;;  %v490_v37 = vpack.c.bf16 %v173_v34, %v172_v33  ;;  %v174_v39 = vld [vmem:[%s688_s3 + $0x50] sm:$0xff]  ;;  %v175_v40 = vld [vmem:[%s688_s3 + $0x58] sm:$0xff]  ;;  %v470_v41 = vpack.c.bf16 %v43_v38, %v42_v36  ;;  %v176_v43 = vld [vmem:[%s688_s3 + $0x60] sm:$0xff] }
   0xb   :  { %v494_v42 = vpack.c.bf16 %v175_v40, %v174_v39  ;;  %v177_v44 = vld [vmem:[%s688_s3 + $0x68] sm:$0xff]  ;;  %v22_v47 = vld [vmem:[%s687_s0 + $0x10] sm:$0xff]  ;;  %v23_v48 = vld [vmem:[%s687_s0 + $0x18] sm:$0xff] }
   0xc   :  { %481 = vmatpush3.bf16.msra.mxu1 %v478_v20  ;;  %v498_v45 = vpack.c.bf16 %v177_v44, %v176_v43  ;;  %v21_v46 = vld [vmem:[%s687_s0 + $0x8] sm:$0xff]  ;;  %v24_v49 = vld [vmem:[%s687_s0 + $0x20] sm:$0xff]  ;;  %v26_v51 = vld [vmem:[%s687_s0 + $0x30] sm:$0xff] }
   0xd   :  { %453 = vmatpush3.bf16.msra.mxu0 %v450_v8  ;;  %483 = vmatprep.subr.bf16.mxu1 %v482_v25  ;;  %v25_v50 = vld [vmem:[%s687_s0 + $0x28] sm:$0xff]  ;;  %v27_v52 = vld [vmem:[%s687_s0 + $0x38] sm:$0xff]  ;;  %v178_v53 = vld [vmem:[%s688_s3 + $0x70] sm:$0xff] }
   0xe   :  { %455 = vmatprep.subr.bf16.mxu0 %v454_v15  ;;  %v179_v54 = vld [vmem:[%s688_s3 + $0x78] sm:$0xff]  ;;  %v304_v56 = vld [vmem:[%s689_s2] ss:$0 sm:$0xff] }
   0xf   :  { %v502_v55 = vpack.c.bf16 %v179_v54, %v178_v53  ;;  %v305_v17 = vld [vmem:[%s690_s4] ss:$0 sm:$0xff] }
  0x10   :  { %485 = vmatpush3.bf16.msra.mxu1 %v482_v25 }
  0x11   :  { %457 = vmatpush3.bf16.msra.mxu0 %v454_v15  ;;  %487 = vmatprep.subr.bf16.mxu1 %v486_v31 }
  0x12   :  { %459 = vmatprep.subr.bf16.mxu0 %v458_v23 }
  0x14   :  { %489 = vmatpush3.bf16.msra.mxu1 %v486_v31 }
  0x15   :  { %461 = vmatpush3.bf16.msra.mxu0 %v458_v23  ;;  %491 = vmatprep.subr.bf16.mxu1 %v490_v37 }
  0x16   :  { %463 = vmatprep.subr.bf16.mxu0 %v462_v29 }
  0x18   :  { %493 = vmatpush3.bf16.msra.mxu1 %v490_v37 }
  0x19   :  { %465 = vmatpush3.bf16.msra.mxu0 %v462_v29  ;;  %495 = vmatprep.subr.bf16.mxu1 %v494_v42 }
  0x1a   :  { %467 = vmatprep.subr.bf16.mxu0 %v466_v35 }
  0x1c   :  { %497 = vmatpush3.bf16.msra.mxu1 %v494_v42 }
  0x1d   :  { %469 = vmatpush3.bf16.msra.mxu0 %v466_v35  ;;  %499 = vmatprep.subr.bf16.mxu1 %v498_v45 }
  0x1e   :  { %471 = vmatprep.subr.bf16.mxu0 %v470_v41 }
  0x20   :  { %501 = vmatpush3.bf16.msra.mxu1 %v498_v45 }
  0x21   :  { %473 = vmatpush3.bf16.msra.mxu0 %v470_v41  ;;  %503 = vmatprep.subr.bf16.mxu1 %v502_v55 }
  0x24   :  { %387 = vmatmul.mubr.f32.vlgmr.msra.gmra.mrb[0].mxu0 %v21_v46  ;;  %505 = vmatpush3.bf16.msra.mxu1 %v502_v55 }
  0x25   :  { %389 = vmatprep.mubr.f32.mxu0 %v22_v47 }
  0x28   :  { %390 = vmatmul.mubr.f32.gmra.mrb[2].mxu0 %v23_v48 }
  0x29   :  { %392 = vmatprep.mubr.f32.mxu0 %v24_v49 }
  0x2c   :  { %393 = vmatmul.mubr.f32.gmra.mrb[4].mxu0 %v25_v50 }
  0x2d   :  { %395 = vmatprep.mubr.f32.mxu0 %v26_v51 }
  0x30   :  { %396 = vmatmul.mubr.f32.gmra.mrb[6].mxu0 %v27_v52 }
  0xf7   :  { %v388_v57 = vpop.f32.mrb[0].mxu0 }
  0xf8   :  { %v123_v58 = vadd.f32 %v388_v57, %v304_v56  ;;  %v117_v59 = vpop.f32.mrb[1].mxu0 }
  0xf9   :  { %v118_v60 = vadd.f32 %v304_v56, %v117_v59 }
  0xfa   :  { %v157_v63 = vmax.f32 %v123_v58, 0.0 }
  0xfb   :  { %v391_v61 = vpop.f32.mrb[2].mxu0  ;;  %v156_v62 = vmax.f32 %v118_v60, 0.0 }
  0xfc   :  { %v133_v0 = vadd.f32 %v391_v61, %v304_v56  ;;  %v127_v1 = vpop.f32.mrb[3].mxu0 }
  0xfd   :  { %v128_v2 = vadd.f32 %v304_v56, %v127_v1  ;;  %430 = vmatprep.mubr.f32.mxu1 %v156_v62 }
  0xfe   :  { %431 = vmatmul.mubr.f32.vlgmr.msra.gmra.mrb[0].mxu1 %v157_v63  ;;  %v159_v5 = vmax.f32 %v133_v0, 0.0 }
  0xff   :  { %v158_v3 = vmax.f32 %v128_v2, 0.0  ;;  %v394_v4 = vpop.f32.mrb[4].mxu0 }
 0x100   :  { %v143_v6 = vadd.f32 %v394_v4, %v304_v56  ;;  %v137_v7 = vpop.f32.mrb[5].mxu0 }
 0x101   :  { %v138_v8 = vadd.f32 %v304_v56, %v137_v7  ;;  %433 = vmatprep.mubr.f32.mxu1 %v158_v3 }
 0x102   :  { %434 = vmatmul.mubr.f32.gmra.mrb[2].mxu1 %v159_v5  ;;  %v161_v11 = vmax.f32 %v143_v6, 0.0 }
 0x103   :  { %v160_v9 = vmax.f32 %v138_v8, 0.0  ;;  %v397_v10 = vpop.f32.mrb[6].mxu0 }
 0x104   :  { %v153_v12 = vadd.f32 %v397_v10, %v304_v56  ;;  %v147_v13 = vpop.f32.mrb[7].mxu0 }
 0x105   :  { %v148_v14 = vadd.f32 %v304_v56, %v147_v13  ;;  %436 = vmatprep.mubr.f32.mxu1 %v160_v9 }
 0x106   :  { %437 = vmatmul.mubr.f32.gmra.mrb[4].mxu1 %v161_v11  ;;  %v163_v16 = vmax.f32 %v153_v12, 0.0 }
 0x107   :  { %v162_v15 = vmax.f32 %v148_v14, 0.0 }
 0x109   :  { %439 = vmatprep.mubr.f32.mxu1 %v162_v15 }
 0x10a   :  { %440 = vmatmul.mubr.f32.gmra.mrb[6].mxu1 %v163_v16 }
 0x1d1   :  { %v432_v18 = vpop.f32.mrb[0].mxu1 }
 0x1d2   :  { %v259_v19 = vadd.f32 %v432_v18, %v305_v17  ;;  %v253_v20 = vpop.f32.mrb[1].mxu1 }
 0x1d3   :  { %v254_v21 = vadd.f32 %v305_v17, %v253_v20 }
 0x1d4   :  { %293 = vst [vmem:[%s691_s5 + $0x8] sm:$0xff] %v259_v19 }
 0x1d5   :  { %292 = vst [vmem:[%s691_s5] sm:$0xff] %v254_v21  ;;  %v435_v22 = vpop.f32.mrb[2].mxu1 }
 0x1d6   :  { %v269_v23 = vadd.f32 %v435_v22, %v305_v17  ;;  %v263_v24 = vpop.f32.mrb[3].mxu1 }
 0x1d7   :  { %v264_v25 = vadd.f32 %v305_v17, %v263_v24 }
 0x1d8   :  { %295 = vst [vmem:[%s691_s5 + $0x18] sm:$0xff] %v269_v23 }
 0x1d9   :  { %294 = vst [vmem:[%s691_s5 + $0x10] sm:$0xff] %v264_v25  ;;  %v438_v26 = vpop.f32.mrb[4].mxu1 }
 0x1da   :  { %v279_v27 = vadd.f32 %v438_v26, %v305_v17  ;;  %v273_v28 = vpop.f32.mrb[5].mxu1 }
 0x1db   :  { %v274_v29 = vadd.f32 %v305_v17, %v273_v28 }
 0x1dc   :  { %297 = vst [vmem:[%s691_s5 + $0x28] sm:$0xff] %v279_v27 }
 0x1dd   :  { %296 = vst [vmem:[%s691_s5 + $0x20] sm:$0xff] %v274_v29  ;;  %v441_v30 = vpop.f32.mrb[6].mxu1 }
 0x1de   :  { %v289_v31 = vadd.f32 %v441_v30, %v305_v17  ;;  %v283_v32 = vpop.f32.mrb[7].mxu1 }
 0x1df   :  { %v284_v33 = vadd.f32 %v305_v17, %v283_v32 }
 0x1e0   :  { %299 = vst [vmem:[%s691_s5 + $0x38] sm:$0xff] %v289_v31 }
 0x1e1   :  { %298 = vst [vmem:[%s691_s5 + $0x30] sm:$0xff] %v284_v33 }

// kernel: forward.4
= control target key start
LH: loop header
LB: loop body
LE: loop exit
PB: predicated region body
PF: predicated region fallthrough
CT: control target
= control target key end

     0   :  { %v5398_v3 = vmov 0.0   ;;  %s7150_s1 = inlined_call_operand.vmem [shape: f32[2,128,512], index: 1, kind: input, shape index: {}]   ;;  %s7151_s2 = inlined_call_operand.vmem [shape: f32[2,128,512], index: 2, kind: input, shape index: {}]   ;;  %s7152_s0 = inlined_call_operand.vmem [shape: f32[8,8,128], index: 0, kind: input, shape index: {}]   ;;  %s7153_s3 = inlined_call_operand.vmem [shape: f32[2,1,512], index: 3, kind: input, shape index: {}]   ;;  %s7154_s4 = inlined_call_operand.vmem [shape: f32[8,8,128], index: 4, kind: output, shape index: {}]  }
   0x1   :  { %v18_v0 = vld [vmem:[%s7150_s1 + $0x8] sm:$0xff]  ;;  %v20_v2 = vld [vmem:[%s7150_s1 + $0x18] sm:$0xff]  ;;  %239 = vmatprep.mubr.f32.mxu0 %v5398_v3  ;;  %352 = vmatprep.mubr.f32.mxu1 %v5398_v3  ;;  %v17_v6 = vld [vmem:[%s7150_s1] sm:$0xff] }
   0x2   :  { %v22_v1 = vld [vmem:[%s7150_s1 + $0x28] sm:$0xff]  ;;  %v24_v5 = vld [vmem:[%s7150_s1 + $0x38] sm:$0xff]  ;;  %v21_v7 = vld [vmem:[%s7150_s1 + $0x20] sm:$0xff] }
   0x3   :  { %v3861_v4 = vpack.c.bf16 %v22_v1, %v18_v0  ;;  %v3893_v8 = vpack.c.bf16 %v24_v5, %v20_v2  ;;  %v3863_v9 = vpack.c.bf16 %v21_v7, %v17_v6  ;;  %v19_v10 = vld [vmem:[%s7150_s1 + $0x10] sm:$0xff]  ;;  %v26_v12 = vld [vmem:[%s7150_s1 + $0x48] sm:$0xff]  ;;  %v28_v15 = vld [vmem:[%s7150_s1 + $0x58] sm:$0xff] }
   0x4   :  { %v23_v11 = vld [vmem:[%s7150_s1 + $0x30] sm:$0xff]  ;;  %v30_v14 = vld [vmem:[%s7150_s1 + $0x68] sm:$0xff]  ;;  %v32_v16 = vld [vmem:[%s7150_s1 + $0x78] sm:$0xff] }
   0x5   :  { %3862 = vmatprep.subr.bf16.mxu0 %v3861_v4  ;;  %v3895_v13 = vpack.c.bf16 %v23_v11, %v19_v10  ;;  %3894 = vmatprep.subr.bf16.mxu1 %v3893_v8  ;;  %v3865_v17 = vpack.c.bf16 %v30_v14, %v26_v12  ;;  %v3897_v18 = vpack.c.bf16 %v32_v16, %v28_v15  ;;  %v25_v19 = vld [vmem:[%s7150_s1 + $0x40] sm:$0xff]  ;;  %v27_v21 = vld [vmem:[%s7150_s1 + $0x50] sm:$0xff]  ;;  %v34_v24 = vld [vmem:[%s7150_s1 + $0x88] sm:$0xff] }
   0x6   :  { %3864 = vmatpush1.bf16.msra.mxu0 %v3863_v9  ;;  %v29_v20 = vld [vmem:[%s7150_s1 + $0x60] sm:$0xff]  ;;  %v31_v23 = vld [vmem:[%s7150_s1 + $0x70] sm:$0xff]  ;;  %v38_v25 = vld [vmem:[%s7150_s1 + $0xa8] sm:$0xff] }
   0x7   :  { %3896 = vmatpush1.bf16.msra.mxu1 %v3895_v13  ;;  %v3867_v22 = vpack.c.bf16 %v29_v20, %v25_v19  ;;  %3866 = vmatprep.subr.bf16.mxu0 %v3865_v17  ;;  %v3899_v26 = vpack.c.bf16 %v31_v23, %v27_v21  ;;  %v3869_v27 = vpack.c.bf16 %v38_v25, %v34_v24  ;;  %v36_v28 = vld [vmem:[%s7150_s1 + $0x98] sm:$0xff]  ;;  %v33_v30 = vld [vmem:[%s7150_s1 + $0x80] sm:$0xff]  ;;  %v35_v33 = vld [vmem:[%s7150_s1 + $0x90] sm:$0xff] }
   0x8   :  { %3898 = vmatprep.subr.bf16.mxu1 %v3897_v18  ;;  %v40_v29 = vld [vmem:[%s7150_s1 + $0xb8] sm:$0xff]  ;;  %v37_v32 = vld [vmem:[%s7150_s1 + $0xa0] sm:$0xff]  ;;  %v39_v34 = vld [vmem:[%s7150_s1 + $0xb0] sm:$0xff] }
   0x9   :  { %v3901_v31 = vpack.c.bf16 %v40_v29, %v36_v28  ;;  %v3871_v35 = vpack.c.bf16 %v37_v32, %v33_v30  ;;  %v42_v36 = vld [vmem:[%s7150_s1 + $0xc8] sm:$0xff]  ;;  %v44_v38 = vld [vmem:[%s7150_s1 + $0xd8] sm:$0xff]  ;;  %v3903_v39 = vpack.c.bf16 %v39_v34, %v35_v33  ;;  %v41_v42 = vld [vmem:[%s7150_s1 + $0xc0] sm:$0xff] }
   0xa   :  { %3868 = vmatpush1.bf16.msra.mxu0 %v3867_v22  ;;  %v46_v37 = vld [vmem:[%s7150_s1 + $0xe8] sm:$0xff]  ;;  %v48_v41 = vld [vmem:[%s7150_s1 + $0xf8] sm:$0xff]  ;;  %v45_v43 = vld [vmem:[%s7150_s1 + $0xe0] sm:$0xff] }
   0xb   :  { %3900 = vmatpush1.bf16.msra.mxu1 %v3899_v26  ;;  %3870 = vmatprep.subr.bf16.mxu0 %v3869_v27  ;;  %v3873_v40 = vpack.c.bf16 %v46_v37, %v42_v36  ;;  %v3905_v44 = vpack.c.bf16 %v48_v41, %v44_v38  ;;  %v43_v45 = vld [vmem:[%s7150_s1 + $0xd0] sm:$0xff]  ;;  %v50_v47 = vld [vmem:[%s7150_s1 + $0x108] sm:$0xff]  ;;  %v52_v49 = vld [vmem:[%s7150_s1 + $0x118] sm:$0xff]  ;;  %v3875_v51 = vpack.c.bf16 %v45_v43, %v41_v42 }
   0xc   :  { %3902 = vmatprep.subr.bf16.mxu1 %v3901_v31  ;;  %v47_v46 = vld [vmem:[%s7150_s1 + $0xf0] sm:$0xff]  ;;  %v54_v48 = vld [vmem:[%s7150_s1 + $0x128] sm:$0xff]  ;;  %v56_v50 = vld [vmem:[%s7150_s1 + $0x138] sm:$0xff] }
   0xd   :  { %v3907_v52 = vpack.c.bf16 %v47_v46, %v43_v45  ;;  %v3877_v53 = vpack.c.bf16 %v54_v48, %v50_v47  ;;  %v49_v54 = vld [vmem:[%s7150_s1 + $0x100] sm:$0xff]  ;;  %v51_v56 = vld [vmem:[%s7150_s1 + $0x110] sm:$0xff]  ;;  %v3909_v57 = vpack.c.bf16 %v56_v50, %v52_v49  ;;  %v58_v59 = vld [vmem:[%s7150_s1 + $0x148] sm:$0xff] }
   0xe   :  { %3872 = vmatpush1.bf16.msra.mxu0 %v3871_v35  ;;  %v53_v55 = vld [vmem:[%s7150_s1 + $0x120] sm:$0xff]  ;;  %v55_v58 = vld [vmem:[%s7150_s1 + $0x130] sm:$0xff]  ;;  %v62_v60 = vld [vmem:[%s7150_s1 + $0x168] sm:$0xff] }
   0xf   :  { %3904 = vmatpush1.bf16.msra.mxu1 %v3903_v39  ;;  %3874 = vmatprep.subr.bf16.mxu0 %v3873_v40  ;;  %v60_v61 = vld [vmem:[%s7150_s1 + $0x158] sm:$0xff]  ;;  %v3879_v63 = vpack.c.bf16 %v53_v55, %v49_v54  ;;  %v3911_v0 = vpack.c.bf16 %v55_v58, %v51_v56  ;;  %v3881_v1 = vpack.c.bf16 %v62_v60, %v58_v59  ;;  %v57_v2 = vld [vmem:[%s7150_s1 + $0x140] sm:$0xff]  ;;  %v59_v5 = vld [vmem:[%s7150_s1 + $0x150] sm:$0xff] }
  0x10   :  { %3906 = vmatprep.subr.bf16.mxu1 %v3905_v44  ;;  %v64_v62 = vld [vmem:[%s7150_s1 + $0x178] sm:$0xff]  ;;  %v61_v4 = vld [vmem:[%s7150_s1 + $0x160] sm:$0xff]  ;;  %v63_v7 = vld [vmem:[%s7150_s1 + $0x170] sm:$0xff] }
  0x11   :  { %v3913_v6 = vpack.c.bf16 %v64_v62, %v60_v61  ;;  %v66_v8 = vld [vmem:[%s7150_s1 + $0x188] sm:$0xff]  ;;  %v68_v10 = vld [vmem:[%s7150_s1 + $0x198] sm:$0xff]  ;;  %v3883_v12 = vpack.c.bf16 %v61_v4, %v57_v2  ;;  %v3915_v13 = vpack.c.bf16 %v63_v7, %v59_v5  ;;  %v65_v15 = vld [vmem:[%s7150_s1 + $0x180] sm:$0xff] }
  0x12   :  { %3876 = vmatpush1.bf16.msra.mxu0 %v3875_v51  ;;  %v70_v9 = vld [vmem:[%s7150_s1 + $0x1a8] sm:$0xff]  ;;  %v72_v11 = vld [vmem:[%s7150_s1 + $0x1b8] sm:$0xff]  ;;  %v69_v16 = vld [vmem:[%s7150_s1 + $0x1a0] sm:$0xff] }
  0x13   :  { %3908 = vmatpush1.bf16.msra.mxu1 %v3907_v52  ;;  %3878 = vmatprep.subr.bf16.mxu0 %v3877_v53  ;;  %v3885_v14 = vpack.c.bf16 %v70_v9, %v66_v8  ;;  %v67_v17 = vld [vmem:[%s7150_s1 + $0x190] sm:$0xff]  ;;  %v3917_v18 = vpack.c.bf16 %v72_v11, %v68_v10  ;;  %v74_v20 = vld [vmem:[%s7150_s1 + $0x1c8] sm:$0xff]  ;;  %v76_v22 = vld [vmem:[%s7150_s1 + $0x1d8] sm:$0xff]  ;;  %v3887_v24 = vpack.c.bf16 %v69_v16, %v65_v15 }
  0x14   :  { %3910 = vmatprep.subr.bf16.mxu1 %v3909_v57  ;;  %v71_v19 = vld [vmem:[%s7150_s1 + $0x1b0] sm:$0xff]  ;;  %v78_v21 = vld [vmem:[%s7150_s1 + $0x1e8] sm:$0xff]  ;;  %v80_v23 = vld [vmem:[%s7150_s1 + $0x1f8] sm:$0xff] }
  0x15   :  { %v3919_v25 = vpack.c.bf16 %v71_v19, %v67_v17  ;;  %v3889_v26 = vpack.c.bf16 %v78_v21, %v74_v20  ;;  %v73_v27 = vld [vmem:[%s7150_s1 + $0x1c0] sm:$0xff]  ;;  %v75_v29 = vld [vmem:[%s7150_s1 + $0x1d0] sm:$0xff]  ;;  %v3921_v30 = vpack.c.bf16 %v80_v23, %v76_v22  ;;  %v82_v32 = vld [vmem:[%s7151_s2 + $0x8] sm:$0xff] }
  0x16   :  { %3880 = vmatpush1.bf16.msra.mxu0 %v3879_v63  ;;  %v77_v28 = vld [vmem:[%s7150_s1 + $0x1e0] sm:$0xff]  ;;  %v79_v31 = vld [vmem:[%s7150_s1 + $0x1f0] sm:$0xff]  ;;  %v86_v33 = vld [vmem:[%s7151_s2 + $0x28] sm:$0xff] }
  0x17   :  { %3912 = vmatpush1.bf16.msra.mxu1 %v3911_v0  ;;  %3882 = vmatprep.subr.bf16.mxu0 %v3881_v1  ;;  %v84_v34 = vld [vmem:[%s7151_s2 + $0x18] sm:$0xff]  ;;  %v3891_v36 = vpack.c.bf16 %v77_v28, %v73_v27  ;;  %v3923_v37 = vpack.c.bf16 %v79_v31, %v75_v29  ;;  %v5630_v38 = vpack.c.bf16 %v86_v33, %v82_v32  ;;  %v81_v39 = vld [vmem:[%s7151_s2] sm:$0xff]  ;;  %v83_v42 = vld [vmem:[%s7151_s2 + $0x10] sm:$0xff] }
  0x18   :  { %3914 = vmatprep.subr.bf16.mxu1 %v3913_v6  ;;  %v88_v35 = vld [vmem:[%s7151_s2 + $0x38] sm:$0xff]  ;;  %v85_v40 = vld [vmem:[%s7151_s2 + $0x20] sm:$0xff]  ;;  %v87_v43 = vld [vmem:[%s7151_s2 + $0x30] sm:$0xff] }
  0x19   :  { %v5638_v41 = vpack.c.bf16 %v88_v35, %v84_v34  ;;  %v90_v44 = vld [vmem:[%s7151_s2 + $0x48] sm:$0xff]  ;;  %v146_v46 = vld [vmem:[%s7152_s0] sm:$0xff]  ;;  %v5655_v47 = vpack.c.bf16 %v85_v40, %v81_v39  ;;  %v92_v48 = vld [vmem:[%s7151_s2 + $0x58] sm:$0xff]  ;;  %v5664_v50 = vpack.c.bf16 %v87_v43, %v83_v42 }
  0x1a   :  { %3884 = vmatpush1.bf16.msra.mxu0 %v3883_v12  ;;  %v94_v45 = vld [vmem:[%s7151_s2 + $0x68] sm:$0xff]  ;;  %v96_v49 = vld [vmem:[%s7151_s2 + $0x78] sm:$0xff]  ;;  %v89_v51 = vld [vmem:[%s7151_s2 + $0x40] sm:$0xff] }
  0x1b   :  { %3916 = vmatpush1.bf16.msra.mxu1 %v3915_v13  ;;  %3886 = vmatprep.subr.bf16.mxu0 %v3885_v14  ;;  %v93_v52 = vld [vmem:[%s7151_s2 + $0x60] sm:$0xff]  ;;  %v5673_v53 = vpack.c.bf16 %v94_v45, %v90_v44  ;;  %v91_v54 = vld [vmem:[%s7151_s2 + $0x50] sm:$0xff]  ;;  %v5681_v56 = vpack.c.bf16 %v96_v49, %v92_v48  ;;  %v98_v57 = vld [vmem:[%s7151_s2 + $0x88] sm:$0xff] }
  0x1c   :  { %3918 = vmatprep.subr.bf16.mxu1 %v3917_v18  ;;  %v95_v55 = vld [vmem:[%s7151_s2 + $0x70] sm:$0xff]  ;;  %v102_v58 = vld [vmem:[%s7151_s2 + $0xa8] sm:$0xff]  ;;  %v5693_v60 = vpack.c.bf16 %v93_v52, %v89_v51  ;;  %v100_v61 = vld [vmem:[%s7151_s2 + $0x98] sm:$0xff] }
  0x1d   :  { %v147_v59 = vld [vmem:[%s7152_s0 + $0x8] sm:$0xff]  ;;  %v104_v62 = vld [vmem:[%s7151_s2 + $0xb8] sm:$0xff]  ;;  %v5703_v63 = vpack.c.bf16 %v95_v55, %v91_v54  ;;  %v97_v0 = vld [vmem:[%s7151_s2 + $0x80] sm:$0xff]  ;;  %v5713_v2 = vpack.c.bf16 %v102_v58, %v98_v57 }
  0x1e   :  { %3888 = vmatpush1.bf16.msra.mxu0 %v3887_v24  ;;  %v101_v1 = vld [vmem:[%s7151_s2 + $0xa0] sm:$0xff]  ;;  %v99_v4 = vld [vmem:[%s7151_s2 + $0x90] sm:$0xff]  ;;  %v5722_v6 = vpack.c.bf16 %v104_v62, %v100_v61  ;;  %v106_v7 = vld [vmem:[%s7151_s2 + $0xc8] sm:$0xff] }
  0x1f   :  { %3920 = vmatpush1.bf16.msra.mxu1 %v3919_v25  ;;  %3890 = vmatprep.subr.bf16.mxu0 %v3889_v26  ;;  %v103_v5 = vld [vmem:[%s7151_s2 + $0xb0] sm:$0xff]  ;;  %v110_v8 = vld [vmem:[%s7151_s2 + $0xe8] sm:$0xff]  ;;  %v5734_v10 = vpack.c.bf16 %v101_v1, %v97_v0  ;;  %v108_v11 = vld [vmem:[%s7151_s2 + $0xd8] sm:$0xff] }
  0x20   :  { %3922 = vmatprep.subr.bf16.mxu1 %v3921_v30  ;;  %v148_v9 = vld [vmem:[%s7152_s0 + $0x10] sm:$0xff]  ;;  %v112_v12 = vld [vmem:[%s7151_s2 + $0xf8] sm:$0xff]  ;;  %v5744_v13 = vpack.c.bf16 %v103_v5, %v99_v4  ;;  %v105_v14 = vld [vmem:[%s7151_s2 + $0xc0] sm:$0xff]  ;;  %v5754_v16 = vpack.c.bf16 %v110_v8, %v106_v7 }
  0x21   :  { %v109_v15 = vld [vmem:[%s7151_s2 + $0xe0] sm:$0xff]  ;;  %v107_v17 = vld [vmem:[%s7151_s2 + $0xd0] sm:$0xff]  ;;  %v5763_v19 = vpack.c.bf16 %v112_v12, %v108_v11  ;;  %v114_v20 = vld [vmem:[%s7151_s2 + $0x108] sm:$0xff] }
  0x22   :  { %3892 = vmatpush1.bf16.msra.mxu0 %v3891_v36  ;;  %v111_v18 = vld [vmem:[%s7151_s2 + $0xf0] sm:$0xff]  ;;  %v118_v21 = vld [vmem:[%s7151_s2 + $0x128] sm:$0xff]  ;;  %v149_v22 = vld [vmem:[%s7152_s0 + $0x18] sm:$0xff]  ;;  %v5775_v23 = vpack.c.bf16 %v109_v15, %v105_v14 }
  0x23   :  { %3924 = vmatpush1.bf16.msra.mxu1 %v3923_v37  ;;  %3926 = vmatprep.subr.bf16.mxu0 %v5630_v38  ;;  %v116_v24 = vld [vmem:[%s7151_s2 + $0x118] sm:$0xff]  ;;  %v5785_v26 = vpack.c.bf16 %v111_v18, %v107_v17  ;;  %v113_v27 = vld [vmem:[%s7151_s2 + $0x100] sm:$0xff]  ;;  %v5795_v29 = vpack.c.bf16 %v118_v21, %v114_v20  ;;  %v115_v30 = vld [vmem:[%s7151_s2 + $0x110] sm:$0xff] }
  0x24   :  { %3958 = vmatprep.subr.bf16.mxu1 %v5638_v41  ;;  %v120_v25 = vld [vmem:[%s7151_s2 + $0x138] sm:$0xff]  ;;  %v117_v28 = vld [vmem:[%s7151_s2 + $0x120] sm:$0xff]  ;;  %v119_v31 = vld [vmem:[%s7151_s2 + $0x130] sm:$0xff] }
  0x25   :  { %240 = vmatmul.mubr.f32.vlgmr.msra.gmra.mrb[0].mxu0 %v146_v46  ;;  %v5804_v32 = vpack.c.bf16 %v120_v25, %v116_v24  ;;  %v122_v33 = vld [vmem:[%s7151_s2 + $0x148] sm:$0xff]  ;;  %v150_v35 = vld [vmem:[%s7152_s0 + $0x20] sm:$0xff]  ;;  %v5816_v36 = vpack.c.bf16 %v117_v28, %v113_v27  ;;  %v124_v37 = vld [vmem:[%s7151_s2 + $0x158] sm:$0xff]  ;;  %v5826_v40 = vpack.c.bf16 %v119_v31, %v115_v30  ;;  %v155_v28 = vlaneseq }
  0x26   :  { %353 = vmatmul.mubr.f32.vlgmr.msra.gmra.mrb[0].mxu1 %v146_v46  ;;  %3928 = vmatpush1.bf16.msra.mxu0 %v5655_v47  ;;  %v126_v34 = vld [vmem:[%s7151_s2 + $0x168] sm:$0xff]  ;;  %v128_v39 = vld [vmem:[%s7151_s2 + $0x178] sm:$0xff]  ;;  %v121_v42 = vld [vmem:[%s7151_s2 + $0x140] sm:$0xff] }
  0x27   :  { %3960 = vmatpush1.bf16.msra.mxu1 %v5664_v50  ;;  %245 = vmatprep.mubr.f32.mxu0 %v5398_v3  ;;  %v125_v43 = vld [vmem:[%s7151_s2 + $0x160] sm:$0xff]  ;;  %v5836_v44 = vpack.c.bf16 %v126_v34, %v122_v33  ;;  %v123_v45 = vld [vmem:[%s7151_s2 + $0x150] sm:$0xff]  ;;  %v5845_v48 = vpack.c.bf16 %v128_v39, %v124_v37  ;;  %v130_v49 = vld [vmem:[%s7151_s2 + $0x188] sm:$0xff]  ;;  %v5984_v30 = vshrl.u32 %v155_v28, 7 }
  0x28   :  { %358 = vmatprep.mubr.f32.mxu1 %v5398_v3  ;;  %3930 = vmatprep.subr.bf16.mxu0 %v5673_v53  ;;  %v127_v46 = vld [vmem:[%s7151_s2 + $0x170] sm:$0xff]  ;;  %v134_v51 = vld [vmem:[%s7151_s2 + $0x1a8] sm:$0xff]  ;;  %v5857_v54 = vpack.c.bf16 %v125_v43, %v121_v42  ;;  %v132_v55 = vld [vmem:[%s7151_s2 + $0x198] sm:$0xff] }
  0x29   :  { %246 = vmatmul.mubr.f32.gmra.mrb[2].mxu0 %v147_v59  ;;  %3962 = vmatprep.subr.bf16.mxu1 %v5681_v56  ;;  %v151_v52 = vld [vmem:[%s7152_s0 + $0x28] sm:$0xff]  ;;  %v136_v57 = vld [vmem:[%s7151_s2 + $0x1b8] sm:$0xff]  ;;  %v5867_v58 = vpack.c.bf16 %v127_v46, %v123_v45  ;;  %v133_v61 = vld [vmem:[%s7151_s2 + $0x1a0] sm:$0xff]  ;;  %v5877_v62 = vpack.c.bf16 %v134_v51, %v130_v49  ;;  %v157_v31 = vsub.s32 0, %v5984_v30  ;;  %v161_v34 = vsub.s32 1, %v5984_v30 }
  0x2a   :  { %359 = vmatmul.mubr.f32.gmra.mrb[2].mxu1 %v147_v59  ;;  %3932 = vmatpush1.bf16.msra.mxu0 %v5693_v60  ;;  %v129_v59 = vld [vmem:[%s7151_s2 + $0x180] sm:$0xff]  ;;  %v131_v0 = vld [vmem:[%s7151_s2 + $0x190] sm:$0xff]  ;;  %v5886_v4 = vpack.c.bf16 %v136_v57, %v132_v55  ;;  %v138_v5 = vld [vmem:[%s7151_s2 + $0x1c8] sm:$0xff]  ;;  %v169_v42 = vsub.s32 3, %v5984_v30 }
  0x2b   :  { %3964 = vmatpush1.bf16.msra.mxu1 %v5703_v63  ;;  %251 = vmatprep.mubr.f32.mxu0 %v5398_v3  ;;  %v135_v1 = vld [vmem:[%s7151_s2 + $0x1b0] sm:$0xff]  ;;  %v142_v7 = vld [vmem:[%s7151_s2 + $0x1e8] sm:$0xff]  ;;  %v140_v11 = vld [vmem:[%s7151_s2 + $0x1d8] sm:$0xff] }
  0x2c   :  { %364 = vmatprep.mubr.f32.mxu1 %v5398_v3  ;;  %3934 = vmatprep.subr.bf16.mxu0 %v5713_v2  ;;  %v152_v8 = vld [vmem:[%s7152_s0 + $0x30] sm:$0xff]  ;;  %v144_v12 = vld [vmem:[%s7151_s2 + $0x1f8] sm:$0xff]  ;;  %v5908_v14 = vpack.c.bf16 %v135_v1, %v131_v0  ;;  %v137_v15 = vld [vmem:[%s7151_s2 + $0x1c0] sm:$0xff]  ;;  %v5918_v18 = vpack.c.bf16 %v142_v7, %v138_v5 }
  0x2d   :  { %252 = vmatmul.mubr.f32.gmra.mrb[4].mxu0 %v148_v9  ;;  %3966 = vmatprep.subr.bf16.mxu1 %v5722_v6  ;;  %v141_v17 = vld [vmem:[%s7151_s2 + $0x1e0] sm:$0xff]  ;;  %v139_v20 = vld [vmem:[%s7151_s2 + $0x1d0] sm:$0xff]  ;;  %v153_v24 = vld [vmem:[%s7152_s0 + $0x38] sm:$0xff] }
  0x2e   :  { %365 = vmatmul.mubr.f32.gmra.mrb[4].mxu1 %v148_v9  ;;  %3936 = vmatpush1.bf16.msra.mxu0 %v5734_v10  ;;  %v5898_v9 = vpack.c.bf16 %v133_v61, %v129_v59  ;;  %v143_v21 = vld [vmem:[%s7151_s2 + $0x1f0] sm:$0xff]  ;;  %v5933_v25 = vpack.c.bf16 %v141_v17, %v137_v15  ;;  %v145_v33 = vld [vmem:[%s7153_s3] sm:$0xf]  ;;  %v165_v59 = vsub.s32 2, %v5984_v30 }
  0x2f   :  { %3968 = vmatpush1.bf16.msra.mxu1 %v5744_v13  ;;  %257 = vmatprep.mubr.f32.mxu0 %v5398_v3  ;;  %v5937_v27 = vpack.c.bf16 %v143_v21, %v139_v20  ;;  %v5997_v37 = vrot.slane %v145_v33, %v161_v34  ;;  %v6004_v57 = vrot.slane %v145_v33, %v169_v42 }
  0x30   :  { %370 = vmatprep.mubr.f32.mxu1 %v5398_v3  ;;  %3938 = vmatprep.subr.bf16.mxu0 %v5754_v16  ;;  %v6010_v0 = vrot.slane %v145_v33, %v165_v59 }
  0x31   :  { %258 = vmatmul.mubr.f32.gmra.mrb[6].mxu0 %v149_v22  ;;  %3970 = vmatprep.subr.bf16.mxu1 %v5763_v19 }
  0x32   :  { %371 = vmatmul.mubr.f32.gmra.mrb[6].mxu1 %v149_v22  ;;  %3940 = vmatpush1.bf16.msra.mxu0 %v5775_v23  ;;  %v5927_v22 = vpack.c.bf16 %v144_v12, %v140_v11 }
  0x33   :  { %3972 = vmatpush1.bf16.msra.mxu1 %v5785_v26  ;;  %263 = vmatprep.mubr.f32.mxu0 %v5398_v3 }
  0x34   :  { %376 = vmatprep.mubr.f32.mxu1 %v5398_v3  ;;  %3942 = vmatprep.subr.bf16.mxu0 %v5795_v29 }
  0x35   :  { %264 = vmatmul.mubr.f32.gmra.mrb[8].mxu0 %v150_v35  ;;  %3974 = vmatprep.subr.bf16.mxu1 %v5804_v32 }
  0x36   :  { %377 = vmatmul.mubr.f32.gmra.mrb[8].mxu1 %v150_v35  ;;  %3944 = vmatpush1.bf16.msra.mxu0 %v5816_v36  ;;  %v5993_v35 = vrot.slane %v145_v33, %v157_v31 }
  0x37   :  { %3976 = vmatpush1.bf16.msra.mxu1 %v5826_v40  ;;  %269 = vmatprep.mubr.f32.mxu0 %v5398_v3 }
  0x38   :  { %382 = vmatprep.mubr.f32.mxu1 %v5398_v3  ;;  %3946 = vmatprep.subr.bf16.mxu0 %v5836_v44 }
  0x39   :  { %270 = vmatmul.mubr.f32.gmra.mrb[10].mxu0 %v151_v52  ;;  %3978 = vmatprep.subr.bf16.mxu1 %v5845_v48 }
  0x3a   :  { %383 = vmatmul.mubr.f32.gmra.mrb[10].mxu1 %v151_v52  ;;  %3948 = vmatpush1.bf16.msra.mxu0 %v5857_v54 }
  0x3b   :  { %3980 = vmatpush1.bf16.msra.mxu1 %v5867_v58  ;;  %275 = vmatprep.mubr.f32.mxu0 %v5398_v3 }
  0x3c   :  { %388 = vmatprep.mubr.f32.mxu1 %v5398_v3  ;;  %3950 = vmatprep.subr.bf16.mxu0 %v5877_v62 }
  0x3d   :  { %276 = vmatmul.mubr.f32.gmra.mrb[12].mxu0 %v152_v8  ;;  %3982 = vmatprep.subr.bf16.mxu1 %v5886_v4 }
  0x3e   :  { %389 = vmatmul.mubr.f32.gmra.mrb[12].mxu1 %v152_v8  ;;  %3952 = vmatpush1.bf16.msra.mxu0 %v5898_v9 }
  0x3f   :  { %3984 = vmatpush1.bf16.msra.mxu1 %v5908_v14  ;;  %281 = vmatprep.mubr.f32.mxu0 %v5398_v3 }
  0x40   :  { %394 = vmatprep.mubr.f32.mxu1 %v5398_v3  ;;  %3954 = vmatprep.subr.bf16.mxu0 %v5918_v18 }
  0x41   :  { %282 = vmatmul.mubr.f32.gmra.mrb[14].mxu0 %v153_v24  ;;  %3986 = vmatprep.subr.bf16.mxu1 %v5927_v22 }
  0x42   :  { %395 = vmatmul.mubr.f32.gmra.mrb[14].mxu1 %v153_v24  ;;  %3956 = vmatpush1.bf16.msra.mxu0 %v5933_v25 }
  0x43   :  { %3988 = vmatpush1.bf16.msra.mxu1 %v5937_v27  ;;  %501 = vmatprep.mubr.f32.mxu0 %v5398_v3 }
  0x44   :  { %572 = vmatprep.mubr.f32.mxu1 %v5398_v3  ;;  %3990 = vmatprep.subr.bf16.mxu0 %v5630_v38 }
  0x45   :  { %502 = vmatmul.mubr.f32.vlgmr.msra.gmra.mrb[0].mxu0 %v5398_v3  ;;  %4022 = vmatprep.subr.bf16.mxu1 %v5638_v41 }
  0x46   :  { %573 = vmatmul.mubr.f32.vlgmr.msra.gmra.mrb[0].mxu1 %v5398_v3  ;;  %3992 = vmatpush1.bf16.msra.mxu0 %v5655_v47 }
  0x47   :  { %4024 = vmatpush1.bf16.msra.mxu1 %v5664_v50  ;;  %3994 = vmatprep.subr.bf16.mxu0 %v5673_v53 }
  0x48   :  { %4026 = vmatprep.subr.bf16.mxu1 %v5681_v56  ;;  %677 = vmatprep.mubr.f32.mxu0 %v5398_v3 }
  0x49   :  { %748 = vmatprep.mubr.f32.mxu1 %v5398_v3 }
  0x4a   :  { %3996 = vmatpush1.bf16.msra.mxu0 %v5693_v60 }
  0x4b   :  { %4028 = vmatpush1.bf16.msra.mxu1 %v5703_v63  ;;  %3998 = vmatprep.subr.bf16.mxu0 %v5713_v2 }
  0x4c   :  { %4030 = vmatprep.subr.bf16.mxu1 %v5722_v6 }
  0x4e   :  { %4000 = vmatpush1.bf16.msra.mxu0 %v5734_v10 }
  0x4f   :  { %4032 = vmatpush1.bf16.msra.mxu1 %v5744_v13  ;;  %4002 = vmatprep.subr.bf16.mxu0 %v5754_v16 }
  0x50   :  { %4034 = vmatprep.subr.bf16.mxu1 %v5763_v19 }
  0x52   :  { %4004 = vmatpush1.bf16.msra.mxu0 %v5775_v23 }
  0x53   :  { %4036 = vmatpush1.bf16.msra.mxu1 %v5785_v26  ;;  %4006 = vmatprep.subr.bf16.mxu0 %v5795_v29 }
  0x54   :  { %4038 = vmatprep.subr.bf16.mxu1 %v5804_v32 }
  0x56   :  { %4008 = vmatpush1.bf16.msra.mxu0 %v5816_v36 }
  0x57   :  { %4040 = vmatpush1.bf16.msra.mxu1 %v5826_v40  ;;  %4010 = vmatprep.subr.bf16.mxu0 %v5836_v44 }
  0x58   :  { %4042 = vmatprep.subr.bf16.mxu1 %v5845_v48 }
  0x5a   :  { %4012 = vmatpush1.bf16.msra.mxu0 %v5857_v54 }
  0x5b   :  { %4044 = vmatpush1.bf16.msra.mxu1 %v5867_v58  ;;  %4014 = vmatprep.subr.bf16.mxu0 %v5877_v62 }
  0x5c   :  { %4046 = vmatprep.subr.bf16.mxu1 %v5886_v4 }
  0x5e   :  { %4016 = vmatpush1.bf16.msra.mxu0 %v5898_v9 }
  0x5f   :  { %4048 = vmatpush1.bf16.msra.mxu1 %v5908_v14  ;;  %4018 = vmatprep.subr.bf16.mxu0 %v5918_v18 }
  0x60   :  { %4050 = vmatprep.subr.bf16.mxu1 %v5927_v22 }
  0x62   :  { %4020 = vmatpush1.bf16.msra.mxu0 %v5933_v25 }
  0x63   :  { %4052 = vmatpush1.bf16.msra.mxu1 %v5937_v27  ;;  %4054 = vmatprep.subr.bf16.mxu0 %v5630_v38 }
  0x64   :  { %4086 = vmatprep.subr.bf16.mxu1 %v5638_v41 }
 0x118   :  { %v503_v39 = vpop.f32.mrb[0].mxu0 }
 0x119   :  { %v5013_v43 = vadd.f32 %v503_v39, %v5993_v35  ;;  %v574_v45 = vpop.f32.mrb[0].mxu1  ;;  %v505_v46 = vpop.f32.mrb[1].mxu0 }
 0x11a   :  { %v5014_v49 = vadd.f32 %v505_v46, %v5997_v37  ;;  %v576_v51 = vpop.f32.mrb[1].mxu1  ;;  %v5029_v5 = vadd.f32 %v574_v45, %v6010_v0 }
 0x11b   :  { %v3677_v52 = vmul.f32 -1.442695, %v5013_v43  ;;  %v5030_v61 = vadd.f32 %v576_v51, %v6004_v57 }
 0x11c   :  { %v3678_v55 = vmul.f32 -1.442695, %v5014_v49 }
 0x11d   :  { %5142 = vpow2.f32 %v3677_v52  ;;  %v3679_v1 = vmul.f32 -1.442695, %v5030_v61 }
 0x11e   :  { %5144 = vpow2.f32 %v3678_v55 }
 0x11f   :  { %5146 = vpow2.f32 %v3679_v1 }
 0x120   :  { %5148 = vtanh.f32 %v5029_v5 }
 0x127   :  { %v5143_v7 = vpop.eup %5142 }
 0x128   :  { %v5145_v8 = vpop.eup %5144  ;;  %v586_v11 = vadd.f32 1.0, %v5143_v7 }
 0x129   :  { %v592_v12 = vadd.f32 1.0, %v5145_v8  ;;  %v5147_v15 = vpop.eup %5146 }
 0x12a   :  { %5150 = vrcp.f32 %v586_v11  ;;  %v5149_v17 = vpop.eup %5148  ;;  %v599_v28 = vadd.f32 1.0, %v5147_v15 }
 0x12b   :  { %5152 = vrcp.f32 %v592_v12 }
 0x12c   :  { %5154 = vrcp.f32 %v599_v28 }
 0x134   :  { %v5151_v20 = vpop.eup %5150 }
 0x135   :  { %v5153_v21 = vpop.eup %5152  ;;  %v603_v24 = vmul.f32 %v5151_v20, %v5149_v17 }
 0x136   :  { %v602_v39 = vmul.f32 0.0, %v5153_v21  ;;  %v5155_v43 = vpop.eup %5154 }
 0x138   :  { %v6013_v33 = vadd.f32 %v603_v24, %v602_v39 }
 0x13a   :  { %5156 = vtanh.f32 %v6013_v33 }
 0x144   :  { %v5157_v45 = vpop.eup %5156 }
 0x145   :  { %v6016_v46 = vmul.f32 %v5157_v45, %v5155_v43 }
 0x147   :  { %678 = vmatmul.mubr.f32.vlgmr.msra.gmra.mrb[2].mxu0 %v6016_v46  ;;  %749 = vmatmul.mubr.f32.vlgmr.msra.gmra.mrb[2].mxu1 %v6016_v46 }
 0x148   :  { %4056 = vmatpush1.bf16.msra.mxu0 %v5655_v47  ;;  %4088 = vmatpush1.bf16.msra.mxu1 %v5664_v50 }
 0x149   :  { %4058 = vmatprep.subr.bf16.mxu0 %v5673_v53  ;;  %4090 = vmatprep.subr.bf16.mxu1 %v5681_v56 }
 0x14a   :  { %854 = vmatprep.mubr.f32.mxu0 %v5398_v3  ;;  %925 = vmatprep.mubr.f32.mxu1 %v5398_v3 }
 0x14c   :  { %4060 = vmatpush1.bf16.msra.mxu0 %v5693_v60  ;;  %4092 = vmatpush1.bf16.msra.mxu1 %v5703_v63 }
 0x14d   :  { %4062 = vmatprep.subr.bf16.mxu0 %v5713_v2  ;;  %4094 = vmatprep.subr.bf16.mxu1 %v5722_v6 }
 0x150   :  { %4064 = vmatpush1.bf16.msra.mxu0 %v5734_v10  ;;  %4096 = vmatpush1.bf16.msra.mxu1 %v5744_v13 }
 0x151   :  { %4066 = vmatprep.subr.bf16.mxu0 %v5754_v16  ;;  %4098 = vmatprep.subr.bf16.mxu1 %v5763_v19 }
 0x154   :  { %4068 = vmatpush1.bf16.msra.mxu0 %v5775_v23  ;;  %4100 = vmatpush1.bf16.msra.mxu1 %v5785_v26 }
 0x155   :  { %4070 = vmatprep.subr.bf16.mxu0 %v5795_v29  ;;  %4102 = vmatprep.subr.bf16.mxu1 %v5804_v32 }
 0x158   :  { %4072 = vmatpush1.bf16.msra.mxu0 %v5816_v36  ;;  %4104 = vmatpush1.bf16.msra.mxu1 %v5826_v40 }
 0x159   :  { %4074 = vmatprep.subr.bf16.mxu0 %v5836_v44  ;;  %4106 = vmatprep.subr.bf16.mxu1 %v5845_v48 }
 0x15c   :  { %4076 = vmatpush1.bf16.msra.mxu0 %v5857_v54  ;;  %4108 = vmatpush1.bf16.msra.mxu1 %v5867_v58 }
 0x15d   :  { %4078 = vmatprep.subr.bf16.mxu0 %v5877_v62  ;;  %4110 = vmatprep.subr.bf16.mxu1 %v5886_v4 }
 0x160   :  { %4080 = vmatpush1.bf16.msra.mxu0 %v5898_v9  ;;  %4112 = vmatpush1.bf16.msra.mxu1 %v5908_v14 }
 0x161   :  { %4082 = vmatprep.subr.bf16.mxu0 %v5918_v18  ;;  %4114 = vmatprep.subr.bf16.mxu1 %v5927_v22 }
 0x164   :  { %4084 = vmatpush1.bf16.msra.mxu0 %v5933_v25  ;;  %4116 = vmatpush1.bf16.msra.mxu1 %v5937_v27 }
 0x165   :  { %4118 = vmatprep.subr.bf16.mxu0 %v5630_v38  ;;  %4150 = vmatprep.subr.bf16.mxu1 %v5638_v41 }
 0x21a   :  { %v679_v49 = vpop.f32.mrb[2].mxu0  ;;  %v750_v51 = vpop.f32.mrb[2].mxu1 }
 0x21b   :  { %v5015_v52 = vadd.f32 %v679_v49, %v5993_v35  ;;  %v681_v55 = vpop.f32.mrb[3].mxu0  ;;  %v752_v61 = vpop.f32.mrb[3].mxu1  ;;  %v5031_v12 = vadd.f32 %v750_v51, %v6010_v0 }
 0x21c   :  { %v5016_v1 = vadd.f32 %v681_v55, %v5997_v37  ;;  %v5032_v8 = vadd.f32 %v752_v61, %v6004_v57 }
 0x21d   :  { %v3680_v5 = vmul.f32 -1.442695, %v5015_v52 }
 0x21e   :  { %v3681_v7 = vmul.f32 -1.442695, %v5016_v1  ;;  %v3682_v11 = vmul.f32 -1.442695, %v5032_v8 }
 0x21f   :  { %5158 = vpow2.f32 %v3680_v5 }
 0x220   :  { %5160 = vpow2.f32 %v3681_v7 }
 0x221   :  { %5162 = vpow2.f32 %v3682_v11 }
 0x222   :  { %5164 = vtanh.f32 %v5031_v12 }
 0x229   :  { %v5159_v15 = vpop.eup %5158 }
 0x22a   :  { %v5161_v17 = vpop.eup %5160  ;;  %v762_v20 = vadd.f32 1.0, %v5159_v15 }
 0x22b   :  { %v768_v21 = vadd.f32 1.0, %v5161_v17  ;;  %v5163_v24 = vpop.eup %5162 }
 0x22c   :  { %5166 = vrcp.f32 %v762_v20  ;;  %v5165_v28 = vpop.eup %5164  ;;  %v775_v49 = vadd.f32 1.0, %v5163_v24 }
 0x22d   :  { %5168 = vrcp.f32 %v768_v21 }
 0x22e   :  { %5170 = vrcp.f32 %v775_v49 }
 0x236   :  { %v5167_v39 = vpop.eup %5166 }
 0x237   :  { %v5169_v43 = vpop.eup %5168  ;;  %v779_v45 = vmul.f32 %v5167_v39, %v5165_v28 }
 0x238   :  { %v778_v52 = vmul.f32 %v5169_v43, %v6013_v33  ;;  %v5171_v51 = vpop.eup %5170 }
 0x23a   :  { %v6059_v55 = vadd.f32 %v779_v45, %v778_v52 }
 0x23c   :  { %5172 = vtanh.f32 %v6059_v55 }
 0x246   :  { %v5173_v61 = vpop.eup %5172 }
 0x247   :  { %v6062_v1 = vmul.f32 %v5173_v61, %v5171_v51 }
 0x249   :  { %855 = vmatmul.mubr.f32.vlgmr.msra.gmra.mrb[4].mxu0 %v6062_v1  ;;  %926 = vmatmul.mubr.f32.vlgmr.msra.gmra.mrb[4].mxu1 %v6062_v1 }
 0x24a   :  { %4120 = vmatpush1.bf16.msra.mxu0 %v5655_v47  ;;  %4152 = vmatpush1.bf16.msra.mxu1 %v5664_v50 }
 0x24b   :  { %4122 = vmatprep.subr.bf16.mxu0 %v5673_v53  ;;  %4154 = vmatprep.subr.bf16.mxu1 %v5681_v56 }
 0x24c   :  { %1031 = vmatprep.mubr.f32.mxu0 %v5398_v3  ;;  %1102 = vmatprep.mubr.f32.mxu1 %v5398_v3 }
 0x24e   :  { %4124 = vmatpush1.bf16.msra.mxu0 %v5693_v60  ;;  %4156 = vmatpush1.bf16.msra.mxu1 %v5703_v63 }
 0x24f   :  { %4126 = vmatprep.subr.bf16.mxu0 %v5713_v2  ;;  %4158 = vmatprep.subr.bf16.mxu1 %v5722_v6 }
 0x252   :  { %4128 = vmatpush1.bf16.msra.mxu0 %v5734_v10  ;;  %4160 = vmatpush1.bf16.msra.mxu1 %v5744_v13 }
 0x253   :  { %4130 = vmatprep.subr.bf16.mxu0 %v5754_v16  ;;  %4162 = vmatprep.subr.bf16.mxu1 %v5763_v19 }
 0x256   :  { %4132 = vmatpush1.bf16.msra.mxu0 %v5775_v23  ;;  %4164 = vmatpush1.bf16.msra.mxu1 %v5785_v26 }
 0x257   :  { %4134 = vmatprep.subr.bf16.mxu0 %v5795_v29  ;;  %4166 = vmatprep.subr.bf16.mxu1 %v5804_v32 }
 0x25a   :  { %4136 = vmatpush1.bf16.msra.mxu0 %v5816_v36  ;;  %4168 = vmatpush1.bf16.msra.mxu1 %v5826_v40 }
 0x25b   :  { %4138 = vmatprep.subr.bf16.mxu0 %v5836_v44  ;;  %4170 = vmatprep.subr.bf16.mxu1 %v5845_v48 }
 0x25e   :  { %4140 = vmatpush1.bf16.msra.mxu0 %v5857_v54  ;;  %4172 = vmatpush1.bf16.msra.mxu1 %v5867_v58 }
 0x25f   :  { %4142 = vmatprep.subr.bf16.mxu0 %v5877_v62  ;;  %4174 = vmatprep.subr.bf16.mxu1 %v5886_v4 }
 0x262   :  { %4144 = vmatpush1.bf16.msra.mxu0 %v5898_v9  ;;  %4176 = vmatpush1.bf16.msra.mxu1 %v5908_v14 }
 0x263   :  { %4146 = vmatprep.subr.bf16.mxu0 %v5918_v18  ;;  %4178 = vmatprep.subr.bf16.mxu1 %v5927_v22 }
 0x266   :  { %4148 = vmatpush1.bf16.msra.mxu0 %v5933_v25  ;;  %4180 = vmatpush1.bf16.msra.mxu1 %v5937_v27 }
 0x267   :  { %4182 = vmatprep.subr.bf16.mxu0 %v5630_v38  ;;  %4214 = vmatprep.subr.bf16.mxu1 %v5638_v41 }
 0x31c   :  { %v856_v33 = vpop.f32.mrb[4].mxu0  ;;  %v927_v5 = vpop.f32.mrb[4].mxu1 }
 0x31d   :  { %v5017_v7 = vadd.f32 %v856_v33, %v5993_v35  ;;  %v858_v8 = vpop.f32.mrb[5].mxu0  ;;  %v929_v11 = vpop.f32.mrb[5].mxu1  ;;  %v5033_v24 = vadd.f32 %v927_v5, %v6010_v0 }
 0x31e   :  { %v5018_v12 = vadd.f32 %v858_v8, %v5997_v37  ;;  %v5034_v20 = vadd.f32 %v929_v11, %v6004_v57 }
 0x31f   :  { %v3683_v15 = vmul.f32 -1.442695, %v5017_v7 }
 0x320   :  { %v3684_v17 = vmul.f32 -1.442695, %v5018_v12  ;;  %v3685_v21 = vmul.f32 -1.442695, %v5034_v20 }
 0x321   :  { %5174 = vpow2.f32 %v3683_v15 }
 0x322   :  { %5176 = vpow2.f32 %v3684_v17 }
 0x323   :  { %5178 = vpow2.f32 %v3685_v21 }
 0x324   :  { %5180 = vtanh.f32 %v5033_v24 }
 0x32b   :  { %v5175_v28 = vpop.eup %5174 }
 0x32c   :  { %v5177_v39 = vpop.eup %5176  ;;  %v939_v43 = vadd.f32 1.0, %v5175_v28 }
 0x32d   :  { %v945_v45 = vadd.f32 1.0, %v5177_v39  ;;  %v5179_v49 = vpop.eup %5178 }
 0x32e   :  { %5182 = vrcp.f32 %v939_v43  ;;  %v5181_v52 = vpop.eup %5180  ;;  %v952_v7 = vadd.f32 1.0, %v5179_v49 }
 0x32f   :  { %5184 = vrcp.f32 %v945_v45 }
 0x330   :  { %5186 = vrcp.f32 %v952_v7 }
 0x338   :  { %v5183_v51 = vpop.eup %5182 }
 0x339   :  { %v5185_v61 = vpop.eup %5184  ;;  %v956_v33 = vmul.f32 %v5183_v51, %v5181_v52 }
 0x33a   :  { %v955_v8 = vmul.f32 %v5185_v61, %v6059_v55  ;;  %v5187_v5 = vpop.eup %5186 }
 0x33c   :  { %v6105_v11 = vadd.f32 %v956_v33, %v955_v8 }
 0x33e   :  { %5188 = vtanh.f32 %v6105_v11 }
 0x348   :  { %v5189_v12 = vpop.eup %5188 }
 0x349   :  { %v6108_v15 = vmul.f32 %v5189_v12, %v5187_v5 }
 0x34b   :  { %1032 = vmatmul.mubr.f32.vlgmr.msra.gmra.mrb[6].mxu0 %v6108_v15  ;;  %1103 = vmatmul.mubr.f32.vlgmr.msra.gmra.mrb[6].mxu1 %v6108_v15 }
 0x34c   :  { %4184 = vmatpush1.bf16.msra.mxu0 %v5655_v47  ;;  %4216 = vmatpush1.bf16.msra.mxu1 %v5664_v50 }
 0x34d   :  { %4186 = vmatprep.subr.bf16.mxu0 %v5673_v53  ;;  %4218 = vmatprep.subr.bf16.mxu1 %v5681_v56 }
 0x34e   :  { %1208 = vmatprep.mubr.f32.mxu0 %v5398_v3  ;;  %1279 = vmatprep.mubr.f32.mxu1 %v5398_v3 }
 0x350   :  { %4188 = vmatpush1.bf16.msra.mxu0 %v5693_v60  ;;  %4220 = vmatpush1.bf16.msra.mxu1 %v5703_v63 }
 0x351   :  { %4190 = vmatprep.subr.bf16.mxu0 %v5713_v2  ;;  %4222 = vmatprep.subr.bf16.mxu1 %v5722_v6 }
 0x354   :  { %4192 = vmatpush1.bf16.msra.mxu0 %v5734_v10  ;;  %4224 = vmatpush1.bf16.msra.mxu1 %v5744_v13 }
 0x355   :  { %4194 = vmatprep.subr.bf16.mxu0 %v5754_v16  ;;  %4226 = vmatprep.subr.bf16.mxu1 %v5763_v19 }
 0x358   :  { %4196 = vmatpush1.bf16.msra.mxu0 %v5775_v23  ;;  %4228 = vmatpush1.bf16.msra.mxu1 %v5785_v26 }
 0x359   :  { %4198 = vmatprep.subr.bf16.mxu0 %v5795_v29  ;;  %4230 = vmatprep.subr.bf16.mxu1 %v5804_v32 }
 0x35c   :  { %4200 = vmatpush1.bf16.msra.mxu0 %v5816_v36  ;;  %4232 = vmatpush1.bf16.msra.mxu1 %v5826_v40 }
 0x35d   :  { %4202 = vmatprep.subr.bf16.mxu0 %v5836_v44  ;;  %4234 = vmatprep.subr.bf16.mxu1 %v5845_v48 }
 0x360   :  { %4204 = vmatpush1.bf16.msra.mxu0 %v5857_v54  ;;  %4236 = vmatpush1.bf16.msra.mxu1 %v5867_v58 }
 0x361   :  { %4206 = vmatprep.subr.bf16.mxu0 %v5877_v62  ;;  %4238 = vmatprep.subr.bf16.mxu1 %v5886_v4 }
 0x364   :  { %4208 = vmatpush1.bf16.msra.mxu0 %v5898_v9  ;;  %4240 = vmatpush1.bf16.msra.mxu1 %v5908_v14 }
 0x365   :  { %4210 = vmatprep.subr.bf16.mxu0 %v5918_v18  ;;  %4242 = vmatprep.subr.bf16.mxu1 %v5927_v22 }
 0x368   :  { %4212 = vmatpush1.bf16.msra.mxu0 %v5933_v25  ;;  %4244 = vmatpush1.bf16.msra.mxu1 %v5937_v27 }
 0x369   :  { %4246 = vmatprep.subr.bf16.mxu0 %v5630_v38  ;;  %4278 = vmatprep.subr.bf16.mxu1 %v5638_v41 }
 0x41e   :  { %v1033_v55 = vpop.f32.mrb[6].mxu0  ;;  %v1104_v17 = vpop.f32.mrb[6].mxu1 }
 0x41f   :  { %v5019_v20 = vadd.f32 %v1033_v55, %v5993_v35  ;;  %v1035_v21 = vpop.f32.mrb[7].mxu0  ;;  %v1106_v24 = vpop.f32.mrb[7].mxu1  ;;  %v5035_v52 = vadd.f32 %v1104_v17, %v6010_v0 }
 0x420   :  { %v5020_v28 = vadd.f32 %v1035_v21, %v5997_v37  ;;  %v5036_v45 = vadd.f32 %v1106_v24, %v6004_v57 }
 0x421   :  { %v3686_v39 = vmul.f32 -1.442695, %v5019_v20 }
 0x422   :  { %v3687_v43 = vmul.f32 -1.442695, %v5020_v28  ;;  %v3688_v49 = vmul.f32 -1.442695, %v5036_v45 }
 0x423   :  { %5190 = vpow2.f32 %v3686_v39 }
 0x424   :  { %5192 = vpow2.f32 %v3687_v43 }
 0x425   :  { %5194 = vpow2.f32 %v3688_v49 }
 0x426   :  { %5196 = vtanh.f32 %v5035_v52 }
 0x42d   :  { %v5191_v51 = vpop.eup %5190 }
 0x42e   :  { %v5193_v61 = vpop.eup %5192  ;;  %v1116_v33 = vadd.f32 1.0, %v5191_v51 }
 0x42f   :  { %v1122_v7 = vadd.f32 1.0, %v5193_v61  ;;  %v5195_v8 = vpop.eup %5194 }
 0x430   :  { %5198 = vrcp.f32 %v1116_v33  ;;  %v5197_v5 = vpop.eup %5196  ;;  %v1129_v21 = vadd.f32 1.0, %v5195_v8 }
 0x431   :  { %5200 = vrcp.f32 %v1122_v7 }
 0x432   :  { %5202 = vrcp.f32 %v1129_v21 }
 0x43a   :  { %v5199_v12 = vpop.eup %5198 }
 0x43b   :  { %v5201_v55 = vpop.eup %5200  ;;  %v1133_v20 = vmul.f32 %v5199_v12, %v5197_v5 }
 0x43c   :  { %v1132_v28 = vmul.f32 %v5201_v55, %v6105_v11  ;;  %v5203_v17 = vpop.eup %5202 }
 0x43e   :  { %v6151_v24 = vadd.f32 %v1133_v20, %v1132_v28 }
 0x440   :  { %5204 = vtanh.f32 %v6151_v24 }
 0x44a   :  { %v5205_v39 = vpop.eup %5204 }
 0x44b   :  { %v6154_v43 = vmul.f32 %v5205_v39, %v5203_v17 }
 0x44d   :  { %1209 = vmatmul.mubr.f32.vlgmr.msra.gmra.mrb[8].mxu0 %v6154_v43  ;;  %1280 = vmatmul.mubr.f32.vlgmr.msra.gmra.mrb[8].mxu1 %v6154_v43 }
 0x44e   :  { %4248 = vmatpush1.bf16.msra.mxu0 %v5655_v47  ;;  %4280 = vmatpush1.bf16.msra.mxu1 %v5664_v50 }
 0x44f   :  { %4250 = vmatprep.subr.bf16.mxu0 %v5673_v53  ;;  %4282 = vmatprep.subr.bf16.mxu1 %v5681_v56 }
 0x450   :  { %1385 = vmatprep.mubr.f32.mxu0 %v5398_v3  ;;  %1456 = vmatprep.mubr.f32.mxu1 %v5398_v3 }
 0x452   :  { %4252 = vmatpush1.bf16.msra.mxu0 %v5693_v60  ;;  %4284 = vmatpush1.bf16.msra.mxu1 %v5703_v63 }
 0x453   :  { %4254 = vmatprep.subr.bf16.mxu0 %v5713_v2  ;;  %4286 = vmatprep.subr.bf16.mxu1 %v5722_v6 }
 0x456   :  { %4256 = vmatpush1.bf16.msra.mxu0 %v5734_v10  ;;  %4288 = vmatpush1.bf16.msra.mxu1 %v5744_v13 }
 0x457   :  { %4258 = vmatprep.subr.bf16.mxu0 %v5754_v16  ;;  %4290 = vmatprep.subr.bf16.mxu1 %v5763_v19 }
 0x45a   :  { %4260 = vmatpush1.bf16.msra.mxu0 %v5775_v23  ;;  %4292 = vmatpush1.bf16.msra.mxu1 %v5785_v26 }
 0x45b   :  { %4262 = vmatprep.subr.bf16.mxu0 %v5795_v29  ;;  %4294 = vmatprep.subr.bf16.mxu1 %v5804_v32 }
 0x45e   :  { %4264 = vmatpush1.bf16.msra.mxu0 %v5816_v36  ;;  %4296 = vmatpush1.bf16.msra.mxu1 %v5826_v40 }
 0x45f   :  { %4266 = vmatprep.subr.bf16.mxu0 %v5836_v44  ;;  %4298 = vmatprep.subr.bf16.mxu1 %v5845_v48 }
 0x462   :  { %4268 = vmatpush1.bf16.msra.mxu0 %v5857_v54  ;;  %4300 = vmatpush1.bf16.msra.mxu1 %v5867_v58 }
 0x463   :  { %4270 = vmatprep.subr.bf16.mxu0 %v5877_v62  ;;  %4302 = vmatprep.subr.bf16.mxu1 %v5886_v4 }
 0x466   :  { %4272 = vmatpush1.bf16.msra.mxu0 %v5898_v9  ;;  %4304 = vmatpush1.bf16.msra.mxu1 %v5908_v14 }
 0x467   :  { %4274 = vmatprep.subr.bf16.mxu0 %v5918_v18  ;;  %4306 = vmatprep.subr.bf16.mxu1 %v5927_v22 }
 0x46a   :  { %4276 = vmatpush1.bf16.msra.mxu0 %v5933_v25  ;;  %4308 = vmatpush1.bf16.msra.mxu1 %v5937_v27 }
 0x46b   :  { %4310 = vmatprep.subr.bf16.mxu0 %v5630_v38  ;;  %4342 = vmatprep.subr.bf16.mxu1 %v5638_v41 }
 0x520   :  { %v1210_v11 = vpop.f32.mrb[8].mxu0  ;;  %v1281_v45 = vpop.f32.mrb[8].mxu1 }
 0x521   :  { %v5021_v49 = vadd.f32 %v1210_v11, %v5993_v35  ;;  %v1212_v52 = vpop.f32.mrb[9].mxu0  ;;  %v1283_v51 = vpop.f32.mrb[9].mxu1  ;;  %v5037_v12 = vadd.f32 %v1281_v45, %v6010_v0 }
 0x522   :  { %v5022_v61 = vadd.f32 %v1212_v52, %v5997_v37  ;;  %v5038_v8 = vadd.f32 %v1283_v51, %v6004_v57 }
 0x523   :  { %v3689_v33 = vmul.f32 -1.442695, %v5021_v49 }
 0x524   :  { %v3690_v7 = vmul.f32 -1.442695, %v5022_v61  ;;  %v3691_v5 = vmul.f32 -1.442695, %v5038_v8 }
 0x525   :  { %5206 = vpow2.f32 %v3689_v33 }
 0x526   :  { %5208 = vpow2.f32 %v3690_v7 }
 0x527   :  { %5210 = vpow2.f32 %v3691_v5 }
 0x528   :  { %5212 = vtanh.f32 %v5037_v12 }
 0x52f   :  { %v5207_v55 = vpop.eup %5206 }
 0x530   :  { %v5209_v20 = vpop.eup %5208  ;;  %v1293_v21 = vadd.f32 1.0, %v5207_v55 }
 0x531   :  { %v1299_v28 = vadd.f32 1.0, %v5209_v20  ;;  %v5211_v17 = vpop.eup %5210 }
 0x532   :  { %5214 = vrcp.f32 %v1293_v21  ;;  %v5213_v39 = vpop.eup %5212  ;;  %v1306_v61 = vadd.f32 1.0, %v5211_v17 }
 0x533   :  { %5216 = vrcp.f32 %v1299_v28 }
 0x534   :  { %5218 = vrcp.f32 %v1306_v61 }
 0x53c   :  { %v5215_v11 = vpop.eup %5214 }
 0x53d   :  { %v5217_v49 = vpop.eup %5216  ;;  %v1310_v52 = vmul.f32 %v5215_v11, %v5213_v39 }
 0x53e   :  { %v1309_v33 = vmul.f32 %v5217_v49, %v6151_v24  ;;  %v5219_v45 = vpop.eup %5218 }
 0x540   :  { %v6197_v51 = vadd.f32 %v1310_v52, %v1309_v33 }
 0x542   :  { %5220 = vtanh.f32 %v6197_v51 }
 0x54c   :  { %v5221_v7 = vpop.eup %5220 }
 0x54d   :  { %v6200_v8 = vmul.f32 %v5221_v7, %v5219_v45 }
 0x54f   :  { %1386 = vmatmul.mubr.f32.vlgmr.msra.gmra.mrb[10].mxu0 %v6200_v8  ;;  %1457 = vmatmul.mubr.f32.vlgmr.msra.gmra.mrb[10].mxu1 %v6200_v8 }
 0x550   :  { %4312 = vmatpush1.bf16.msra.mxu0 %v5655_v47  ;;  %4344 = vmatpush1.bf16.msra.mxu1 %v5664_v50 }
 0x551   :  { %4314 = vmatprep.subr.bf16.mxu0 %v5673_v53  ;;  %4346 = vmatprep.subr.bf16.mxu1 %v5681_v56 }
 0x552   :  { %1562 = vmatprep.mubr.f32.mxu0 %v5398_v3  ;;  %1633 = vmatprep.mubr.f32.mxu1 %v5398_v3 }
 0x554   :  { %4316 = vmatpush1.bf16.msra.mxu0 %v5693_v60  ;;  %4348 = vmatpush1.bf16.msra.mxu1 %v5703_v63 }
 0x555   :  { %4318 = vmatprep.subr.bf16.mxu0 %v5713_v2  ;;  %4350 = vmatprep.subr.bf16.mxu1 %v5722_v6 }
 0x558   :  { %4320 = vmatpush1.bf16.msra.mxu0 %v5734_v10  ;;  %4352 = vmatpush1.bf16.msra.mxu1 %v5744_v13 }
 0x559   :  { %4322 = vmatprep.subr.bf16.mxu0 %v5754_v16  ;;  %4354 = vmatprep.subr.bf16.mxu1 %v5763_v19 }
 0x55c   :  { %4324 = vmatpush1.bf16.msra.mxu0 %v5775_v23  ;;  %4356 = vmatpush1.bf16.msra.mxu1 %v5785_v26 }
 0x55d   :  { %4326 = vmatprep.subr.bf16.mxu0 %v5795_v29  ;;  %4358 = vmatprep.subr.bf16.mxu1 %v5804_v32 }
 0x560   :  { %4328 = vmatpush1.bf16.msra.mxu0 %v5816_v36  ;;  %4360 = vmatpush1.bf16.msra.mxu1 %v5826_v40 }
 0x561   :  { %4330 = vmatprep.subr.bf16.mxu0 %v5836_v44  ;;  %4362 = vmatprep.subr.bf16.mxu1 %v5845_v48 }
 0x564   :  { %4332 = vmatpush1.bf16.msra.mxu0 %v5857_v54  ;;  %4364 = vmatpush1.bf16.msra.mxu1 %v5867_v58 }
 0x565   :  { %4334 = vmatprep.subr.bf16.mxu0 %v5877_v62  ;;  %4366 = vmatprep.subr.bf16.mxu1 %v5886_v4 }
 0x568   :  { %4336 = vmatpush1.bf16.msra.mxu0 %v5898_v9  ;;  %4368 = vmatpush1.bf16.msra.mxu1 %v5908_v14 }
 0x569   :  { %4338 = vmatprep.subr.bf16.mxu0 %v5918_v18  ;;  %4370 = vmatprep.subr.bf16.mxu1 %v5927_v22 }
 0x56c   :  { %4340 = vmatpush1.bf16.msra.mxu0 %v5933_v25  ;;  %4372 = vmatpush1.bf16.msra.mxu1 %v5937_v27 }
 0x56d   :  { %4374 = vmatprep.subr.bf16.mxu0 %v5630_v38  ;;  %4406 = vmatprep.subr.bf16.mxu1 %v5638_v41 }
 0x622   :  { %v1387_v24 = vpop.f32.mrb[10].mxu0  ;;  %v1458_v5 = vpop.f32.mrb[10].mxu1 }
 0x623   :  { %v5023_v12 = vadd.f32 %v1387_v24, %v5993_v35  ;;  %v1389_v55 = vpop.f32.mrb[11].mxu0  ;;  %v1460_v20 = vpop.f32.mrb[11].mxu1  ;;  %v5039_v49 = vadd.f32 %v1458_v5, %v6010_v0 }
 0x624   :  { %v5024_v21 = vadd.f32 %v1389_v55, %v5997_v37  ;;  %v5040_v39 = vadd.f32 %v1460_v20, %v6004_v57 }
 0x625   :  { %v3692_v28 = vmul.f32 -1.442695, %v5023_v12 }
 0x626   :  { %v3693_v17 = vmul.f32 -1.442695, %v5024_v21  ;;  %v3694_v11 = vmul.f32 -1.442695, %v5040_v39  ;;  %v3703_v39 = vld [vmem:[%s7150_s1 + $0x210] sm:$0xff] }
 0x627   :  { %5222 = vpow2.f32 %v3692_v28 }
 0x628   :  { %5224 = vpow2.f32 %v3693_v17 }
 0x629   :  { %5226 = vpow2.f32 %v3694_v11  ;;  %v3707_v11 = vld [vmem:[%s7150_s1 + $0x230] sm:$0xff] }
 0x62a   :  { %5228 = vtanh.f32 %v5039_v49  ;;  %v3710_v49 = vld [vmem:[%s7150_s1 + $0x248] sm:$0xff] }
 0x631   :  { %v5223_v38 = vpop.eup %5222 }
 0x632   :  { %v5225_v52 = vpop.eup %5224  ;;  %v1470_v41 = vadd.f32 1.0, %v5223_v38  ;;  %v3714_v38 = vld [vmem:[%s7150_s1 + $0x268] sm:$0xff] }
 0x633   :  { %v1476_v61 = vadd.f32 1.0, %v5225_v52  ;;  %v5227_v33 = vpop.eup %5226  ;;  %v3712_v52 = vld [vmem:[%s7150_s1 + $0x258] sm:$0xff] }
 0x634   :  { %5230 = vrcp.f32 %v1470_v41  ;;  %v5229_v45 = vpop.eup %5228  ;;  %v1483_v55 = vadd.f32 1.0, %v5227_v33  ;;  %v3716_v41 = vld [vmem:[%s7150_s1 + $0x278] sm:$0xff] }
 0x635   :  { %5232 = vrcp.f32 %v1476_v61 }
 0x636   :  { %5234 = vrcp.f32 %v1483_v55 }
 0x63e   :  { %v5231_v7 = vpop.eup %5230 }
 0x63f   :  { %v5233_v24 = vpop.eup %5232  ;;  %v1487_v12 = vmul.f32 %v5231_v7, %v5229_v45  ;;  %v4471_v7 = vpack.c.bf16 %v3707_v11, %v3703_v39  ;;  %v3733_v39 = vld [vmem:[%s7150_s1 + $0x300] sm:$0xff] }
 0x640   :  { %v1486_v21 = vmul.f32 %v5233_v24, %v6197_v51  ;;  %v5235_v5 = vpop.eup %5234  ;;  %v3705_v51 = vld [vmem:[%s7150_s1 + $0x220] sm:$0xff] }
 0x641   :  { %v3709_v24 = vld [vmem:[%s7150_s1 + $0x240] sm:$0xff] }
 0x642   :  { %v6243_v20 = vadd.f32 %v1487_v12, %v1486_v21  ;;  %v3713_v12 = vld [vmem:[%s7150_s1 + $0x260] sm:$0xff]  ;;  %v4441_v21 = vpack.c.bf16 %v3714_v38, %v3710_v49 }
 0x643   :  { %v3737_v11 = vld [vmem:[%s7150_s1 + $0x320] sm:$0xff] }
 0x644   :  { %5236 = vtanh.f32 %v6243_v20 }
 0x64e   :  { %v5237_v28 = vpop.eup %5236 }
 0x64f   :  { %v6246_v17 = vmul.f32 %v5237_v28, %v5235_v5  ;;  %v3711_v5 = vld [vmem:[%s7150_s1 + $0x250] sm:$0xff] }
 0x650   :  { %v3715_v28 = vld [vmem:[%s7150_s1 + $0x270] sm:$0xff] }
 0x651   :  { %1563 = vmatmul.mubr.f32.vlgmr.msra.gmra.mrb[12].mxu0 %v6246_v17  ;;  %1634 = vmatmul.mubr.f32.vlgmr.msra.gmra.mrb[12].mxu1 %v6246_v17 }
 0x652   :  { %4376 = vmatpush1.bf16.msra.mxu0 %v5655_v47  ;;  %4408 = vmatpush1.bf16.msra.mxu1 %v5664_v50  ;;  %v3702_v47 = vld [vmem:[%s7150_s1 + $0x208] sm:$0xff] }
 0x653   :  { %4378 = vmatprep.subr.bf16.mxu0 %v5673_v53  ;;  %4410 = vmatprep.subr.bf16.mxu1 %v5681_v56  ;;  %v3706_v50 = vld [vmem:[%s7150_s1 + $0x228] sm:$0xff]  ;;  %v3704_v53 = vld [vmem:[%s7150_s1 + $0x218] sm:$0xff] }
 0x654   :  { %1739 = vmatprep.mubr.f32.mxu0 %v5398_v3  ;;  %1810 = vmatprep.mubr.f32.mxu1 %v5398_v3  ;;  %v4437_v56 = vpack.c.bf16 %v3706_v50, %v3702_v47  ;;  %v3718_v47 = vld [vmem:[%s7150_s1 + $0x288] sm:$0xff] }
 0x655   :  { %v3722_v50 = vld [vmem:[%s7150_s1 + $0x2a8] sm:$0xff] }
 0x656   :  { %4380 = vmatpush1.bf16.msra.mxu0 %v5693_v60  ;;  %4412 = vmatpush1.bf16.msra.mxu1 %v5703_v63  ;;  %v3708_v60 = vld [vmem:[%s7150_s1 + $0x238] sm:$0xff] }
 0x657   :  { %4382 = vmatprep.subr.bf16.mxu0 %v5713_v2  ;;  %4414 = vmatprep.subr.bf16.mxu1 %v5722_v6  ;;  %v4469_v63 = vpack.c.bf16 %v3708_v60, %v3704_v53  ;;  %v3720_v53 = vld [vmem:[%s7150_s1 + $0x298] sm:$0xff]  ;;  %v4443_v60 = vpack.c.bf16 %v3713_v12, %v3709_v24  ;;  %v4455_v24 = vpack.c.bf16 %v3737_v11, %v3733_v39  ;;  %v3767_v39 = vld [vmem:[%s7151_s2 + $0x210] sm:$0xff] }
 0x658   :  { %v3771_v11 = vld [vmem:[%s7151_s2 + $0x230] sm:$0xff] }
 0x65a   :  { %4384 = vmatpush1.bf16.msra.mxu0 %v5734_v10  ;;  %4416 = vmatpush1.bf16.msra.mxu1 %v5744_v13 }
 0x65b   :  { %4386 = vmatprep.subr.bf16.mxu0 %v5754_v16  ;;  %4418 = vmatprep.subr.bf16.mxu1 %v5763_v19 }
 0x65e   :  { %4388 = vmatpush1.bf16.msra.mxu0 %v5775_v23  ;;  %4420 = vmatpush1.bf16.msra.mxu1 %v5785_v26 }
 0x65f   :  { %4390 = vmatprep.subr.bf16.mxu0 %v5795_v29  ;;  %4422 = vmatprep.subr.bf16.mxu1 %v5804_v32 }
 0x662   :  { %4392 = vmatpush1.bf16.msra.mxu0 %v5816_v36  ;;  %4424 = vmatpush1.bf16.msra.mxu1 %v5826_v40 }
 0x663   :  { %4394 = vmatprep.subr.bf16.mxu0 %v5836_v44  ;;  %4426 = vmatprep.subr.bf16.mxu1 %v5845_v48 }
 0x666   :  { %4396 = vmatpush1.bf16.msra.mxu0 %v5857_v54  ;;  %4428 = vmatpush1.bf16.msra.mxu1 %v5867_v58 }
 0x667   :  { %4398 = vmatprep.subr.bf16.mxu0 %v5877_v62  ;;  %4430 = vmatprep.subr.bf16.mxu1 %v5886_v4 }
 0x66a   :  { %4400 = vmatpush1.bf16.msra.mxu0 %v5898_v9  ;;  %4432 = vmatpush1.bf16.msra.mxu1 %v5908_v14 }
 0x66b   :  { %4402 = vmatprep.subr.bf16.mxu0 %v5918_v18  ;;  %4434 = vmatprep.subr.bf16.mxu1 %v5927_v22 }
 0x66e   :  { %4404 = vmatpush1.bf16.msra.mxu0 %v5933_v25  ;;  %4436 = vmatpush1.bf16.msra.mxu1 %v5937_v27  ;;  %v3701_v27 = vld [vmem:[%s7150_s1 + $0x200] sm:$0xff] }
 0x66f   :  { %4438 = vmatprep.subr.bf16.mxu0 %v4437_v56  ;;  %4470 = vmatprep.subr.bf16.mxu1 %v4469_v63  ;;  %v4439_v45 = vpack.c.bf16 %v3705_v51, %v3701_v27  ;;  %v3724_v56 = vld [vmem:[%s7150_s1 + $0x2b8] sm:$0xff]  ;;  %v4475_v63 = vpack.c.bf16 %v3715_v28, %v3711_v5 }
 0x724   :  { %v1564_v2 = vpop.f32.mrb[12].mxu0  ;;  %v1635_v6 = vpop.f32.mrb[12].mxu1 }
 0x725   :  { %v5025_v10 = vadd.f32 %v1564_v2, %v5993_v35  ;;  %v1566_v13 = vpop.f32.mrb[13].mxu0  ;;  %v1637_v16 = vpop.f32.mrb[13].mxu1  ;;  %v5041_v36 = vadd.f32 %v1635_v6, %v6010_v0  ;;  %v3717_v2 = vld [vmem:[%s7150_s1 + $0x280] sm:$0xff] }
 0x726   :  { %v5026_v19 = vadd.f32 %v1566_v13, %v5997_v37  ;;  %v5042_v29 = vadd.f32 %v1637_v16, %v6004_v57  ;;  %v3721_v6 = vld [vmem:[%s7150_s1 + $0x2a0] sm:$0xff]  ;;  %v4477_v13 = vpack.c.bf16 %v3724_v56, %v3720_v53  ;;  %v3719_v16 = vld [vmem:[%s7150_s1 + $0x290] sm:$0xff]  ;;  %v3750_v53 = vld [vmem:[%s7150_s1 + $0x388] sm:$0xff] }
 0x727   :  { %v3695_v23 = vmul.f32 -1.442695, %v5025_v10  ;;  %v4445_v10 = vpack.c.bf16 %v3722_v50, %v3718_v47  ;;  %v3743_v47 = vld [vmem:[%s7150_s1 + $0x350] sm:$0xff]  ;;  %v3754_v56 = vld [vmem:[%s7150_s1 + $0x3a8] sm:$0xff] }
 0x728   :  { %v3696_v26 = vmul.f32 -1.442695, %v5026_v19  ;;  %v3697_v32 = vmul.f32 -1.442695, %v5042_v29  ;;  %v3723_v19 = vld [vmem:[%s7150_s1 + $0x2b0] sm:$0xff]  ;;  %v3728_v29 = vld [vmem:[%s7150_s1 + $0x2d8] sm:$0xff] }
 0x729   :  { %5238 = vpow2.f32 %v3695_v23  ;;  %v3726_v23 = vld [vmem:[%s7150_s1 + $0x2c8] sm:$0xff]  ;;  %v3747_v50 = vld [vmem:[%s7150_s1 + $0x370] sm:$0xff] }
 0x72a   :  { %5240 = vpow2.f32 %v3696_v26  ;;  %v3730_v26 = vld [vmem:[%s7150_s1 + $0x2e8] sm:$0xff] }
 0x72b   :  { %5242 = vpow2.f32 %v3697_v32  ;;  %v3732_v32 = vld [vmem:[%s7150_s1 + $0x2f8] sm:$0xff] }
 0x72c   :  { %5244 = vtanh.f32 %v5041_v36  ;;  %v4447_v36 = vpack.c.bf16 %v3721_v6, %v3717_v2  ;;  %v4491_v6 = vpack.c.bf16 %v3747_v50, %v3743_v47  ;;  %v3786_v47 = vld [vmem:[%s7151_s2 + $0x2a8] sm:$0xff]  ;;  %v3784_v50 = vld [vmem:[%s7151_s2 + $0x298] sm:$0xff] }
 0x733   :  { %v5239_v40 = vpop.eup %5238 }
 0x734   :  { %v5241_v44 = vpop.eup %5240  ;;  %v1647_v48 = vadd.f32 1.0, %v5239_v40  ;;  %v4479_v40 = vpack.c.bf16 %v3723_v19, %v3719_v16  ;;  %v4461_v16 = vpack.c.bf16 %v3754_v56, %v3750_v53  ;;  %v3788_v56 = vld [vmem:[%s7151_s2 + $0x2b8] sm:$0xff] }
 0x735   :  { %v1653_v54 = vadd.f32 1.0, %v5241_v44  ;;  %v5243_v58 = vpop.eup %5242  ;;  %v3725_v44 = vld [vmem:[%s7150_s1 + $0x2c0] sm:$0xff] }
 0x736   :  { %5246 = vrcp.f32 %v1647_v48  ;;  %v5245_v62 = vpop.eup %5244  ;;  %v1660_v18 = vadd.f32 1.0, %v5243_v58  ;;  %v3729_v48 = vld [vmem:[%s7150_s1 + $0x2e0] sm:$0xff]  ;;  %v4481_v58 = vpack.c.bf16 %v3732_v32, %v3728_v29  ;;  %v3758_v29 = vld [vmem:[%s7150_s1 + $0x3c8] sm:$0xff] }
 0x737   :  { %5248 = vrcp.f32 %v1653_v54  ;;  %v4449_v54 = vpack.c.bf16 %v3730_v26, %v3726_v23  ;;  %v4451_v27 = vpack.c.bf16 %v3729_v48, %v3725_v44  ;;  %v3751_v23 = vld [vmem:[%s7150_s1 + $0x390] sm:$0xff]  ;;  %v3762_v32 = vld [vmem:[%s7150_s1 + $0x3e8] sm:$0xff] }
 0x738   :  { %5250 = vrcp.f32 %v1660_v18  ;;  %v3736_v18 = vld [vmem:[%s7150_s1 + $0x318] sm:$0xff]  ;;  %v3755_v26 = vld [vmem:[%s7150_s1 + $0x3b0] sm:$0xff] }
 0x739   :  { %v4495_v48 = vpack.c.bf16 %v3755_v26, %v3751_v23  ;;  %v3794_v23 = vld [vmem:[%s7151_s2 + $0x2e8] sm:$0xff]  ;;  %v3792_v26 = vld [vmem:[%s7151_s2 + $0x2d8] sm:$0xff] }
 0x740   :  { %v5247_v4 = vpop.eup %5246 }
 0x741   :  { %v5249_v9 = vpop.eup %5248  ;;  %v1664_v14 = vmul.f32 %v5247_v4, %v5245_v62  ;;  %v3727_v62 = vld [vmem:[%s7150_s1 + $0x2d0] sm:$0xff] }
 0x742   :  { %v1663_v22 = vmul.f32 %v5249_v9, %v6243_v20  ;;  %v5251_v61 = vpop.eup %5250  ;;  %v4473_v20 = vpack.c.bf16 %v3716_v41, %v3712_v52  ;;  %v3731_v4 = vld [vmem:[%s7150_s1 + $0x2f0] sm:$0xff]  ;;  %v3734_v9 = vld [vmem:[%s7150_s1 + $0x308] sm:$0xff] }
 0x743   :  { %v4483_v51 = vpack.c.bf16 %v3731_v4, %v3727_v62  ;;  %v3735_v52 = vld [vmem:[%s7150_s1 + $0x310] sm:$0xff]  ;;  %v3761_v4 = vld [vmem:[%s7150_s1 + $0x3e0] sm:$0xff] }
 0x744   :  { %v6299_v25 = vadd.f32 %v1664_v14, %v1663_v22  ;;  %v3738_v14 = vld [vmem:[%s7150_s1 + $0x328] sm:$0xff]  ;;  %v3740_v22 = vld [vmem:[%s7150_s1 + $0x338] sm:$0xff]  ;;  %v3739_v41 = vld [vmem:[%s7150_s1 + $0x330] sm:$0xff] }
 0x745   :  { %v4453_v49 = vpack.c.bf16 %v3738_v14, %v3734_v9  ;;  %v4485_v38 = vpack.c.bf16 %v3740_v22, %v3736_v18  ;;  %v4487_v12 = vpack.c.bf16 %v3739_v41, %v3735_v52  ;;  %v3759_v9 = vld [vmem:[%s7150_s1 + $0x3d0] sm:$0xff]  ;;  %v3778_v52 = vld [vmem:[%s7151_s2 + $0x268] sm:$0xff]  ;;  %v3776_v41 = vld [vmem:[%s7151_s2 + $0x258] sm:$0xff] }
 0x746   :  { %5252 = vtanh.f32 %v6299_v25  ;;  %v3763_v14 = vld [vmem:[%s7150_s1 + $0x3f0] sm:$0xff] }
 0x747   :  { %v4499_v22 = vpack.c.bf16 %v3763_v14, %v3759_v9  ;;  %v3802_v9 = vld [vmem:[%s7151_s2 + $0x328] sm:$0xff]  ;;  %v3800_v14 = vld [vmem:[%s7151_s2 + $0x318] sm:$0xff] }
 0x750   :  { %v5253_v33 = vpop.eup %5252 }
 0x751   :  { %v6332_v55 = vmul.f32 %v5253_v33, %v5251_v61  ;;  %v3742_v61 = vld [vmem:[%s7150_s1 + $0x348] sm:$0xff] }
 0x752   :  { %v3746_v33 = vld [vmem:[%s7150_s1 + $0x368] sm:$0xff] }
 0x753   :  { %1740 = vmatmul.mubr.f32.vlgmr.msra.gmra.mrb[14].mxu0 %v6332_v55  ;;  %1811 = vmatmul.mubr.f32.vlgmr.msra.gmra.mrb[14].mxu1 %v6332_v55  ;;  %v4457_v5 = vpack.c.bf16 %v3746_v33, %v3742_v61  ;;  %v3780_v33 = vld [vmem:[%s7151_s2 + $0x278] sm:$0xff] }
 0x754   :  { %4440 = vmatpush1.bf16.msra.mxu0 %v4439_v45  ;;  %4472 = vmatpush1.bf16.msra.mxu1 %v4471_v7  ;;  %v3744_v45 = vld [vmem:[%s7150_s1 + $0x358] sm:$0xff] }
 0x755   :  { %4442 = vmatprep.subr.bf16.mxu0 %v4441_v21  ;;  %4474 = vmatprep.subr.bf16.mxu1 %v4473_v20  ;;  %v3748_v7 = vld [vmem:[%s7150_s1 + $0x378] sm:$0xff]  ;;  %v3741_v21 = vld [vmem:[%s7150_s1 + $0x340] sm:$0xff] }
 0x756   :  { %2072 = vmatprep.mubr.f32.mxu0 %v5398_v3  ;;  %2185 = vmatprep.mubr.f32.mxu1 %v5398_v3  ;;  %v3745_v20 = vld [vmem:[%s7150_s1 + $0x360] sm:$0xff]  ;;  %v4489_v28 = vpack.c.bf16 %v3748_v7, %v3744_v45 }
 0x757   :  { %v4459_v2 = vpack.c.bf16 %v3745_v20, %v3741_v21  ;;  %v3773_v45 = vld [vmem:[%s7151_s2 + $0x240] sm:$0xff]  ;;  %v3775_v21 = vld [vmem:[%s7151_s2 + $0x250] sm:$0xff] }
 0x758   :  { %4444 = vmatpush1.bf16.msra.mxu0 %v4443_v60  ;;  %4476 = vmatpush1.bf16.msra.mxu1 %v4475_v63  ;;  %v3752_v60 = vld [vmem:[%s7150_s1 + $0x398] sm:$0xff]  ;;  %v3777_v7 = vld [vmem:[%s7151_s2 + $0x260] sm:$0xff]  ;;  %v3779_v20 = vld [vmem:[%s7151_s2 + $0x270] sm:$0xff] }
 0x759   :  { %4446 = vmatprep.subr.bf16.mxu0 %v4445_v10  ;;  %4478 = vmatprep.subr.bf16.mxu1 %v4477_v13  ;;  %v3756_v63 = vld [vmem:[%s7150_s1 + $0x3b8] sm:$0xff]  ;;  %v3749_v10 = vld [vmem:[%s7150_s1 + $0x380] sm:$0xff] }
 0x75a   :  { %v3753_v13 = vld [vmem:[%s7150_s1 + $0x3a0] sm:$0xff]  ;;  %v4493_v19 = vpack.c.bf16 %v3756_v63, %v3752_v60 }
 0x75b   :  { %v4463_v44 = vpack.c.bf16 %v3753_v13, %v3749_v10  ;;  %v3781_v60 = vld [vmem:[%s7151_s2 + $0x280] sm:$0xff]  ;;  %v3783_v10 = vld [vmem:[%s7151_s2 + $0x290] sm:$0xff] }
 0x75c   :  { %4448 = vmatpush1.bf16.msra.mxu0 %v4447_v36  ;;  %4480 = vmatpush1.bf16.msra.mxu1 %v4479_v40  ;;  %v3760_v36 = vld [vmem:[%s7150_s1 + $0x3d8] sm:$0xff]  ;;  %v3785_v63 = vld [vmem:[%s7151_s2 + $0x2a0] sm:$0xff]  ;;  %v3787_v13 = vld [vmem:[%s7151_s2 + $0x2b0] sm:$0xff] }
 0x75d   :  { %4450 = vmatprep.subr.bf16.mxu0 %v4449_v54  ;;  %4482 = vmatprep.subr.bf16.mxu1 %v4481_v58  ;;  %v3764_v40 = vld [vmem:[%s7150_s1 + $0x3f8] sm:$0xff]  ;;  %v3757_v54 = vld [vmem:[%s7150_s1 + $0x3c0] sm:$0xff]  ;;  %v4465_v58 = vpack.c.bf16 %v3762_v32, %v3758_v29 }
 0x75e   :  { %v4497_v62 = vpack.c.bf16 %v3764_v40, %v3760_v36  ;;  %v4467_v18 = vpack.c.bf16 %v3761_v4, %v3757_v54  ;;  %v3796_v32 = vld [vmem:[%s7151_s2 + $0x2f8] sm:$0xff]  ;;  %v3789_v36 = vld [vmem:[%s7151_s2 + $0x2c0] sm:$0xff]  ;;  %v3791_v54 = vld [vmem:[%s7151_s2 + $0x2d0] sm:$0xff] }
 0x75f   :  { %v3793_v40 = vld [vmem:[%s7151_s2 + $0x2e0] sm:$0xff] }
 0x760   :  { %4452 = vmatpush1.bf16.msra.mxu0 %v4451_v27  ;;  %4484 = vmatpush1.bf16.msra.mxu1 %v4483_v51 }
 0x761   :  { %4454 = vmatprep.subr.bf16.mxu0 %v4453_v49  ;;  %4486 = vmatprep.subr.bf16.mxu1 %v4485_v38  ;;  %v6547_v49 = vpack.c.bf16 %v3771_v11, %v3767_v39  ;;  %v3774_v38 = vld [vmem:[%s7151_s2 + $0x248] sm:$0xff] }
 0x762   :  { %v6561_v61 = vpack.c.bf16 %v3778_v52, %v3774_v38  ;;  %v3806_v39 = vld [vmem:[%s7151_s2 + $0x348] sm:$0xff] }
 0x763   :  { %v3810_v11 = vld [vmem:[%s7151_s2 + $0x368] sm:$0xff] }
 0x764   :  { %4456 = vmatpush1.bf16.msra.mxu0 %v4455_v24  ;;  %4488 = vmatpush1.bf16.msra.mxu1 %v4487_v12  ;;  %v6572_v24 = vpack.c.bf16 %v3780_v33, %v3776_v41  ;;  %v6574_v12 = vpack.c.bf16 %v3777_v7, %v3773_v45  ;;  %v6700_v52 = vpack.c.bf16 %v3810_v11, %v3806_v39  ;;  %v3808_v41 = vld [vmem:[%s7151_s2 + $0x358] sm:$0xff]  ;;  %v3805_v45 = vld [vmem:[%s7151_s2 + $0x340] sm:$0xff]  ;;  %v3823_v39 = vld [vmem:[%s7151_s2 + $0x3d0] sm:$0xff] }
 0x765   :  { %4458 = vmatprep.subr.bf16.mxu0 %v4457_v5  ;;  %4490 = vmatprep.subr.bf16.mxu1 %v4489_v28  ;;  %v6583_v5 = vpack.c.bf16 %v3779_v20, %v3775_v21  ;;  %v3782_v28 = vld [vmem:[%s7151_s2 + $0x288] sm:$0xff]  ;;  %v3812_v33 = vld [vmem:[%s7151_s2 + $0x378] sm:$0xff]  ;;  %v3809_v21 = vld [vmem:[%s7151_s2 + $0x360] sm:$0xff] }
 0x766   :  { %v6597_v53 = vpack.c.bf16 %v3786_v47, %v3782_v28  ;;  %v6711_v7 = vpack.c.bf16 %v3812_v33, %v3808_v41  ;;  %v3807_v20 = vld [vmem:[%s7151_s2 + $0x350] sm:$0xff]  ;;  %v6723_v47 = vpack.c.bf16 %v3809_v21, %v3805_v45 }
 0x767   :  { %v3811_v28 = vld [vmem:[%s7151_s2 + $0x370] sm:$0xff] }
 0x768   :  { %4460 = vmatpush1.bf16.msra.mxu0 %v4459_v2  ;;  %4492 = vmatpush1.bf16.msra.mxu1 %v4491_v6  ;;  %v6608_v2 = vpack.c.bf16 %v3788_v56, %v3784_v50  ;;  %v6610_v6 = vpack.c.bf16 %v3785_v63, %v3781_v60  ;;  %v3814_v50 = vld [vmem:[%s7151_s2 + $0x388] sm:$0xff]  ;;  %v3816_v60 = vld [vmem:[%s7151_s2 + $0x398] sm:$0xff]  ;;  %v6736_v63 = vpack.c.bf16 %v3811_v28, %v3807_v20  ;;  %v3827_v11 = vld [vmem:[%s7151_s2 + $0x3f0] sm:$0xff] }
 0x769   :  { %4462 = vmatprep.subr.bf16.mxu0 %v4461_v16  ;;  %4494 = vmatprep.subr.bf16.mxu1 %v4493_v19  ;;  %v6619_v16 = vpack.c.bf16 %v3787_v13, %v3783_v10  ;;  %v3790_v19 = vld [vmem:[%s7151_s2 + $0x2c8] sm:$0xff]  ;;  %v3820_v13 = vld [vmem:[%s7151_s2 + $0x3b8] sm:$0xff]  ;;  %v6799_v41 = vpack.c.bf16 %v3827_v11, %v3823_v39 }
 0x76a   :  { %v6633_v29 = vpack.c.bf16 %v3794_v23, %v3790_v19  ;;  %v3818_v56 = vld [vmem:[%s7151_s2 + $0x3a8] sm:$0xff]  ;;  %v3813_v19 = vld [vmem:[%s7151_s2 + $0x380] sm:$0xff] }
 0x76b   :  { %v6738_v10 = vpack.c.bf16 %v3818_v56, %v3814_v50  ;;  %v3817_v23 = vld [vmem:[%s7151_s2 + $0x3a0] sm:$0xff] }
 0x76c   :  { %4464 = vmatpush1.bf16.msra.mxu0 %v4463_v44  ;;  %4496 = vmatpush1.bf16.msra.mxu1 %v4495_v48  ;;  %v6644_v44 = vpack.c.bf16 %v3796_v32, %v3792_v26  ;;  %v6646_v48 = vpack.c.bf16 %v3793_v40, %v3789_v36  ;;  %v6750_v26 = vpack.c.bf16 %v3820_v13, %v3816_v60  ;;  %v3815_v32 = vld [vmem:[%s7151_s2 + $0x390] sm:$0xff] }
 0x76d   :  { %4466 = vmatprep.subr.bf16.mxu0 %v4465_v58  ;;  %4498 = vmatprep.subr.bf16.mxu1 %v4497_v62  ;;  %v3795_v58 = vld [vmem:[%s7151_s2 + $0x2f0] sm:$0xff]  ;;  %v3798_v62 = vld [vmem:[%s7151_s2 + $0x308] sm:$0xff]  ;;  %v6759_v40 = vpack.c.bf16 %v3817_v23, %v3813_v19 }
 0x76e   :  { %v6658_v4 = vpack.c.bf16 %v3795_v58, %v3791_v54  ;;  %v3819_v36 = vld [vmem:[%s7151_s2 + $0x3b0] sm:$0xff]  ;;  %v3822_v58 = vld [vmem:[%s7151_s2 + $0x3c8] sm:$0xff] }
 0x76f   :  { %v6763_v54 = vpack.c.bf16 %v3819_v36, %v3815_v32 }
 0x770   :  { %4468 = vmatpush1.bf16.msra.mxu0 %v4467_v18  ;;  %4500 = vmatpush1.bf16.msra.mxu1 %v4499_v22  ;;  %v3804_v18 = vld [vmem:[%s7151_s2 + $0x338] sm:$0xff]  ;;  %v6671_v22 = vpack.c.bf16 %v3802_v9, %v3798_v62  ;;  %v3826_v62 = vld [vmem:[%s7151_s2 + $0x3e8] sm:$0xff] }
 0x771   :  { %v3824_v9 = vld [vmem:[%s7151_s2 + $0x3d8] sm:$0xff] }
 0x773   :  { %2073 = vmatmul.mubr.f32.vlgmr.msra.gmra.mrb[16].mxu0 %v6016_v46  ;;  %2186 = vmatmul.mubr.f32.vlgmr.msra.gmra.mrb[16].mxu1 %v6016_v46  ;;  %v3766_v46 = vld [vmem:[%s7151_s2 + $0x208] sm:$0xff] }
 0x774   :  { %2078 = vmatprep.mubr.f32.mxu0 %v5398_v3  ;;  %2191 = vmatprep.mubr.f32.mxu1 %v5398_v3 }
 0x777   :  { %2079 = vmatmul.mubr.f32.gmra.mrb[18].mxu0 %v6062_v1  ;;  %2192 = vmatmul.mubr.f32.gmra.mrb[18].mxu1 %v6062_v1  ;;  %v3770_v1 = vld [vmem:[%s7151_s2 + $0x228] sm:$0xff] }
 0x778   :  { %2084 = vmatprep.mubr.f32.mxu0 %v5398_v3  ;;  %2197 = vmatprep.mubr.f32.mxu1 %v5398_v3 }
 0x77b   :  { %2085 = vmatmul.mubr.f32.gmra.mrb[20].mxu0 %v6108_v15  ;;  %2198 = vmatmul.mubr.f32.gmra.mrb[20].mxu1 %v6108_v15  ;;  %v3768_v15 = vld [vmem:[%s7151_s2 + $0x218] sm:$0xff] }
 0x77c   :  { %2090 = vmatprep.mubr.f32.mxu0 %v5398_v3  ;;  %2203 = vmatprep.mubr.f32.mxu1 %v5398_v3 }
 0x77f   :  { %2091 = vmatmul.mubr.f32.gmra.mrb[22].mxu0 %v6154_v43  ;;  %2204 = vmatmul.mubr.f32.gmra.mrb[22].mxu1 %v6154_v43  ;;  %v6525_v43 = vpack.c.bf16 %v3770_v1, %v3766_v46  ;;  %v6673_v46 = vpack.c.bf16 %v3804_v18, %v3800_v14  ;;  %v3797_v1 = vld [vmem:[%s7151_s2 + $0x300] sm:$0xff]  ;;  %v6777_v14 = vpack.c.bf16 %v3826_v62, %v3822_v58  ;;  %v3828_v18 = vld [vmem:[%s7151_s2 + $0x3f8] sm:$0xff] }
 0x780   :  { %2096 = vmatprep.mubr.f32.mxu0 %v5398_v3  ;;  %2209 = vmatprep.mubr.f32.mxu1 %v5398_v3 }
 0x781   :  { %4502 = vmatprep.subr.bf16.mxu0 %v6525_v43 }
 0x783   :  { %2097 = vmatmul.mubr.f32.gmra.mrb[24].mxu0 %v6200_v8  ;;  %2210 = vmatmul.mubr.f32.gmra.mrb[24].mxu1 %v6200_v8  ;;  %v3772_v8 = vld [vmem:[%s7151_s2 + $0x238] sm:$0xff] }
 0x784   :  { %2102 = vmatprep.mubr.f32.mxu0 %v5398_v3  ;;  %2215 = vmatprep.mubr.f32.mxu1 %v5398_v3  ;;  %v6536_v27 = vpack.c.bf16 %v3772_v8, %v3768_v15  ;;  %v3801_v15 = vld [vmem:[%s7151_s2 + $0x320] sm:$0xff]  ;;  %v3799_v8 = vld [vmem:[%s7151_s2 + $0x310] sm:$0xff] }
 0x786   :  { %4534 = vmatprep.subr.bf16.mxu1 %v6536_v27 }
 0x787   :  { %2103 = vmatmul.mubr.f32.gmra.mrb[26].mxu0 %v6246_v17  ;;  %2216 = vmatmul.mubr.f32.gmra.mrb[26].mxu1 %v6246_v17  ;;  %v3765_v17 = vld [vmem:[%s7151_s2 + $0x200] sm:$0xff] }
 0x788   :  { %2108 = vmatprep.mubr.f32.mxu0 %v5398_v3  ;;  %2221 = vmatprep.mubr.f32.mxu1 %v5398_v3 }
 0x789   :  { %4536 = vmatpush1.bf16.msra.mxu1 %v6547_v49 }
 0x78a   :  { %4538 = vmatprep.subr.bf16.mxu1 %v6572_v24 }
 0x78b   :  { %2109 = vmatmul.mubr.f32.gmra.mrb[28].mxu0 %v6332_v55  ;;  %2222 = vmatmul.mubr.f32.gmra.mrb[28].mxu1 %v6332_v55  ;;  %v3769_v55 = vld [vmem:[%s7151_s2 + $0x220] sm:$0xff] }
 0x78c   :  { %2114 = vmatprep.mubr.f32.mxu0 %v5398_v3  ;;  %2227 = vmatprep.mubr.f32.mxu1 %v5398_v3  ;;  %v6538_v51 = vpack.c.bf16 %v3769_v55, %v3765_v17  ;;  %v6685_v17 = vpack.c.bf16 %v3801_v15, %v3797_v1  ;;  %v3803_v55 = vld [vmem:[%s7151_s2 + $0x330] sm:$0xff]  ;;  %v3821_v1 = vld [vmem:[%s7151_s2 + $0x3c0] sm:$0xff] }
 0x78d   :  { %4540 = vmatpush1.bf16.msra.mxu1 %v6583_v5  ;;  %v6698_v38 = vpack.c.bf16 %v3803_v55, %v3799_v8  ;;  %v3825_v15 = vld [vmem:[%s7151_s2 + $0x3e0] sm:$0xff]  ;;  %v6788_v8 = vpack.c.bf16 %v3828_v18, %v3824_v9 }
 0x78e   :  { %4504 = vmatpush1.bf16.msra.mxu0 %v6538_v51  ;;  %4542 = vmatprep.subr.bf16.mxu1 %v6608_v2  ;;  %v6790_v55 = vpack.c.bf16 %v3825_v15, %v3821_v1 }
 0x78f   :  { %4506 = vmatprep.subr.bf16.mxu0 %v6561_v61 }
 0x791   :  { %4544 = vmatpush1.bf16.msra.mxu1 %v6619_v16 }
 0x792   :  { %4508 = vmatpush1.bf16.msra.mxu0 %v6574_v12  ;;  %4546 = vmatprep.subr.bf16.mxu1 %v6644_v44 }
 0x793   :  { %4510 = vmatprep.subr.bf16.mxu0 %v6597_v53 }
 0x795   :  { %4548 = vmatpush1.bf16.msra.mxu1 %v6658_v4 }
 0x796   :  { %4512 = vmatpush1.bf16.msra.mxu0 %v6610_v6  ;;  %4550 = vmatprep.subr.bf16.mxu1 %v6673_v46 }
 0x797   :  { %4514 = vmatprep.subr.bf16.mxu0 %v6633_v29 }
 0x799   :  { %4552 = vmatpush1.bf16.msra.mxu1 %v6698_v38 }
 0x79a   :  { %4516 = vmatpush1.bf16.msra.mxu0 %v6646_v48  ;;  %4554 = vmatprep.subr.bf16.mxu1 %v6711_v7 }
 0x79b   :  { %4518 = vmatprep.subr.bf16.mxu0 %v6671_v22 }
 0x79d   :  { %4556 = vmatpush1.bf16.msra.mxu1 %v6736_v63 }
 0x79e   :  { %4520 = vmatpush1.bf16.msra.mxu0 %v6685_v17  ;;  %4558 = vmatprep.subr.bf16.mxu1 %v6750_v26 }
 0x79f   :  { %4522 = vmatprep.subr.bf16.mxu0 %v6700_v52 }
 0x7a1   :  { %4560 = vmatpush1.bf16.msra.mxu1 %v6763_v54 }
 0x7a2   :  { %4524 = vmatpush1.bf16.msra.mxu0 %v6723_v47  ;;  %4562 = vmatprep.subr.bf16.mxu1 %v6788_v8 }
 0x7a3   :  { %4526 = vmatprep.subr.bf16.mxu0 %v6738_v10 }
 0x7a5   :  { %4564 = vmatpush1.bf16.msra.mxu1 %v6799_v41 }
 0x7a6   :  { %4528 = vmatpush1.bf16.msra.mxu0 %v6759_v40  ;;  %4598 = vmatprep.subr.bf16.mxu1 %v6536_v27 }
 0x7a7   :  { %4530 = vmatprep.subr.bf16.mxu0 %v6777_v14 }
 0x7aa   :  { %4532 = vmatpush1.bf16.msra.mxu0 %v6790_v55 }
 0x7ab   :  { %4566 = vmatprep.subr.bf16.mxu0 %v6525_v43 }
 0x826   :  { %v1741_v33 = vpop.f32.mrb[14].mxu0  ;;  %v1812_v45 = vpop.f32.mrb[14].mxu1 }
 0x827   :  { %v5027_v21 = vadd.f32 %v1741_v33, %v5993_v35  ;;  %v1743_v20 = vpop.f32.mrb[15].mxu0  ;;  %v1814_v28 = vpop.f32.mrb[15].mxu1  ;;  %v5043_v23 = vadd.f32 %v1812_v45, %v6010_v0 }
 0x828   :  { %v5028_v50 = vadd.f32 %v1743_v20, %v5997_v37  ;;  %v5044_v13 = vadd.f32 %v1814_v28, %v6004_v57 }
 0x829   :  { %v3698_v56 = vmul.f32 -1.442695, %v5027_v21 }
 0x82a   :  { %v3699_v60 = vmul.f32 -1.442695, %v5028_v50  ;;  %v3700_v19 = vmul.f32 -1.442695, %v5044_v13 }
 0x82b   :  { %5254 = vpow2.f32 %v3698_v56 }
 0x82c   :  { %5256 = vpow2.f32 %v3699_v60 }
 0x82d   :  { %5258 = vpow2.f32 %v3700_v19 }
 0x82e   :  { %5260 = vtanh.f32 %v5043_v23 }
 0x835   :  { %v5255_v32 = vpop.eup %5254 }
 0x836   :  { %v5257_v36 = vpop.eup %5256  ;;  %v1824_v58 = vadd.f32 1.0, %v5255_v32 }
 0x837   :  { %v1830_v62 = vadd.f32 1.0, %v5257_v36  ;;  %v5259_v35 = vpop.eup %5258 }
 0x838   :  { %5262 = vrcp.f32 %v1824_v58  ;;  %v5261_v9 = vpop.eup %5260  ;;  %v1837_v15 = vadd.f32 1.0, %v5259_v35 }
 0x839   :  { %5264 = vrcp.f32 %v1830_v62 }
 0x83a   :  { %5266 = vrcp.f32 %v1837_v15 }
 0x842   :  { %v5263_v37 = vpop.eup %5262 }
 0x843   :  { %v5265_v18 = vpop.eup %5264  ;;  %v1841_v1 = vmul.f32 %v5263_v37, %v5261_v9 }
 0x844   :  { %v1840_v39 = vmul.f32 %v5265_v18, %v6299_v25  ;;  %v5267_v0 = vpop.eup %5266  ;;  %v3829_v25 = vld [vmem:[%s7153_s3 + $0x4] sm:$0xf] }
 0x845   :  { %v6854_v45 = vrot.slane %v3829_v25, %v157_v31  ;;  %v6858_v21 = vrot.slane %v3829_v25, %v161_v34  ;;  %v6864_v32 = vrot.slane %v3829_v25, %v169_v42  ;;  %v6869_v34 = vrot.slane %v3829_v25, %v165_v59 }
 0x846   :  { %v1842_v57 = vadd.f32 %v1841_v1, %v1840_v39 }
 0x848   :  { %5268 = vtanh.f32 %v1842_v57 }
 0x852   :  { %v5269_v11 = vpop.eup %5268 }
 0x853   :  { %v1844_v33 = vmul.f32 %v5269_v11, %v5267_v0 }
 0x855   :  { %2115 = vmatmul.mubr.f32.gmra.mrb[30].mxu0 %v1844_v33  ;;  %2228 = vmatmul.mubr.f32.gmra.mrb[30].mxu1 %v1844_v33 }
 0x856   :  { %2334 = vmatprep.mubr.f32.mxu0 %v5398_v3  ;;  %2405 = vmatprep.mubr.f32.mxu1 %v5398_v3 }
 0x859   :  { %2335 = vmatmul.mubr.f32.vlgmr.msra.gmra.mrb[16].mxu0 %v5398_v3  ;;  %2406 = vmatmul.mubr.f32.vlgmr.msra.gmra.mrb[16].mxu1 %v5398_v3 }
 0x85a   :  { %4568 = vmatpush1.bf16.msra.mxu0 %v6538_v51  ;;  %4600 = vmatpush1.bf16.msra.mxu1 %v6547_v49 }
 0x85b   :  { %4570 = vmatprep.subr.bf16.mxu0 %v6561_v61  ;;  %4602 = vmatprep.subr.bf16.mxu1 %v6572_v24 }
 0x85c   :  { %2509 = vmatprep.mubr.f32.mxu0 %v5398_v3  ;;  %2580 = vmatprep.mubr.f32.mxu1 %v5398_v3 }
 0x85e   :  { %4572 = vmatpush1.bf16.msra.mxu0 %v6574_v12  ;;  %4604 = vmatpush1.bf16.msra.mxu1 %v6583_v5 }
 0x85f   :  { %4574 = vmatprep.subr.bf16.mxu0 %v6597_v53  ;;  %4606 = vmatprep.subr.bf16.mxu1 %v6608_v2 }
 0x862   :  { %4576 = vmatpush1.bf16.msra.mxu0 %v6610_v6  ;;  %4608 = vmatpush1.bf16.msra.mxu1 %v6619_v16 }
 0x863   :  { %4578 = vmatprep.subr.bf16.mxu0 %v6633_v29  ;;  %4610 = vmatprep.subr.bf16.mxu1 %v6644_v44 }
 0x866   :  { %4580 = vmatpush1.bf16.msra.mxu0 %v6646_v48  ;;  %4612 = vmatpush1.bf16.msra.mxu1 %v6658_v4 }
 0x867   :  { %4582 = vmatprep.subr.bf16.mxu0 %v6671_v22  ;;  %4614 = vmatprep.subr.bf16.mxu1 %v6673_v46 }
 0x86a   :  { %4584 = vmatpush1.bf16.msra.mxu0 %v6685_v17  ;;  %4616 = vmatpush1.bf16.msra.mxu1 %v6698_v38 }
 0x86b   :  { %4586 = vmatprep.subr.bf16.mxu0 %v6700_v52  ;;  %4618 = vmatprep.subr.bf16.mxu1 %v6711_v7 }
 0x86e   :  { %4588 = vmatpush1.bf16.msra.mxu0 %v6723_v47  ;;  %4620 = vmatpush1.bf16.msra.mxu1 %v6736_v63 }
 0x86f   :  { %4590 = vmatprep.subr.bf16.mxu0 %v6738_v10  ;;  %4622 = vmatprep.subr.bf16.mxu1 %v6750_v26 }
 0x872   :  { %4592 = vmatpush1.bf16.msra.mxu0 %v6759_v40  ;;  %4624 = vmatpush1.bf16.msra.mxu1 %v6763_v54 }
 0x873   :  { %4594 = vmatprep.subr.bf16.mxu0 %v6777_v14  ;;  %4626 = vmatprep.subr.bf16.mxu1 %v6788_v8 }
 0x876   :  { %4596 = vmatpush1.bf16.msra.mxu0 %v6790_v55  ;;  %4628 = vmatpush1.bf16.msra.mxu1 %v6799_v41 }
 0x877   :  { %4630 = vmatprep.subr.bf16.mxu0 %v6525_v43  ;;  %4662 = vmatprep.subr.bf16.mxu1 %v6536_v27 }
 0x92c   :  { %v2336_v20 = vpop.f32.mrb[16].mxu0  ;;  %v2407_v28 = vpop.f32.mrb[16].mxu1 }
 0x92d   :  { %v5045_v50 = vadd.f32 %v2336_v20, %v6854_v45  ;;  %v2338_v56 = vpop.f32.mrb[17].mxu0  ;;  %v2409_v60 = vpop.f32.mrb[17].mxu1  ;;  %v5061_v58 = vadd.f32 %v2407_v28, %v6869_v34 }
 0x92e   :  { %v5046_v13 = vadd.f32 %v2338_v56, %v6858_v21  ;;  %v5062_v31 = vadd.f32 %v2409_v60, %v6864_v32 }
 0x92f   :  { %v3830_v19 = vmul.f32 -1.442695, %v5045_v50 }
 0x930   :  { %v3831_v23 = vmul.f32 -1.442695, %v5046_v13  ;;  %v3832_v36 = vmul.f32 -1.442695, %v5062_v31 }
 0x931   :  { %5270 = vpow2.f32 %v3830_v19 }
 0x932   :  { %5272 = vpow2.f32 %v3831_v23 }
 0x933   :  { %5274 = vpow2.f32 %v3832_v36 }
 0x934   :  { %5276 = vtanh.f32 %v5061_v58 }
 0x93b   :  { %v5271_v62 = vpop.eup %5270 }
 0x93c   :  { %v5273_v35 = vpop.eup %5272  ;;  %v2419_v9 = vadd.f32 1.0, %v5271_v62 }
 0x93d   :  { %v2425_v37 = vadd.f32 1.0, %v5273_v35  ;;  %v5275_v42 = vpop.eup %5274 }
 0x93e   :  { %5278 = vrcp.f32 %v2419_v9  ;;  %v5277_v18 = vpop.eup %5276  ;;  %v2432_v57 = vadd.f32 1.0, %v5275_v42 }
 0x93f   :  { %5280 = vrcp.f32 %v2425_v37 }
 0x940   :  { %5282 = vrcp.f32 %v2432_v57 }
 0x948   :  { %v5279_v1 = vpop.eup %5278 }
 0x949   :  { %v5281_v15 = vpop.eup %5280  ;;  %v2436_v39 = vmul.f32 %v5279_v1, %v5277_v18 }
 0x94a   :  { %v2435_v30 = vmul.f32 0.0, %v5281_v15  ;;  %v5283_v0 = vpop.eup %5282 }
 0x94c   :  { %v6872_v59 = vadd.f32 %v2436_v39, %v2435_v30 }
 0x94e   :  { %5284 = vtanh.f32 %v6872_v59 }
 0x958   :  { %v5285_v11 = vpop.eup %5284 }
 0x959   :  { %v2439_v33 = vmul.f32 %v5285_v11, %v5283_v0 }
 0x95b   :  { %2440 = vst [vmem:[%s7154_s4] sm:$0xff] %v2439_v33  ;;  %2510 = vmatmul.mubr.f32.vlgmr.msra.gmra.mrb[18].mxu0 %v2439_v33  ;;  %2581 = vmatmul.mubr.f32.vlgmr.msra.gmra.mrb[18].mxu1 %v2439_v33 }
 0x95c   :  { %4632 = vmatpush1.bf16.msra.mxu0 %v6538_v51  ;;  %4664 = vmatpush1.bf16.msra.mxu1 %v6547_v49 }
 0x95d   :  { %4634 = vmatprep.subr.bf16.mxu0 %v6561_v61  ;;  %4666 = vmatprep.subr.bf16.mxu1 %v6572_v24 }
 0x95e   :  { %2685 = vmatprep.mubr.f32.mxu0 %v5398_v3  ;;  %2756 = vmatprep.mubr.f32.mxu1 %v5398_v3 }
 0x960   :  { %4636 = vmatpush1.bf16.msra.mxu0 %v6574_v12  ;;  %4668 = vmatpush1.bf16.msra.mxu1 %v6583_v5 }
 0x961   :  { %4638 = vmatprep.subr.bf16.mxu0 %v6597_v53  ;;  %4670 = vmatprep.subr.bf16.mxu1 %v6608_v2 }
 0x964   :  { %4640 = vmatpush1.bf16.msra.mxu0 %v6610_v6  ;;  %4672 = vmatpush1.bf16.msra.mxu1 %v6619_v16 }
 0x965   :  { %4642 = vmatprep.subr.bf16.mxu0 %v6633_v29  ;;  %4674 = vmatprep.subr.bf16.mxu1 %v6644_v44 }
 0x968   :  { %4644 = vmatpush1.bf16.msra.mxu0 %v6646_v48  ;;  %4676 = vmatpush1.bf16.msra.mxu1 %v6658_v4 }
 0x969   :  { %4646 = vmatprep.subr.bf16.mxu0 %v6671_v22  ;;  %4678 = vmatprep.subr.bf16.mxu1 %v6673_v46 }
 0x96c   :  { %4648 = vmatpush1.bf16.msra.mxu0 %v6685_v17  ;;  %4680 = vmatpush1.bf16.msra.mxu1 %v6698_v38 }
 0x96d   :  { %4650 = vmatprep.subr.bf16.mxu0 %v6700_v52  ;;  %4682 = vmatprep.subr.bf16.mxu1 %v6711_v7 }
 0x970   :  { %4652 = vmatpush1.bf16.msra.mxu0 %v6723_v47  ;;  %4684 = vmatpush1.bf16.msra.mxu1 %v6736_v63 }
 0x971   :  { %4654 = vmatprep.subr.bf16.mxu0 %v6738_v10  ;;  %4686 = vmatprep.subr.bf16.mxu1 %v6750_v26 }
 0x974   :  { %4656 = vmatpush1.bf16.msra.mxu0 %v6759_v40  ;;  %4688 = vmatpush1.bf16.msra.mxu1 %v6763_v54 }
 0x975   :  { %4658 = vmatprep.subr.bf16.mxu0 %v6777_v14  ;;  %4690 = vmatprep.subr.bf16.mxu1 %v6788_v8 }
 0x978   :  { %4660 = vmatpush1.bf16.msra.mxu0 %v6790_v55  ;;  %4692 = vmatpush1.bf16.msra.mxu1 %v6799_v41 }
 0x979   :  { %4694 = vmatprep.subr.bf16.mxu0 %v6525_v43  ;;  %4726 = vmatprep.subr.bf16.mxu1 %v6536_v27 }
 0xa2e   :  { %v2511_v25 = vpop.f32.mrb[18].mxu0  ;;  %v2582_v20 = vpop.f32.mrb[18].mxu1 }
 0xa2f   :  { %v5047_v28 = vadd.f32 %v2511_v25, %v6854_v45  ;;  %v2513_v50 = vpop.f32.mrb[19].mxu0  ;;  %v2584_v56 = vpop.f32.mrb[19].mxu1  ;;  %v5063_v36 = vadd.f32 %v2582_v20, %v6869_v34 }
 0xa30   :  { %v5048_v60 = vadd.f32 %v2513_v50, %v6858_v21  ;;  %v5064_v23 = vadd.f32 %v2584_v56, %v6864_v32 }
 0xa31   :  { %v3833_v13 = vmul.f32 -1.442695, %v5047_v28 }
 0xa32   :  { %v3834_v19 = vmul.f32 -1.442695, %v5048_v60  ;;  %v3835_v31 = vmul.f32 -1.442695, %v5064_v23 }
 0xa33   :  { %5286 = vpow2.f32 %v3833_v13 }
 0xa34   :  { %5288 = vpow2.f32 %v3834_v19 }
 0xa35   :  { %5290 = vpow2.f32 %v3835_v31 }
 0xa36   :  { %5292 = vtanh.f32 %v5063_v36 }
 0xa3d   :  { %v5287_v58 = vpop.eup %5286 }
 0xa3e   :  { %v5289_v62 = vpop.eup %5288  ;;  %v2594_v35 = vadd.f32 1.0, %v5287_v58 }
 0xa3f   :  { %v2600_v9 = vadd.f32 1.0, %v5289_v62  ;;  %v5291_v37 = vpop.eup %5290 }
 0xa40   :  { %5294 = vrcp.f32 %v2594_v35  ;;  %v5293_v42 = vpop.eup %5292  ;;  %v2607_v39 = vadd.f32 1.0, %v5291_v37 }
 0xa41   :  { %5296 = vrcp.f32 %v2600_v9 }
 0xa42   :  { %5298 = vrcp.f32 %v2607_v39 }
 0xa4a   :  { %v5295_v18 = vpop.eup %5294 }
 0xa4b   :  { %v5297_v1 = vpop.eup %5296  ;;  %v2611_v15 = vmul.f32 %v5295_v18, %v5293_v42 }
 0xa4c   :  { %v2610_v57 = vmul.f32 %v5297_v1, %v6872_v59  ;;  %v5299_v0 = vpop.eup %5298 }
 0xa4e   :  { %v6917_v30 = vadd.f32 %v2611_v15, %v2610_v57 }
 0xa50   :  { %5300 = vtanh.f32 %v6917_v30 }
 0xa5a   :  { %v5301_v11 = vpop.eup %5300 }
 0xa5b   :  { %v2614_v33 = vmul.f32 %v5301_v11, %v5299_v0 }
 0xa5d   :  { %3836 = vst [vmem:[%s7154_s4 + $0x8] sm:$0xff] %v2614_v33  ;;  %2686 = vmatmul.mubr.f32.vlgmr.msra.gmra.mrb[20].mxu0 %v2614_v33  ;;  %2757 = vmatmul.mubr.f32.vlgmr.msra.gmra.mrb[20].mxu1 %v2614_v33 }
 0xa5e   :  { %4696 = vmatpush1.bf16.msra.mxu0 %v6538_v51  ;;  %4728 = vmatpush1.bf16.msra.mxu1 %v6547_v49 }
 0xa5f   :  { %4698 = vmatprep.subr.bf16.mxu0 %v6561_v61  ;;  %4730 = vmatprep.subr.bf16.mxu1 %v6572_v24 }
 0xa60   :  { %2861 = vmatprep.mubr.f32.mxu0 %v5398_v3  ;;  %2932 = vmatprep.mubr.f32.mxu1 %v5398_v3 }
 0xa62   :  { %4700 = vmatpush1.bf16.msra.mxu0 %v6574_v12  ;;  %4732 = vmatpush1.bf16.msra.mxu1 %v6583_v5 }
 0xa63   :  { %4702 = vmatprep.subr.bf16.mxu0 %v6597_v53  ;;  %4734 = vmatprep.subr.bf16.mxu1 %v6608_v2 }
 0xa66   :  { %4704 = vmatpush1.bf16.msra.mxu0 %v6610_v6  ;;  %4736 = vmatpush1.bf16.msra.mxu1 %v6619_v16 }
 0xa67   :  { %4706 = vmatprep.subr.bf16.mxu0 %v6633_v29  ;;  %4738 = vmatprep.subr.bf16.mxu1 %v6644_v44 }
 0xa6a   :  { %4708 = vmatpush1.bf16.msra.mxu0 %v6646_v48  ;;  %4740 = vmatpush1.bf16.msra.mxu1 %v6658_v4 }
 0xa6b   :  { %4710 = vmatprep.subr.bf16.mxu0 %v6671_v22  ;;  %4742 = vmatprep.subr.bf16.mxu1 %v6673_v46 }
 0xa6e   :  { %4712 = vmatpush1.bf16.msra.mxu0 %v6685_v17  ;;  %4744 = vmatpush1.bf16.msra.mxu1 %v6698_v38 }
 0xa6f   :  { %4714 = vmatprep.subr.bf16.mxu0 %v6700_v52  ;;  %4746 = vmatprep.subr.bf16.mxu1 %v6711_v7 }
 0xa72   :  { %4716 = vmatpush1.bf16.msra.mxu0 %v6723_v47  ;;  %4748 = vmatpush1.bf16.msra.mxu1 %v6736_v63 }
 0xa73   :  { %4718 = vmatprep.subr.bf16.mxu0 %v6738_v10  ;;  %4750 = vmatprep.subr.bf16.mxu1 %v6750_v26 }
 0xa76   :  { %4720 = vmatpush1.bf16.msra.mxu0 %v6759_v40  ;;  %4752 = vmatpush1.bf16.msra.mxu1 %v6763_v54 }
 0xa77   :  { %4722 = vmatprep.subr.bf16.mxu0 %v6777_v14  ;;  %4754 = vmatprep.subr.bf16.mxu1 %v6788_v8 }
 0xa7a   :  { %4724 = vmatpush1.bf16.msra.mxu0 %v6790_v55  ;;  %4756 = vmatpush1.bf16.msra.mxu1 %v6799_v41 }
 0xa7b   :  { %4758 = vmatprep.subr.bf16.mxu0 %v6525_v43  ;;  %4790 = vmatprep.subr.bf16.mxu1 %v6536_v27 }
 0xb30   :  { %v2687_v59 = vpop.f32.mrb[20].mxu0  ;;  %v2758_v25 = vpop.f32.mrb[20].mxu1 }
 0xb31   :  { %v5049_v20 = vadd.f32 %v2687_v59, %v6854_v45  ;;  %v2689_v28 = vpop.f32.mrb[21].mxu0  ;;  %v2760_v50 = vpop.f32.mrb[21].mxu1  ;;  %v5065_v31 = vadd.f32 %v2758_v25, %v6869_v34 }
 0xb32   :  { %v5050_v56 = vadd.f32 %v2689_v28, %v6858_v21  ;;  %v5066_v19 = vadd.f32 %v2760_v50, %v6864_v32 }
 0xb33   :  { %v3837_v60 = vmul.f32 -1.442695, %v5049_v20 }
 0xb34   :  { %v3838_v13 = vmul.f32 -1.442695, %v5050_v56  ;;  %v3839_v23 = vmul.f32 -1.442695, %v5066_v19 }
 0xb35   :  { %5302 = vpow2.f32 %v3837_v60 }
 0xb36   :  { %5304 = vpow2.f32 %v3838_v13 }
 0xb37   :  { %5306 = vpow2.f32 %v3839_v23 }
 0xb38   :  { %5308 = vtanh.f32 %v5065_v31 }
 0xb3f   :  { %v5303_v36 = vpop.eup %5302 }
 0xb40   :  { %v5305_v58 = vpop.eup %5304  ;;  %v2770_v62 = vadd.f32 1.0, %v5303_v36 }
 0xb41   :  { %v2776_v35 = vadd.f32 1.0, %v5305_v58  ;;  %v5307_v9 = vpop.eup %5306 }
 0xb42   :  { %5310 = vrcp.f32 %v2770_v62  ;;  %v5309_v37 = vpop.eup %5308  ;;  %v2783_v15 = vadd.f32 1.0, %v5307_v9 }
 0xb43   :  { %5312 = vrcp.f32 %v2776_v35 }
 0xb44   :  { %5314 = vrcp.f32 %v2783_v15 }
 0xb4c   :  { %v5311_v42 = vpop.eup %5310 }
 0xb4d   :  { %v5313_v18 = vpop.eup %5312  ;;  %v2787_v1 = vmul.f32 %v5311_v42, %v5309_v37 }
 0xb4e   :  { %v2786_v39 = vmul.f32 %v5313_v18, %v6917_v30  ;;  %v5315_v0 = vpop.eup %5314 }
 0xb50   :  { %v6962_v57 = vadd.f32 %v2787_v1, %v2786_v39 }
 0xb52   :  { %5316 = vtanh.f32 %v6962_v57 }
 0xb5c   :  { %v5317_v11 = vpop.eup %5316 }
 0xb5d   :  { %v2790_v33 = vmul.f32 %v5317_v11, %v5315_v0 }
 0xb5f   :  { %3840 = vst [vmem:[%s7154_s4 + $0x10] sm:$0xff] %v2790_v33  ;;  %2862 = vmatmul.mubr.f32.vlgmr.msra.gmra.mrb[22].mxu0 %v2790_v33  ;;  %2933 = vmatmul.mubr.f32.vlgmr.msra.gmra.mrb[22].mxu1 %v2790_v33 }
 0xb60   :  { %4760 = vmatpush1.bf16.msra.mxu0 %v6538_v51  ;;  %4792 = vmatpush1.bf16.msra.mxu1 %v6547_v49 }
 0xb61   :  { %4762 = vmatprep.subr.bf16.mxu0 %v6561_v61  ;;  %4794 = vmatprep.subr.bf16.mxu1 %v6572_v24 }
 0xb62   :  { %3037 = vmatprep.mubr.f32.mxu0 %v5398_v3  ;;  %3108 = vmatprep.mubr.f32.mxu1 %v5398_v3 }
 0xb64   :  { %4764 = vmatpush1.bf16.msra.mxu0 %v6574_v12  ;;  %4796 = vmatpush1.bf16.msra.mxu1 %v6583_v5 }
 0xb65   :  { %4766 = vmatprep.subr.bf16.mxu0 %v6597_v53  ;;  %4798 = vmatprep.subr.bf16.mxu1 %v6608_v2 }
 0xb68   :  { %4768 = vmatpush1.bf16.msra.mxu0 %v6610_v6  ;;  %4800 = vmatpush1.bf16.msra.mxu1 %v6619_v16 }
 0xb69   :  { %4770 = vmatprep.subr.bf16.mxu0 %v6633_v29  ;;  %4802 = vmatprep.subr.bf16.mxu1 %v6644_v44 }
 0xb6c   :  { %4772 = vmatpush1.bf16.msra.mxu0 %v6646_v48  ;;  %4804 = vmatpush1.bf16.msra.mxu1 %v6658_v4 }
 0xb6d   :  { %4774 = vmatprep.subr.bf16.mxu0 %v6671_v22  ;;  %4806 = vmatprep.subr.bf16.mxu1 %v6673_v46 }
 0xb70   :  { %4776 = vmatpush1.bf16.msra.mxu0 %v6685_v17  ;;  %4808 = vmatpush1.bf16.msra.mxu1 %v6698_v38 }
 0xb71   :  { %4778 = vmatprep.subr.bf16.mxu0 %v6700_v52  ;;  %4810 = vmatprep.subr.bf16.mxu1 %v6711_v7 }
 0xb74   :  { %4780 = vmatpush1.bf16.msra.mxu0 %v6723_v47  ;;  %4812 = vmatpush1.bf16.msra.mxu1 %v6736_v63 }
 0xb75   :  { %4782 = vmatprep.subr.bf16.mxu0 %v6738_v10  ;;  %4814 = vmatprep.subr.bf16.mxu1 %v6750_v26 }
 0xb78   :  { %4784 = vmatpush1.bf16.msra.mxu0 %v6759_v40  ;;  %4816 = vmatpush1.bf16.msra.mxu1 %v6763_v54 }
 0xb79   :  { %4786 = vmatprep.subr.bf16.mxu0 %v6777_v14  ;;  %4818 = vmatprep.subr.bf16.mxu1 %v6788_v8 }
 0xb7c   :  { %4788 = vmatpush1.bf16.msra.mxu0 %v6790_v55  ;;  %4820 = vmatpush1.bf16.msra.mxu1 %v6799_v41 }
 0xb7d   :  { %4822 = vmatprep.subr.bf16.mxu0 %v6525_v43  ;;  %4854 = vmatprep.subr.bf16.mxu1 %v6536_v27 }
 0xc32   :  { %v2863_v30 = vpop.f32.mrb[22].mxu0  ;;  %v2934_v59 = vpop.f32.mrb[22].mxu1 }
 0xc33   :  { %v5051_v25 = vadd.f32 %v2863_v30, %v6854_v45  ;;  %v2865_v20 = vpop.f32.mrb[23].mxu0  ;;  %v2936_v28 = vpop.f32.mrb[23].mxu1  ;;  %v5067_v23 = vadd.f32 %v2934_v59, %v6869_v34 }
 0xc34   :  { %v5052_v50 = vadd.f32 %v2865_v20, %v6858_v21  ;;  %v5068_v13 = vadd.f32 %v2936_v28, %v6864_v32 }
 0xc35   :  { %v3841_v56 = vmul.f32 -1.442695, %v5051_v25 }
 0xc36   :  { %v3842_v60 = vmul.f32 -1.442695, %v5052_v50  ;;  %v3843_v19 = vmul.f32 -1.442695, %v5068_v13 }
 0xc37   :  { %5318 = vpow2.f32 %v3841_v56 }
 0xc38   :  { %5320 = vpow2.f32 %v3842_v60 }
 0xc39   :  { %5322 = vpow2.f32 %v3843_v19 }
 0xc3a   :  { %5324 = vtanh.f32 %v5067_v23 }
 0xc41   :  { %v5319_v31 = vpop.eup %5318 }
 0xc42   :  { %v5321_v36 = vpop.eup %5320  ;;  %v2946_v58 = vadd.f32 1.0, %v5319_v31 }
 0xc43   :  { %v2952_v62 = vadd.f32 1.0, %v5321_v36  ;;  %v5323_v35 = vpop.eup %5322 }
 0xc44   :  { %5326 = vrcp.f32 %v2946_v58  ;;  %v5325_v9 = vpop.eup %5324  ;;  %v2959_v1 = vadd.f32 1.0, %v5323_v35 }
 0xc45   :  { %5328 = vrcp.f32 %v2952_v62 }
 0xc46   :  { %5330 = vrcp.f32 %v2959_v1 }
 0xc4e   :  { %v5327_v37 = vpop.eup %5326 }
 0xc4f   :  { %v5329_v42 = vpop.eup %5328  ;;  %v2963_v18 = vmul.f32 %v5327_v37, %v5325_v9 }
 0xc50   :  { %v2962_v15 = vmul.f32 %v5329_v42, %v6962_v57  ;;  %v5331_v0 = vpop.eup %5330 }
 0xc52   :  { %v7007_v39 = vadd.f32 %v2963_v18, %v2962_v15 }
 0xc54   :  { %5332 = vtanh.f32 %v7007_v39 }
 0xc5e   :  { %v5333_v11 = vpop.eup %5332 }
 0xc5f   :  { %v2966_v33 = vmul.f32 %v5333_v11, %v5331_v0 }
 0xc61   :  { %3844 = vst [vmem:[%s7154_s4 + $0x18] sm:$0xff] %v2966_v33  ;;  %3038 = vmatmul.mubr.f32.vlgmr.msra.gmra.mrb[24].mxu0 %v2966_v33  ;;  %3109 = vmatmul.mubr.f32.vlgmr.msra.gmra.mrb[24].mxu1 %v2966_v33 }
 0xc62   :  { %4824 = vmatpush1.bf16.msra.mxu0 %v6538_v51  ;;  %4856 = vmatpush1.bf16.msra.mxu1 %v6547_v49 }
 0xc63   :  { %4826 = vmatprep.subr.bf16.mxu0 %v6561_v61  ;;  %4858 = vmatprep.subr.bf16.mxu1 %v6572_v24 }
 0xc64   :  { %3213 = vmatprep.mubr.f32.mxu0 %v5398_v3  ;;  %3284 = vmatprep.mubr.f32.mxu1 %v5398_v3 }
 0xc66   :  { %4828 = vmatpush1.bf16.msra.mxu0 %v6574_v12  ;;  %4860 = vmatpush1.bf16.msra.mxu1 %v6583_v5 }
 0xc67   :  { %4830 = vmatprep.subr.bf16.mxu0 %v6597_v53  ;;  %4862 = vmatprep.subr.bf16.mxu1 %v6608_v2 }
 0xc6a   :  { %4832 = vmatpush1.bf16.msra.mxu0 %v6610_v6  ;;  %4864 = vmatpush1.bf16.msra.mxu1 %v6619_v16 }
 0xc6b   :  { %4834 = vmatprep.subr.bf16.mxu0 %v6633_v29  ;;  %4866 = vmatprep.subr.bf16.mxu1 %v6644_v44 }
 0xc6e   :  { %4836 = vmatpush1.bf16.msra.mxu0 %v6646_v48  ;;  %4868 = vmatpush1.bf16.msra.mxu1 %v6658_v4 }
 0xc6f   :  { %4838 = vmatprep.subr.bf16.mxu0 %v6671_v22  ;;  %4870 = vmatprep.subr.bf16.mxu1 %v6673_v46 }
 0xc72   :  { %4840 = vmatpush1.bf16.msra.mxu0 %v6685_v17  ;;  %4872 = vmatpush1.bf16.msra.mxu1 %v6698_v38 }
 0xc73   :  { %4842 = vmatprep.subr.bf16.mxu0 %v6700_v52  ;;  %4874 = vmatprep.subr.bf16.mxu1 %v6711_v7 }
 0xc76   :  { %4844 = vmatpush1.bf16.msra.mxu0 %v6723_v47  ;;  %4876 = vmatpush1.bf16.msra.mxu1 %v6736_v63 }
 0xc77   :  { %4846 = vmatprep.subr.bf16.mxu0 %v6738_v10  ;;  %4878 = vmatprep.subr.bf16.mxu1 %v6750_v26 }
 0xc7a   :  { %4848 = vmatpush1.bf16.msra.mxu0 %v6759_v40  ;;  %4880 = vmatpush1.bf16.msra.mxu1 %v6763_v54 }
 0xc7b   :  { %4850 = vmatprep.subr.bf16.mxu0 %v6777_v14  ;;  %4882 = vmatprep.subr.bf16.mxu1 %v6788_v8 }
 0xc7e   :  { %4852 = vmatpush1.bf16.msra.mxu0 %v6790_v55  ;;  %4884 = vmatpush1.bf16.msra.mxu1 %v6799_v41 }
 0xc7f   :  { %4886 = vmatprep.subr.bf16.mxu0 %v6525_v43  ;;  %4918 = vmatprep.subr.bf16.mxu1 %v6536_v27 }
 0xd34   :  { %v3039_v57 = vpop.f32.mrb[24].mxu0  ;;  %v3110_v30 = vpop.f32.mrb[24].mxu1 }
 0xd35   :  { %v5053_v59 = vadd.f32 %v3039_v57, %v6854_v45  ;;  %v3041_v25 = vpop.f32.mrb[25].mxu0  ;;  %v3112_v20 = vpop.f32.mrb[25].mxu1  ;;  %v5069_v19 = vadd.f32 %v3110_v30, %v6869_v34 }
 0xd36   :  { %v5054_v28 = vadd.f32 %v3041_v25, %v6858_v21  ;;  %v5070_v60 = vadd.f32 %v3112_v20, %v6864_v32 }
 0xd37   :  { %v3845_v50 = vmul.f32 -1.442695, %v5053_v59 }
 0xd38   :  { %v3846_v56 = vmul.f32 -1.442695, %v5054_v28  ;;  %v3847_v13 = vmul.f32 -1.442695, %v5070_v60 }
 0xd39   :  { %5334 = vpow2.f32 %v3845_v50 }
 0xd3a   :  { %5336 = vpow2.f32 %v3846_v56 }
 0xd3b   :  { %5338 = vpow2.f32 %v3847_v13 }
 0xd3c   :  { %5340 = vtanh.f32 %v5069_v19 }
 0xd43   :  { %v5335_v23 = vpop.eup %5334 }
 0xd44   :  { %v5337_v31 = vpop.eup %5336  ;;  %v3122_v36 = vadd.f32 1.0, %v5335_v23 }
 0xd45   :  { %v3128_v58 = vadd.f32 1.0, %v5337_v31  ;;  %v5339_v62 = vpop.eup %5338 }
 0xd46   :  { %5342 = vrcp.f32 %v3122_v36  ;;  %v5341_v35 = vpop.eup %5340  ;;  %v3135_v18 = vadd.f32 1.0, %v5339_v62 }
 0xd47   :  { %5344 = vrcp.f32 %v3128_v58 }
 0xd48   :  { %5346 = vrcp.f32 %v3135_v18 }
 0xd50   :  { %v5343_v9 = vpop.eup %5342 }
 0xd51   :  { %v5345_v37 = vpop.eup %5344  ;;  %v3139_v42 = vmul.f32 %v5343_v9, %v5341_v35 }
 0xd52   :  { %v3138_v1 = vmul.f32 %v5345_v37, %v7007_v39  ;;  %v5347_v0 = vpop.eup %5346 }
 0xd54   :  { %v7052_v15 = vadd.f32 %v3139_v42, %v3138_v1 }
 0xd56   :  { %5348 = vtanh.f32 %v7052_v15 }
 0xd60   :  { %v5349_v11 = vpop.eup %5348 }
 0xd61   :  { %v3142_v33 = vmul.f32 %v5349_v11, %v5347_v0 }
 0xd63   :  { %3848 = vst [vmem:[%s7154_s4 + $0x20] sm:$0xff] %v3142_v33  ;;  %3214 = vmatmul.mubr.f32.vlgmr.msra.gmra.mrb[26].mxu0 %v3142_v33  ;;  %3285 = vmatmul.mubr.f32.vlgmr.msra.gmra.mrb[26].mxu1 %v3142_v33 }
 0xd64   :  { %4888 = vmatpush1.bf16.msra.mxu0 %v6538_v51  ;;  %4920 = vmatpush1.bf16.msra.mxu1 %v6547_v49 }
 0xd65   :  { %4890 = vmatprep.subr.bf16.mxu0 %v6561_v61  ;;  %4922 = vmatprep.subr.bf16.mxu1 %v6572_v24 }
 0xd66   :  { %3389 = vmatprep.mubr.f32.mxu0 %v5398_v3  ;;  %3460 = vmatprep.mubr.f32.mxu1 %v5398_v3 }
 0xd68   :  { %4892 = vmatpush1.bf16.msra.mxu0 %v6574_v12  ;;  %4924 = vmatpush1.bf16.msra.mxu1 %v6583_v5 }
 0xd69   :  { %4894 = vmatprep.subr.bf16.mxu0 %v6597_v53  ;;  %4926 = vmatprep.subr.bf16.mxu1 %v6608_v2 }
 0xd6c   :  { %4896 = vmatpush1.bf16.msra.mxu0 %v6610_v6  ;;  %4928 = vmatpush1.bf16.msra.mxu1 %v6619_v16 }
 0xd6d   :  { %4898 = vmatprep.subr.bf16.mxu0 %v6633_v29  ;;  %4930 = vmatprep.subr.bf16.mxu1 %v6644_v44 }
 0xd70   :  { %4900 = vmatpush1.bf16.msra.mxu0 %v6646_v48  ;;  %4932 = vmatpush1.bf16.msra.mxu1 %v6658_v4 }
 0xd71   :  { %4902 = vmatprep.subr.bf16.mxu0 %v6671_v22  ;;  %4934 = vmatprep.subr.bf16.mxu1 %v6673_v46 }
 0xd74   :  { %4904 = vmatpush1.bf16.msra.mxu0 %v6685_v17  ;;  %4936 = vmatpush1.bf16.msra.mxu1 %v6698_v38 }
 0xd75   :  { %4906 = vmatprep.subr.bf16.mxu0 %v6700_v52  ;;  %4938 = vmatprep.subr.bf16.mxu1 %v6711_v7 }
 0xd78   :  { %4908 = vmatpush1.bf16.msra.mxu0 %v6723_v47  ;;  %4940 = vmatpush1.bf16.msra.mxu1 %v6736_v63 }
 0xd79   :  { %4910 = vmatprep.subr.bf16.mxu0 %v6738_v10  ;;  %4942 = vmatprep.subr.bf16.mxu1 %v6750_v26 }
 0xd7c   :  { %4912 = vmatpush1.bf16.msra.mxu0 %v6759_v40  ;;  %4944 = vmatpush1.bf16.msra.mxu1 %v6763_v54 }
 0xd7d   :  { %4914 = vmatprep.subr.bf16.mxu0 %v6777_v14  ;;  %4946 = vmatprep.subr.bf16.mxu1 %v6788_v8 }
 0xd80   :  { %4916 = vmatpush1.bf16.msra.mxu0 %v6790_v55  ;;  %4948 = vmatpush1.bf16.msra.mxu1 %v6799_v41 }
 0xd81   :  { %4950 = vmatprep.subr.bf16.mxu0 %v6525_v43  ;;  %4982 = vmatprep.subr.bf16.mxu1 %v6536_v27 }
 0xe36   :  { %v3215_v39 = vpop.f32.mrb[26].mxu0  ;;  %v3286_v57 = vpop.f32.mrb[26].mxu1 }
 0xe37   :  { %v5055_v30 = vadd.f32 %v3215_v39, %v6854_v45  ;;  %v3217_v59 = vpop.f32.mrb[27].mxu0  ;;  %v3288_v25 = vpop.f32.mrb[27].mxu1  ;;  %v5071_v13 = vadd.f32 %v3286_v57, %v6869_v34 }
 0xe38   :  { %v5056_v20 = vadd.f32 %v3217_v59, %v6858_v21  ;;  %v5072_v56 = vadd.f32 %v3288_v25, %v6864_v32 }
 0xe39   :  { %v3849_v28 = vmul.f32 -1.442695, %v5055_v30 }
 0xe3a   :  { %v3850_v50 = vmul.f32 -1.442695, %v5056_v20  ;;  %v3851_v60 = vmul.f32 -1.442695, %v5072_v56 }
 0xe3b   :  { %5350 = vpow2.f32 %v3849_v28 }
 0xe3c   :  { %5352 = vpow2.f32 %v3850_v50 }
 0xe3d   :  { %5354 = vpow2.f32 %v3851_v60 }
 0xe3e   :  { %5356 = vtanh.f32 %v5071_v13 }
 0xe45   :  { %v5351_v43 = vpop.eup %5350 }
 0xe46   :  { %v5353_v19 = vpop.eup %5352  ;;  %v3298_v27 = vadd.f32 1.0, %v5351_v43 }
 0xe47   :  { %v3304_v23 = vadd.f32 1.0, %v5353_v19  ;;  %v5355_v31 = vpop.eup %5354 }
 0xe48   :  { %5358 = vrcp.f32 %v3298_v27  ;;  %v5357_v36 = vpop.eup %5356  ;;  %v3311_v9 = vadd.f32 1.0, %v5355_v31 }
 0xe49   :  { %5360 = vrcp.f32 %v3304_v23 }
 0xe4a   :  { %5362 = vrcp.f32 %v3311_v9 }
 0xe52   :  { %v5359_v58 = vpop.eup %5358 }
 0xe53   :  { %v5361_v62 = vpop.eup %5360  ;;  %v3315_v35 = vmul.f32 %v5359_v58, %v5357_v36 }
 0xe54   :  { %v3314_v37 = vmul.f32 %v5361_v62, %v7052_v15  ;;  %v5363_v18 = vpop.eup %5362 }
 0xe56   :  { %v7097_v42 = vadd.f32 %v3315_v35, %v3314_v37 }
 0xe58   :  { %5364 = vtanh.f32 %v7097_v42 }
 0xe62   :  { %v5365_v1 = vpop.eup %5364 }
 0xe63   :  { %v3318_v0 = vmul.f32 %v5365_v1, %v5363_v18 }
 0xe65   :  { %3852 = vst [vmem:[%s7154_s4 + $0x28] sm:$0xff] %v3318_v0  ;;  %3390 = vmatmul.mubr.f32.vlgmr.msra.gmra.mrb[28].mxu0 %v3318_v0  ;;  %3461 = vmatmul.mubr.f32.vlgmr.msra.gmra.mrb[28].mxu1 %v3318_v0 }
 0xe66   :  { %4952 = vmatpush1.bf16.msra.mxu0 %v6538_v51  ;;  %4984 = vmatpush1.bf16.msra.mxu1 %v6547_v49 }
 0xe67   :  { %4954 = vmatprep.subr.bf16.mxu0 %v6561_v61  ;;  %4986 = vmatprep.subr.bf16.mxu1 %v6572_v24 }
 0xe68   :  { %3565 = vmatprep.mubr.f32.mxu0 %v5398_v3  ;;  %3636 = vmatprep.mubr.f32.mxu1 %v5398_v3 }
 0xe6a   :  { %4956 = vmatpush1.bf16.msra.mxu0 %v6574_v12  ;;  %4988 = vmatpush1.bf16.msra.mxu1 %v6583_v5 }
 0xe6b   :  { %4958 = vmatprep.subr.bf16.mxu0 %v6597_v53  ;;  %4990 = vmatprep.subr.bf16.mxu1 %v6608_v2 }
 0xe6e   :  { %4960 = vmatpush1.bf16.msra.mxu0 %v6610_v6  ;;  %4992 = vmatpush1.bf16.msra.mxu1 %v6619_v16 }
 0xe6f   :  { %4962 = vmatprep.subr.bf16.mxu0 %v6633_v29  ;;  %4994 = vmatprep.subr.bf16.mxu1 %v6644_v44 }
 0xe72   :  { %4964 = vmatpush1.bf16.msra.mxu0 %v6646_v48  ;;  %4996 = vmatpush1.bf16.msra.mxu1 %v6658_v4 }
 0xe73   :  { %4966 = vmatprep.subr.bf16.mxu0 %v6671_v22  ;;  %4998 = vmatprep.subr.bf16.mxu1 %v6673_v46 }
 0xe76   :  { %4968 = vmatpush1.bf16.msra.mxu0 %v6685_v17  ;;  %5000 = vmatpush1.bf16.msra.mxu1 %v6698_v38 }
 0xe77   :  { %4970 = vmatprep.subr.bf16.mxu0 %v6700_v52  ;;  %5002 = vmatprep.subr.bf16.mxu1 %v6711_v7 }
 0xe7a   :  { %4972 = vmatpush1.bf16.msra.mxu0 %v6723_v47  ;;  %5004 = vmatpush1.bf16.msra.mxu1 %v6736_v63 }
 0xe7b   :  { %4974 = vmatprep.subr.bf16.mxu0 %v6738_v10  ;;  %5006 = vmatprep.subr.bf16.mxu1 %v6750_v26 }
 0xe7e   :  { %4976 = vmatpush1.bf16.msra.mxu0 %v6759_v40  ;;  %5008 = vmatpush1.bf16.msra.mxu1 %v6763_v54 }
 0xe7f   :  { %4978 = vmatprep.subr.bf16.mxu0 %v6777_v14  ;;  %5010 = vmatprep.subr.bf16.mxu1 %v6788_v8 }
 0xe82   :  { %4980 = vmatpush1.bf16.msra.mxu0 %v6790_v55  ;;  %5012 = vmatpush1.bf16.msra.mxu1 %v6799_v41 }
 0xf38   :  { %v3391_v3 = vpop.f32.mrb[28].mxu0  ;;  %v3462_v51 = vpop.f32.mrb[28].mxu1 }
 0xf39   :  { %v5057_v49 = vadd.f32 %v3391_v3, %v6854_v45  ;;  %v3393_v61 = vpop.f32.mrb[29].mxu0  ;;  %v3464_v24 = vpop.f32.mrb[29].mxu1  ;;  %v5073_v16 = vadd.f32 %v3462_v51, %v6869_v34 }
 0xf3a   :  { %v5058_v12 = vadd.f32 %v3393_v61, %v6858_v21  ;;  %v5074_v2 = vadd.f32 %v3464_v24, %v6864_v32 }
 0xf3b   :  { %v3853_v5 = vmul.f32 -1.442695, %v5057_v49 }
 0xf3c   :  { %v3854_v53 = vmul.f32 -1.442695, %v5058_v12  ;;  %v3855_v6 = vmul.f32 -1.442695, %v5074_v2 }
 0xf3d   :  { %5366 = vpow2.f32 %v3853_v5 }
 0xf3e   :  { %5368 = vpow2.f32 %v3854_v53 }
 0xf3f   :  { %5370 = vpow2.f32 %v3855_v6 }
 0xf40   :  { %5372 = vtanh.f32 %v5073_v16 }
 0xf47   :  { %v5367_v29 = vpop.eup %5366 }
 0xf48   :  { %v5369_v44 = vpop.eup %5368  ;;  %v3474_v48 = vadd.f32 1.0, %v5367_v29 }
 0xf49   :  { %v3480_v4 = vadd.f32 1.0, %v5369_v44  ;;  %v5371_v22 = vpop.eup %5370 }
 0xf4a   :  { %5374 = vrcp.f32 %v3474_v48  ;;  %v5373_v46 = vpop.eup %5372  ;;  %v3487_v7 = vadd.f32 1.0, %v5371_v22 }
 0xf4b   :  { %5376 = vrcp.f32 %v3480_v4 }
 0xf4c   :  { %5378 = vrcp.f32 %v3487_v7 }
 0xf54   :  { %v5375_v17 = vpop.eup %5374 }
 0xf55   :  { %v5377_v38 = vpop.eup %5376  ;;  %v3491_v52 = vmul.f32 %v5375_v17, %v5373_v46 }
 0xf56   :  { %v3490_v47 = vmul.f32 %v5377_v38, %v7097_v42  ;;  %v5379_v10 = vpop.eup %5378 }
 0xf58   :  { %v3492_v63 = vadd.f32 %v3491_v52, %v3490_v47 }
 0xf5a   :  { %5380 = vtanh.f32 %v3492_v63 }
 0xf64   :  { %v5381_v26 = vpop.eup %5380 }
 0xf65   :  { %v3494_v40 = vmul.f32 %v5381_v26, %v5379_v10 }
 0xf67   :  { %3856 = vst [vmem:[%s7154_s4 + $0x30] sm:$0xff] %v3494_v40  ;;  %3566 = vmatmul.mubr.f32.vlgmr.msra.gmra.mrb[30].mxu0 %v3494_v40  ;;  %3637 = vmatmul.mubr.f32.vlgmr.msra.gmra.mrb[30].mxu1 %v3494_v40 }
0x103a   :  { %v3567_v54 = vpop.f32.mrb[30].mxu0  ;;  %v3638_v14 = vpop.f32.mrb[30].mxu1 }
0x103b   :  { %v5059_v8 = vadd.f32 %v3567_v54, %v6854_v45  ;;  %v3569_v55 = vpop.f32.mrb[31].mxu0  ;;  %v3640_v41 = vpop.f32.mrb[31].mxu1  ;;  %v5075_v30 = vadd.f32 %v3638_v14, %v6869_v34 }
0x103c   :  { %v5060_v15 = vadd.f32 %v3569_v55, %v6858_v21  ;;  %v5076_v39 = vadd.f32 %v3640_v41, %v6864_v32 }
0x103d   :  { %v3857_v11 = vmul.f32 -1.442695, %v5059_v8 }
0x103e   :  { %v3858_v33 = vmul.f32 -1.442695, %v5060_v15  ;;  %v3859_v57 = vmul.f32 -1.442695, %v5076_v39 }
0x103f   :  { %5382 = vpow2.f32 %v3857_v11 }
0x1040   :  { %5384 = vpow2.f32 %v3858_v33 }
0x1041   :  { %5386 = vpow2.f32 %v3859_v57 }
0x1042   :  { %5388 = vtanh.f32 %v5075_v30 }
0x1049   :  { %v5383_v59 = vpop.eup %5382 }
0x104a   :  { %v5385_v25 = vpop.eup %5384  ;;  %v3650_v20 = vadd.f32 1.0, %v5383_v59 }
0x104b   :  { %v3656_v28 = vadd.f32 1.0, %v5385_v25  ;;  %v5387_v45 = vpop.eup %5386 }
0x104c   :  { %5390 = vrcp.f32 %v3650_v20  ;;  %v5389_v50 = vpop.eup %5388  ;;  %v3663_v13 = vadd.f32 1.0, %v5387_v45 }
0x104d   :  { %5392 = vrcp.f32 %v3656_v28 }
0x104e   :  { %5394 = vrcp.f32 %v3663_v13 }
0x1056   :  { %v5391_v21 = vpop.eup %5390 }
0x1057   :  { %v5393_v56 = vpop.eup %5392  ;;  %v3667_v60 = vmul.f32 %v5391_v21, %v5389_v50 }
0x1058   :  { %v3666_v43 = vmul.f32 %v5393_v56, %v3492_v63  ;;  %v5395_v32 = vpop.eup %5394 }
0x105a   :  { %v3668_v19 = vadd.f32 %v3667_v60, %v3666_v43 }
0x105c   :  { %5396 = vtanh.f32 %v3668_v19 }
0x1066   :  { %v5397_v34 = vpop.eup %5396 }
0x1067   :  { %v3670_v27 = vmul.f32 %v5397_v34, %v5395_v32 }
0x1069   :  { %3860 = vst [vmem:[%s7154_s4 + $0x38] sm:$0xff] %v3670_v27 }

</bundles_post_ra>
